<compile_context>
chip_gen: v5e
topology: v5e:2x2
jax: 0.10.0
libtpu: 0.0.40
codegen_flags: <defaults>
</compile_context>

<pallas_src>
import numpy as np
import jax
import jax.numpy as jnp
from jax.experimental import pallas as pl
from jax.experimental.pallas import tpu as pltpu


# ---------------------------------------------------------------------------
# One-time (hoisted) constant builders
# ---------------------------------------------------------------------------

def _patch_cols(h_pad, w_pad, k, oh, ow):
    """Column-index table (k*k, oh*ow): entry[ki*k+kj, r*ow+c] = (r+ki)*w_pad + (c+kj)."""
    idx = np.zeros((k * k, oh * ow), dtype=np.int32)
    for ki in range(k):
        for kj in range(k):
            r = np.arange(oh)[:, None] + ki
            c = np.arange(ow)[None, :] + kj
            idx[ki * k + kj] = (r * w_pad + c).reshape(-1)
    return idx


def _pool_selectors(h_in, w_in):
    """Four 0/1 matrices (4, h_in*w_in, (h_in//2)*(w_in//2)) implementing MaxPool2d(2)
    as max_k (h @ sel[k]) on a (channels, h_in*w_in) activation matrix."""
    ph, pw = h_in // 2, w_in // 2
    sel = np.zeros((4, h_in * w_in, ph * pw), dtype=np.float32)
    for k, (di, dj) in enumerate(((0, 0), (0, 1), (1, 0), (1, 1))):
        for a in range(ph):
            for b in range(pw):
                sel[k, (2 * a + di) * w_in + (2 * b + dj), a * pw + b] = 1.0
    return sel


def prepare_params(w1, w2, w3, compute_dtype=jnp.float32):
    """Reshape / transpose / pad the PyTorch weights once and build the constant
    pooling selectors and patch-index tables (hoisted out of the per-call path)."""
    assert w1.shape == (16, 1, 3, 3)
    assert w2.shape == (32, 16, 5, 5)
    assert w3.shape == (10, 32 * 7 * 7)
    w1m = jnp.asarray(w1, dtype=compute_dtype).reshape(16, 9)        # (Cout, ki*3+kj)
    w2m = jnp.asarray(w2, dtype=compute_dtype).reshape(32, 400)      # (Cout, ci*25+ki*5+kj)
    # Classifier weight: transpose to (in, out) and zero-pad 10 -> 128 output lanes
    # so the logits store is lane-dense; sliced back to 10 outside the kernel.
    w3t = jnp.zeros((1568, 128), dtype=compute_dtype).at[:, :10].set(
        jnp.asarray(w3, dtype=compute_dtype).T)
    return dict(
        w1m=w1m, w2m=w2m, w3t=w3t,
        s1=jnp.asarray(_pool_selectors(30, 30)),       # (4, 900, 225) f32
        s2=jnp.asarray(_pool_selectors(15, 15)),       # (4, 225, 49)  f32
        cols1=jnp.asarray(_patch_cols(32, 32, 3, 30, 30)),   # (9, 900)
        cols2=jnp.asarray(_patch_cols(19, 19, 5, 15, 15)),   # (25, 225)
    )


# ---------------------------------------------------------------------------
# Pallas kernels
# ---------------------------------------------------------------------------

def _conv_relu_pool_kernel(p_ref, w_ref, s_ref, o_ref):
    """Fused conv(as matmul) + ReLU + 2x2 max-pool for one image.

    p_ref: (1, K*K*Cin, OH*OW)   im2col patches (transposed, spatial in lanes)
    w_ref: (Cout, K*K*Cin)       conv weight as a matrix
    s_ref: (4, OH*OW, PH*PW)     0/1 max-pool column selectors (f32)
    o_ref: (1, Cout, PH*PW)      pooled activations
    """
    h = jnp.dot(w_ref[...], p_ref[0], preferred_element_type=jnp.float32)  # (Cout, OH*OW)
    h = jnp.maximum(h, 0.0)                                                # ReLU in f32
    pooled = jnp.dot(h, s_ref[0], preferred_element_type=jnp.float32)
    for k in range(1, 4):
        pooled = jnp.maximum(
            pooled, jnp.dot(h, s_ref[k], preferred_element_type=jnp.float32))
    o_ref[0] = pooled.astype(o_ref.dtype)


def _linear_kernel(x_ref, w_ref, o_ref):
    o_ref[...] = jnp.dot(x_ref[...], w_ref[...],
                         preferred_element_type=jnp.float32).astype(o_ref.dtype)


def _conv_relu_pool(patches, w, sel, out_dtype):
    b, kk, hw = patches.shape
    cout = w.shape[0]
    phw = sel.shape[2]
    return pl.pallas_call(
        _conv_relu_pool_kernel,
        out_shape=jax.ShapeDtypeStruct((b, cout, phw), out_dtype),
        grid=(b,),
        in_specs=[
            pl.BlockSpec((1, kk, hw), lambda i: (i, 0, 0)),     # per-image patches
            pl.BlockSpec((cout, kk), lambda i: (0, 0)),         # weights: VMEM-resident
            pl.BlockSpec((4, hw, phw), lambda i: (0, 0, 0)),    # pool selectors: resident
        ],
        out_specs=pl.BlockSpec((1, cout, phw), lambda i: (i, 0, 0)),
        compiler_params=pltpu.CompilerParams(dimension_semantics=("parallel",)),
    )(patches, w, sel)


def _linear(x, w, out_dtype=jnp.float32):
    b, k = x.shape
    n = w.shape[1]
    tb = b if b <= 512 else 512      # batch tile; tiny demo batches go in one step
    assert b % tb == 0
    return pl.pallas_call(
        _linear_kernel,
        out_shape=jax.ShapeDtypeStruct((b, n), out_dtype),
        grid=(b // tb,),
        in_specs=[
            pl.BlockSpec((tb, k), lambda i: (i, 0)),
            pl.BlockSpec((k, n), lambda i: (0, 0)),
        ],
        out_specs=pl.BlockSpec((tb, n), lambda i: (i, 0)),
        compiler_params=pltpu.CompilerParams(dimension_semantics=("parallel",)),
    )(x, w)


# ---------------------------------------------------------------------------
# Forward pass (mirrors CNN.forward; also returns the feature taps)
# ---------------------------------------------------------------------------

@jax.jit
def cnn_forward(x, params):
    b = x.shape[0]
    assert x.shape[1:] == (1, 28, 28)
    cdt = params["w1m"].dtype

    # conv1 block: pad + im2col gather (layout only), fused matmul+ReLU+pool kernel
    xpad = jnp.pad(x.reshape(b, 28, 28).astype(cdt),
                   ((0, 0), (2, 2), (2, 2))).reshape(b, 32 * 32)
    p1 = xpad[:, params["cols1"]]                                     # (B, 9, 900)
    pool1 = _conv_relu_pool(p1, params["w1m"], params["s1"], cdt)     # (B, 16, 225)

    # conv2 block
    f1 = pool1.reshape(b, 16, 15, 15)                                 # == feature[1]
    f1pad = jnp.pad(f1, ((0, 0), (0, 0), (2, 2), (2, 2))).reshape(b, 16, 19 * 19)
    p2 = f1pad[:, :, params["cols2"]].reshape(b, 400, 225)            # (B, ci*25+ki*5+kj, 225)
    pool2 = _conv_relu_pool(p2, params["w2m"], params["s2"], cdt)     # (B, 32, 49)

    # classifier: (C,H,W) row-major flatten matches PyTorch x.view(B, -1)
    flat = pool2.reshape(b, 32 * 49)
    logits = _linear(flat, params["w3t"])[:, :10]                     # un-pad lanes

    f2 = pool2.reshape(b, 32, 7, 7)                                   # == feature[2]
    return logits, (x, f1.astype(jnp.float32), f2.astype(jnp.float32))


# ---------------------------------------------------------------------------
# Plain-JAX reference (mirrors the PyTorch module)
# ---------------------------------------------------------------------------

def _reference_forward(x, w1, w2, w3):
    dn = ("NCHW", "OIHW", "NCHW")
    y = jax.lax.conv_general_dilated(x, w1, (1, 1), ((2, 2), (2, 2)), dimension_numbers=dn)
    y = jnp.maximum(y, 0.0)
    y = jax.lax.reduce_window(y, -jnp.inf, jax.lax.max, (1, 1, 2, 2), (1, 1, 2, 2), "VALID")
    y = jax.lax.conv_general_dilated(y, w2, (1, 1), ((2, 2), (2, 2)), dimension_numbers=dn)
    y = jnp.maximum(y, 0.0)
    y = jax.lax.reduce_window(y, -jnp.inf, jax.lax.max, (1, 1, 2, 2), (1, 1, 2, 2), "VALID")
    return y.reshape(y.shape[0], -1) @ w3.T


if __name__ == "__main__":
    B = 2
    key = jax.random.PRNGKey(0)
    kx, k1, k2, k3 = jax.random.split(key, 4)

    x = jax.random.normal(kx, (B, 1, 28, 28), dtype=jnp.float32)
    w1 = jax.random.normal(k1, (16, 1, 3, 3), dtype=jnp.float32) * (1.0 / 3.0)
    w2 = jax.random.normal(k2, (32, 16, 5, 5), dtype=jnp.float32) * (1.0 / 20.0)
    w3 = jax.random.normal(k3, (10, 1568), dtype=jnp.float32) * (1.0 / np.sqrt(1568.0))

    # f32 path (default) — tight check against the plain-JAX reference.
    params = prepare_params(w1, w2, w3)
    logits, feats = cnn_forward(x, params)
    logits = jax.block_until_ready(logits)

    ref = _reference_forward(x, w1, w2, w3)
    assert logits.shape == (B, 10)
    assert feats[1].shape == (B, 16, 15, 15)
    assert feats[2].shape == (B, 32, 7, 7)
    assert jnp.allclose(logits, ref, atol=5e-2, rtol=5e-2), (
        f"max abs diff {jnp.max(jnp.abs(logits - ref))}")

    # bf16-operand / f32-accumulation path (HBM-traffic optimization for large batch).
    params_bf16 = prepare_params(w1, w2, w3, compute_dtype=jnp.bfloat16)
    logits_bf16, _ = cnn_forward(x, params_bf16)
    logits_bf16 = jax.block_until_ready(logits_bf16)
    assert logits_bf16.shape == (B, 10)
    assert jnp.allclose(logits_bf16, ref, atol=0.5), "bf16 path diverged"

    print("KERNEL_OK")
</pallas_src>

<mosaic_0001>
module attributes {stable_mosaic.version = 11 : i64} {
  func.func @_conv_relu_pool_kernel(%arg0: i32, %arg1: memref<1x9x900xf32, #tpu.memory_space<vmem>>, %arg2: memref<16x9xf32, #tpu.memory_space<vmem>>, %arg3: memref<4x900x225xf32, #tpu.memory_space<vmem>>, %arg4: memref<1x16x225xf32, #tpu.memory_space<vmem>>) attributes {dimension_semantics = [#tpu.dimension_semantics<parallel>], iteration_bounds = array<i64: 2>, scalar_prefetch = 0 : i64, scratch_operands = 0 : i64, tpu.core_type = #tpu.core_type<tc>, window_params = [{transform_indices = @transform_0, window_bounds = array<i64: 1, 9, 900>}, {pipeline_mode = #tpu.pipeline_mode<synchronous>, transform_indices = @transform_1, window_bounds = array<i64: 16, 9>}, {pipeline_mode = #tpu.pipeline_mode<synchronous>, transform_indices = @transform_2, window_bounds = array<i64: 4, 900, 225>}, {transform_indices = @transform_3, window_bounds = array<i64: 1, 16, 225>}]} {
    %c0 = arith.constant 0 : index
    %c0_0 = arith.constant 0 : index
    %0 = vector.load %arg2[%c0, %c0_0] : memref<16x9xf32, #tpu.memory_space<vmem>>, vector<16x9xf32>
    %c0_1 = arith.constant 0 : index
    %c0_2 = arith.constant 0 : index
    %c0_3 = arith.constant 0 : index
    %1 = vector.load %arg1[%c0_1, %c0_2, %c0_3] : memref<1x9x900xf32, #tpu.memory_space<vmem>>, vector<1x9x900xf32>
    %2 = vector.shape_cast %1 : vector<1x9x900xf32> to vector<9x900xf32>
    %cst = arith.constant dense<0.000000e+00> : vector<16x900xf32>
    %3 = tpu.matmul %0, %2, %cst {dimension_numbers = #tpu.dot_dimension_numbers<[1], [0], [0], [1], [0, 0, 1, 1], [], []>} : vector<16x9xf32>, vector<9x900xf32>, vector<16x900xf32> -> vector<16x900xf32>
    %cst_4 = arith.constant 0.000000e+00 : f32
    %4 = vector.broadcast %cst_4 : f32 to vector<16x900xf32>
    %5 = arith.maximumf %3, %4 : vector<16x900xf32>
    %c0_5 = arith.constant 0 : index
    %c0_6 = arith.constant 0 : index
    %c0_7 = arith.constant 0 : index
    %6 = vector.load %arg3[%c0_5, %c0_6, %c0_7] : memref<4x900x225xf32, #tpu.memory_space<vmem>>, vector<1x900x225xf32>
    %7 = vector.shape_cast %6 : vector<1x900x225xf32> to vector<900x225xf32>
    %cst_8 = arith.constant dense<0.000000e+00> : vector<16x225xf32>
    %8 = tpu.matmul %5, %7, %cst_8 {dimension_numbers = #tpu.dot_dimension_numbers<[1], [0], [0], [1], [0, 0, 1, 1], [], []>} : vector<16x900xf32>, vector<900x225xf32>, vector<16x225xf32> -> vector<16x225xf32>
    %c1 = arith.constant 1 : index
    %c0_9 = arith.constant 0 : index
    %c0_10 = arith.constant 0 : index
    %9 = vector.load %arg3[%c1, %c0_9, %c0_10] : memref<4x900x225xf32, #tpu.memory_space<vmem>>, vector<1x900x225xf32>
    %10 = vector.shape_cast %9 : vector<1x900x225xf32> to vector<900x225xf32>
    %cst_11 = arith.constant dense<0.000000e+00> : vector<16x225xf32>
    %11 = tpu.matmul %5, %10, %cst_11 {dimension_numbers = #tpu.dot_dimension_numbers<[1], [0], [0], [1], [0, 0, 1, 1], [], []>} : vector<16x900xf32>, vector<900x225xf32>, vector<16x225xf32> -> vector<16x225xf32>
    %12 = arith.maximumf %8, %11 : vector<16x225xf32>
    %c2 = arith.constant 2 : index
    %c0_12 = arith.constant 0 : index
    %c0_13 = arith.constant 0 : index
    %13 = vector.load %arg3[%c2, %c0_12, %c0_13] : memref<4x900x225xf32, #tpu.memory_space<vmem>>, vector<1x900x225xf32>
    %14 = vector.shape_cast %13 : vector<1x900x225xf32> to vector<900x225xf32>
    %cst_14 = arith.constant dense<0.000000e+00> : vector<16x225xf32>
    %15 = tpu.matmul %5, %14, %cst_14 {dimension_numbers = #tpu.dot_dimension_numbers<[1], [0], [0], [1], [0, 0, 1, 1], [], []>} : vector<16x900xf32>, vector<900x225xf32>, vector<16x225xf32> -> vector<16x225xf32>
    %16 = arith.maximumf %12, %15 : vector<16x225xf32>
    %c3 = arith.constant 3 : index
    %c0_15 = arith.constant 0 : index
    %c0_16 = arith.constant 0 : index
    %17 = vector.load %arg3[%c3, %c0_15, %c0_16] : memref<4x900x225xf32, #tpu.memory_space<vmem>>, vector<1x900x225xf32>
    %18 = vector.shape_cast %17 : vector<1x900x225xf32> to vector<900x225xf32>
    %cst_17 = arith.constant dense<0.000000e+00> : vector<16x225xf32>
    %19 = tpu.matmul %5, %18, %cst_17 {dimension_numbers = #tpu.dot_dimension_numbers<[1], [0], [0], [1], [0, 0, 1, 1], [], []>} : vector<16x900xf32>, vector<900x225xf32>, vector<16x225xf32> -> vector<16x225xf32>
    %20 = arith.maximumf %16, %19 : vector<16x225xf32>
    %c0_18 = arith.constant 0 : index
    %c0_19 = arith.constant 0 : index
    %c0_20 = arith.constant 0 : index
    %21 = vector.load %arg4[%c0_18, %c0_19, %c0_20] : memref<1x16x225xf32, #tpu.memory_space<vmem>>, vector<1x16x225xf32>
    %22 = vector.shape_cast %21 : vector<1x16x225xf32> to vector<16x225xf32>
    %23 = vector.shape_cast %20 : vector<16x225xf32> to vector<1x16x225xf32>
    tpu.vector_store %arg4[%c0_18, %c0_19, %c0_20], %23 {strides = array<i32>} : memref<1x16x225xf32, #tpu.memory_space<vmem>>, vector<1x16x225xf32>,
    return
  }
  func.func @transform_0(%arg0: i32) -> (i32, i32, i32) {
    %c0_i32 = arith.constant 0 : i32
    %c0_i32_0 = arith.constant 0 : i32
    %c0_i32_1 = arith.constant 0 : i32
    return %arg0, %c0_i32, %c0_i32_0 : i32, i32, i32
  }
  func.func @transform_1(%arg0: i32) -> (i32, i32) {
    %c0_i32 = arith.constant 0 : i32
    %c0_i32_0 = arith.constant 0 : i32
    %c0_i32_1 = arith.constant 0 : i32
    return %c0_i32, %c0_i32_0 : i32, i32
  }
  func.func @transform_2(%arg0: i32) -> (i32, i32, i32) {
    %c0_i32 = arith.constant 0 : i32
    %c0_i32_0 = arith.constant 0 : i32
    %c0_i32_1 = arith.constant 0 : i32
    %c0_i32_2 = arith.constant 0 : i32
    return %c0_i32, %c0_i32_0, %c0_i32_1 : i32, i32, i32
  }
  func.func @transform_3(%arg0: i32) -> (i32, i32, i32) {
    %c0_i32 = arith.constant 0 : i32
    %c0_i32_0 = arith.constant 0 : i32
    %c0_i32_1 = arith.constant 0 : i32
    return %arg0, %c0_i32, %c0_i32_0 : i32, i32, i32
  }
}

module attributes {stable_mosaic.version = 11 : i64} {
  func.func @_conv_relu_pool_kernel(%arg0: i32, %arg1: memref<1x400x225xf32, #tpu.memory_space<vmem>>, %arg2: memref<32x400xf32, #tpu.memory_space<vmem>>, %arg3: memref<4x225x49xf32, #tpu.memory_space<vmem>>, %arg4: memref<1x32x49xf32, #tpu.memory_space<vmem>>) attributes {dimension_semantics = [#tpu.dimension_semantics<parallel>], iteration_bounds = array<i64: 2>, scalar_prefetch = 0 : i64, scratch_operands = 0 : i64, tpu.core_type = #tpu.core_type<tc>, window_params = [{transform_indices = @transform_0, window_bounds = array<i64: 1, 400, 225>}, {pipeline_mode = #tpu.pipeline_mode<synchronous>, transform_indices = @transform_1, window_bounds = array<i64: 32, 400>}, {pipeline_mode = #tpu.pipeline_mode<synchronous>, transform_indices = @transform_2, window_bounds = array<i64: 4, 225, 49>}, {transform_indices = @transform_3, window_bounds = array<i64: 1, 32, 49>}]} {
    %c0 = arith.constant 0 : index
    %c0_0 = arith.constant 0 : index
    %0 = vector.load %arg2[%c0, %c0_0] : memref<32x400xf32, #tpu.memory_space<vmem>>, vector<32x400xf32>
    %c0_1 = arith.constant 0 : index
    %c0_2 = arith.constant 0 : index
    %c0_3 = arith.constant 0 : index
    %1 = vector.load %arg1[%c0_1, %c0_2, %c0_3] : memref<1x400x225xf32, #tpu.memory_space<vmem>>, vector<1x400x225xf32>
    %2 = vector.shape_cast %1 : vector<1x400x225xf32> to vector<400x225xf32>
    %cst = arith.constant dense<0.000000e+00> : vector<32x225xf32>
    %3 = tpu.matmul %0, %2, %cst {dimension_numbers = #tpu.dot_dimension_numbers<[1], [0], [0], [1], [0, 0, 1, 1], [], []>} : vector<32x400xf32>, vector<400x225xf32>, vector<32x225xf32> -> vector<32x225xf32>
    %cst_4 = arith.constant 0.000000e+00 : f32
    %4 = vector.broadcast %cst_4 : f32 to vector<32x225xf32>
    %5 = arith.maximumf %3, %4 : vector<32x225xf32>
    %c0_5 = arith.constant 0 : index
    %c0_6 = arith.constant 0 : index
    %c0_7 = arith.constant 0 : index
    %6 = vector.load %arg3[%c0_5, %c0_6, %c0_7] : memref<4x225x49xf32, #tpu.memory_space<vmem>>, vector<1x225x49xf32>
    %7 = vector.shape_cast %6 : vector<1x225x49xf32> to vector<225x49xf32>
    %cst_8 = arith.constant dense<0.000000e+00> : vector<32x49xf32>
    %8 = tpu.matmul %5, %7, %cst_8 {dimension_numbers = #tpu.dot_dimension_numbers<[1], [0], [0], [1], [0, 0, 1, 1], [], []>} : vector<32x225xf32>, vector<225x49xf32>, vector<32x49xf32> -> vector<32x49xf32>
    %c1 = arith.constant 1 : index
    %c0_9 = arith.constant 0 : index
    %c0_10 = arith.constant 0 : index
    %9 = vector.load %arg3[%c1, %c0_9, %c0_10] : memref<4x225x49xf32, #tpu.memory_space<vmem>>, vector<1x225x49xf32>
    %10 = vector.shape_cast %9 : vector<1x225x49xf32> to vector<225x49xf32>
    %cst_11 = arith.constant dense<0.000000e+00> : vector<32x49xf32>
    %11 = tpu.matmul %5, %10, %cst_11 {dimension_numbers = #tpu.dot_dimension_numbers<[1], [0], [0], [1], [0, 0, 1, 1], [], []>} : vector<32x225xf32>, vector<225x49xf32>, vector<32x49xf32> -> vector<32x49xf32>
    %12 = arith.maximumf %8, %11 : vector<32x49xf32>
    %c2 = arith.constant 2 : index
    %c0_12 = arith.constant 0 : index
    %c0_13 = arith.constant 0 : index
    %13 = vector.load %arg3[%c2, %c0_12, %c0_13] : memref<4x225x49xf32, #tpu.memory_space<vmem>>, vector<1x225x49xf32>
    %14 = vector.shape_cast %13 : vector<1x225x49xf32> to vector<225x49xf32>
    %cst_14 = arith.constant dense<0.000000e+00> : vector<32x49xf32>
    %15 = tpu.matmul %5, %14, %cst_14 {dimension_numbers = #tpu.dot_dimension_numbers<[1], [0], [0], [1], [0, 0, 1, 1], [], []>} : vector<32x225xf32>, vector<225x49xf32>, vector<32x49xf32> -> vector<32x49xf32>
    %16 = arith.maximumf %12, %15 : vector<32x49xf32>
    %c3 = arith.constant 3 : index
    %c0_15 = arith.constant 0 : index
    %c0_16 = arith.constant 0 : index
    %17 = vector.load %arg3[%c3, %c0_15, %c0_16] : memref<4x225x49xf32, #tpu.memory_space<vmem>>, vector<1x225x49xf32>
    %18 = vector.shape_cast %17 : vector<1x225x49xf32> to vector<225x49xf32>
    %cst_17 = arith.constant dense<0.000000e+00> : vector<32x49xf32>
    %19 = tpu.matmul %5, %18, %cst_17 {dimension_numbers = #tpu.dot_dimension_numbers<[1], [0], [0], [1], [0, 0, 1, 1], [], []>} : vector<32x225xf32>, vector<225x49xf32>, vector<32x49xf32> -> vector<32x49xf32>
    %20 = arith.maximumf %16, %19 : vector<32x49xf32>
    %c0_18 = arith.constant 0 : index
    %c0_19 = arith.constant 0 : index
    %c0_20 = arith.constant 0 : index
    %21 = vector.load %arg4[%c0_18, %c0_19, %c0_20] : memref<1x32x49xf32, #tpu.memory_space<vmem>>, vector<1x32x49xf32>
    %22 = vector.shape_cast %21 : vector<1x32x49xf32> to vector<32x49xf32>
    %23 = vector.shape_cast %20 : vector<32x49xf32> to vector<1x32x49xf32>
    tpu.vector_store %arg4[%c0_18, %c0_19, %c0_20], %23 {strides = array<i32>} : memref<1x32x49xf32, #tpu.memory_space<vmem>>, vector<1x32x49xf32>,
    return
  }
  func.func @transform_0(%arg0: i32) -> (i32, i32, i32) {
    %c0_i32 = arith.constant 0 : i32
    %c0_i32_0 = arith.constant 0 : i32
    %c0_i32_1 = arith.constant 0 : i32
    return %arg0, %c0_i32, %c0_i32_0 : i32, i32, i32
  }
  func.func @transform_1(%arg0: i32) -> (i32, i32) {
    %c0_i32 = arith.constant 0 : i32
    %c0_i32_0 = arith.constant 0 : i32
    %c0_i32_1 = arith.constant 0 : i32
    return %c0_i32, %c0_i32_0 : i32, i32
  }
  func.func @transform_2(%arg0: i32) -> (i32, i32, i32) {
    %c0_i32 = arith.constant 0 : i32
    %c0_i32_0 = arith.constant 0 : i32
    %c0_i32_1 = arith.constant 0 : i32
    %c0_i32_2 = arith.constant 0 : i32
    return %c0_i32, %c0_i32_0, %c0_i32_1 : i32, i32, i32
  }
  func.func @transform_3(%arg0: i32) -> (i32, i32, i32) {
    %c0_i32 = arith.constant 0 : i32
    %c0_i32_0 = arith.constant 0 : i32
    %c0_i32_1 = arith.constant 0 : i32
    return %arg0, %c0_i32, %c0_i32_0 : i32, i32, i32
  }
}

module attributes {stable_mosaic.version = 11 : i64} {
  func.func @_linear_kernel(%arg0: i32, %arg1: memref<2x1568xf32, #tpu.memory_space<vmem>>, %arg2: memref<1568x128xf32, #tpu.memory_space<vmem>>, %arg3: memref<2x128xf32, #tpu.memory_space<vmem>>) attributes {dimension_semantics = [#tpu.dimension_semantics<parallel>], iteration_bounds = array<i64: 1>, scalar_prefetch = 0 : i64, scratch_operands = 0 : i64, tpu.core_type = #tpu.core_type<tc>, window_params = [{transform_indices = @transform_0, window_bounds = array<i64: 2, 1568>}, {pipeline_mode = #tpu.pipeline_mode<synchronous>, transform_indices = @transform_1, window_bounds = array<i64: 1568, 128>}, {transform_indices = @transform_2, window_bounds = array<i64: 2, 128>}]} {
    %c0 = arith.constant 0 : index
    %c0_0 = arith.constant 0 : index
    %0 = vector.load %arg1[%c0, %c0_0] : memref<2x1568xf32, #tpu.memory_space<vmem>>, vector<2x1568xf32>
    %c0_1 = arith.constant 0 : index
    %c0_2 = arith.constant 0 : index
    %1 = vector.load %arg2[%c0_1, %c0_2] : memref<1568x128xf32, #tpu.memory_space<vmem>>, vector<1568x128xf32>
    %cst = arith.constant dense<0.000000e+00> : vector<2x128xf32>
    %2 = tpu.matmul %0, %1, %cst {dimension_numbers = #tpu.dot_dimension_numbers<[1], [0], [0], [1], [0, 0, 1, 1], [], []>} : vector<2x1568xf32>, vector<1568x128xf32>, vector<2x128xf32> -> vector<2x128xf32>
    %c0_3 = arith.constant 0 : index
    %c0_4 = arith.constant 0 : index
    %3 = vector.load %arg3[%c0_3, %c0_4] : memref<2x128xf32, #tpu.memory_space<vmem>>, vector<2x128xf32>
    tpu.vector_store %arg3[%c0_3, %c0_4], %2 {strides = array<i32>} : memref<2x128xf32, #tpu.memory_space<vmem>>, vector<2x128xf32>,
    return
  }
  func.func @transform_0(%arg0: i32) -> (i32, i32) {
    %c0_i32 = arith.constant 0 : i32
    %c0_i32_0 = arith.constant 0 : i32
    return %arg0, %c0_i32 : i32, i32
  }
  func.func @transform_1(%arg0: i32) -> (i32, i32) {
    %c0_i32 = arith.constant 0 : i32
    %c0_i32_0 = arith.constant 0 : i32
    %c0_i32_1 = arith.constant 0 : i32
    return %c0_i32, %c0_i32_0 : i32, i32
  }
  func.func @transform_2(%arg0: i32) -> (i32, i32) {
    %c0_i32 = arith.constant 0 : i32
    %c0_i32_0 = arith.constant 0 : i32
    return %arg0, %c0_i32 : i32, i32
  }
}

</mosaic_0001>

<bundles_post_ra>
// kernel: cnn_forward.3
= control target key start
LH: loop header
LB: loop body
LE: loop exit
PB: predicated region body
PF: predicated region fallthrough
CT: control target
= control target key end

     0   :  { %s3679_s12 = smov 0   ;;  %s6831_s0 = inlined_call_operand.vmem [shape: f32[2,9,900], index: 0, kind: input, shape index: {}]   ;;  %s6832_s1 = inlined_call_operand.vmem [shape: f32[16,9], index: 1, kind: input, shape index: {}]   ;;  %s6833_s2 = inlined_call_operand.vmem [shape: f32[4,900,225], index: 2, kind: input, shape index: {}]   ;;  %s6834_s3 = inlined_call_operand.vmem [shape: f32[2,16,225], index: 3, kind: output, shape index: {}]  }
   0x1 LB: > { %s2904_s13 = sadd.s32 4294967295, %s3657_s12   ;;  %p2908_p0 = scmp.ge.s32.totalorder %s3657_s12, 1  ;;  %s3657_s12 = sphi %s3679_s12, %s13_s12  }
   0x2   : > { %p137_p1 = scmp.lt.s32.totalorder %s3657_s12, 3 }
   0x4   : > { %p138_p2 = pnand %p2908_p0, %p137_p1 }
   0x6   : > { %141 = sbr.rel (%p138_p2) target bundleno = 778 (0x30a), region = 32 }
   0xb   : > { %p161_p3 = scmp.lt.s32.totalorder %s2904_s13, 1  ;;  %vm196_vm0 = vcmask 1040384   ;;  %v171_v8 = vld [vmem:[%s6832_s1] sm:$0xff]  ;;  %vm189_vm1 = vcmask 72704   ;;  %v451_v17 = vld [vmem:[%s6833_s2 + $0xf0] sm:$0xff]  ;;  %v3738_v20 = vld [vmem:[%s6832_s1 + $0x8] sm:$0xff] }
   0xc   : > { %v483_v18 = vld [vmem:[%s6833_s2 + $0x1f0] sm:$0xff]  ;;  %v449_v21 = vld [vmem:[%s6833_s2 + $0xe0] sm:$0xff]  ;;  %vm654_vm2 = vcmask 1043456   ;;  %vm647_vm3 = vcmask 31744   ;;  %vm2845_vm4 = vcmask 793600  }
   0xd   : > { %s6846_s13 = smov (!%p161_p3, %s2904_s13), 1  ;;  %v515_v19 = vld [vmem:[%s6833_s2 + $0x2f0] sm:$0xff]  ;;  %v481_v22 = vld [vmem:[%s6833_s2 + $0x1e0] sm:$0xff] }
   0xe   : > { %s3641_s14 = sshll.u32 %s6846_s13, 7  ;;  %v513_v23 = vld [vmem:[%s6833_s2 + $0x2e0] sm:$0xff]  ;;  %v447_v24 = vld [vmem:[%s6833_s2 + $0xd0] sm:$0xff]  ;;  %s3642_s30 = sshll.u32 %s6846_s13, 5 }
   0xf   : > { %s3693_s17 = scalar_lea.vmem %s6831_s0, %s3641_s14  ;;  %v479_v25 = vld [vmem:[%s6833_s2 + $0x1d0] sm:$0xff]  ;;  %v445_v27 = vld [vmem:[%s6833_s2 + $0xc0] sm:$0xff]  ;;  %s6818_s6 = scalar_lea.vmem %s6834_s3, %s3642_s30 }
  0x10   : > { %v181_v0 = vld [vmem:[%s3693_s17 + $0x40] sm:$0x1]  ;;  %v182_v1 = vld [vmem:[%s3693_s17 + $0x48] sm:$0x1]  ;;  %v183_v2 = vld [vmem:[%s3693_s17 + $0x50] sm:$0x1] }
  0x11   : > { %2913 = vmatpush.msk.msra.mxu0 %vm196_vm0, %v181_v0  ;;  %2916 = vmatpush.msk.msra.mxu1 %vm196_vm0, %v182_v1  ;;  %v184_v3 = vld [vmem:[%s3693_s17 + $0x58] sm:$0x1]  ;;  %v173_v4 = vld [vmem:[%s3693_s17] sm:$0xff]  ;;  %v174_v5 = vld [vmem:[%s3693_s17 + $0x8] sm:$0xff] }
  0x12   : > { %2919 = vmatpush.msk.msra.mxu2 %vm196_vm0, %v183_v2  ;;  %2922 = vmatpush.msk.msra.mxu3 %vm196_vm0, %v184_v3  ;;  %v175_v6 = vld [vmem:[%s3693_s17 + $0x10] sm:$0xff]  ;;  %v176_v7 = vld [vmem:[%s3693_s17 + $0x18] sm:$0xff]  ;;  %v185_v9 = vld [vmem:[%s3693_s17 + $0x60] sm:$0x1] }
  0x13   : > { %236 = vmatpush.msra.mxu0 %v173_v4  ;;  %259 = vmatpush.msra.mxu1 %v174_v5  ;;  %v187_v10 = vld [vmem:[%s3693_s17 + $0x70] sm:$0x1]  ;;  %v188_v11 = vld [vmem:[%s3693_s17 + $0x78] sm:$0x1]  ;;  %v186_v12 = vld [vmem:[%s3693_s17 + $0x68] sm:$0x1] }
  0x14   : > { %282 = vmatpush.msra.mxu2 %v175_v6  ;;  %305 = vmatpush.msra.mxu3 %v176_v7  ;;  %v177_v13 = vld [vmem:[%s3693_s17 + $0x20] sm:$0xff]  ;;  %v179_v14 = vld [vmem:[%s3693_s17 + $0x30] sm:$0xff]  ;;  %v180_v15 = vld [vmem:[%s3693_s17 + $0x38] sm:$0xff] }
  0x15   : > { %2914 = vmatmul.msk.f32.vlgmr.msra.gmra.mxu0 %vm189_vm1, %v171_v8  ;;  %2917 = vmatmul.msk.f32.vlgmr.msra.gmra.mxu1 %vm189_vm1, %v171_v8  ;;  %v178_v16 = vld [vmem:[%s3693_s17 + $0x28] sm:$0xff]  ;;  %v511_v26 = vld [vmem:[%s6833_s2 + $0x2d0] sm:$0xff]  ;;  %v477_v28 = vld [vmem:[%s6833_s2 + $0x1c0] sm:$0xff] }
  0x16   : > { %2920 = vmatmul.msk.f32.vlgmr.msra.gmra.mxu2 %vm189_vm1, %v171_v8  ;;  %2923 = vmatmul.msk.f32.vlgmr.msra.gmra.mxu3 %vm189_vm1, %v171_v8  ;;  %v509_v29 = vld [vmem:[%s6833_s2 + $0x2c0] sm:$0xff]  ;;  %v443_v30 = vld [vmem:[%s6833_s2 + $0xb0] sm:$0xff] }
  0x17   : > { %2925 = vmatpush.msk.msrb.mxu0 %vm196_vm0, %v185_v9  ;;  %2931 = vmatpush.msk.msrb.mxu2 %vm196_vm0, %v187_v10  ;;  %v475_v31 = vld [vmem:[%s6833_s2 + $0x1b0] sm:$0xff]  ;;  %v441_v34 = vld [vmem:[%s6833_s2 + $0xa0] sm:$0xff] }
  0x18   : > { %2934 = vmatpush.msk.msrb.mxu3 %vm196_vm0, %v188_v11  ;;  %2928 = vmatpush.msk.msrb.mxu1 %vm196_vm0, %v186_v12  ;;  %v507_v32 = vld [vmem:[%s6833_s2 + $0x2b0] sm:$0xff]  ;;  %v473_v35 = vld [vmem:[%s6833_s2 + $0x1a0] sm:$0xff] }
  0x19   : > { %328 = vmatpush.msrb.mxu0 %v177_v13  ;;  %374 = vmatpush.msrb.mxu2 %v179_v14  ;;  %v547_v33 = vld [vmem:[%s6833_s2 + $0x3f0] sm:$0xff]  ;;  %v505_v36 = vld [vmem:[%s6833_s2 + $0x2a0] sm:$0xff] }
  0x1a   : > { %397 = vmatpush.msrb.mxu3 %v180_v15  ;;  %351 = vmatpush.msrb.mxu1 %v178_v16  ;;  %v545_v37 = vld [vmem:[%s6833_s2 + $0x3e0] sm:$0xff]  ;;  %v439_v38 = vld [vmem:[%s6833_s2 + $0x90] sm:$0xff] }
  0x1b   : > { %661 = vmatpush.msra.mxu0 %v451_v17  ;;  %707 = vmatpush.msra.mxu2 %v515_v19  ;;  %v471_v39 = vld [vmem:[%s6833_s2 + $0x190] sm:$0xff]  ;;  %v437_v42 = vld [vmem:[%s6833_s2 + $0x80] sm:$0xff] }
  0x1c   : > { %684 = vmatpush.msra.mxu1 %v483_v18  ;;  %730 = vmatpush.msra.mxu3 %v547_v33  ;;  %v503_v40 = vld [vmem:[%s6833_s2 + $0x290] sm:$0xff]  ;;  %v469_v43 = vld [vmem:[%s6833_s2 + $0x180] sm:$0xff] }
  0x1d   : > { %2915 = vmatmul.msk.f32.gmra.mxu0 %vm189_vm1, %v3738_v20  ;;  %2918 = vmatmul.msk.f32.gmra.mxu1 %vm189_vm1, %v3738_v20  ;;  %v543_v41 = vld [vmem:[%s6833_s2 + $0x3d0] sm:$0xff]  ;;  %v501_v44 = vld [vmem:[%s6833_s2 + $0x280] sm:$0xff] }
  0x1e   : > { %2921 = vmatmul.msk.f32.gmra.mxu2 %vm189_vm1, %v3738_v20  ;;  %2924 = vmatmul.msk.f32.gmra.mxu3 %vm189_vm1, %v3738_v20  ;;  %v541_v45 = vld [vmem:[%s6833_s2 + $0x3c0] sm:$0xff]  ;;  %v435_v46 = vld [vmem:[%s6833_s2 + $0x70] sm:$0xff] }
  0x1f   : > { %662 = vmatpush.msra.mxu0 %v449_v21  ;;  %685 = vmatpush.msra.mxu1 %v481_v22  ;;  %v467_v47 = vld [vmem:[%s6833_s2 + $0x170] sm:$0xff]  ;;  %v433_v50 = vld [vmem:[%s6833_s2 + $0x60] sm:$0xff] }
  0x20   : > { %708 = vmatpush.msra.mxu2 %v513_v23  ;;  %731 = vmatpush.msra.mxu3 %v545_v37  ;;  %v499_v48 = vld [vmem:[%s6833_s2 + $0x270] sm:$0xff]  ;;  %v465_v51 = vld [vmem:[%s6833_s2 + $0x160] sm:$0xff] }
  0x21   : > { %663 = vmatpush.msra.mxu0 %v447_v24  ;;  %686 = vmatpush.msra.mxu1 %v479_v25  ;;  %v539_v49 = vld [vmem:[%s6833_s2 + $0x3b0] sm:$0xff]  ;;  %v497_v52 = vld [vmem:[%s6833_s2 + $0x260] sm:$0xff] }
  0x22   : > { %709 = vmatpush.msra.mxu2 %v511_v26  ;;  %732 = vmatpush.msra.mxu3 %v543_v41  ;;  %v537_v53 = vld [vmem:[%s6833_s2 + $0x3a0] sm:$0xff]  ;;  %v431_v54 = vld [vmem:[%s6833_s2 + $0x50] sm:$0xff] }
  0x23   : > { %664 = vmatpush.msra.mxu0 %v445_v27  ;;  %687 = vmatpush.msra.mxu1 %v477_v28  ;;  %v463_v55 = vld [vmem:[%s6833_s2 + $0x150] sm:$0xff]  ;;  %v429_v58 = vld [vmem:[%s6833_s2 + $0x40] sm:$0xff] }
  0x24   : > { %710 = vmatpush.msra.mxu2 %v509_v29  ;;  %733 = vmatpush.msra.mxu3 %v541_v45  ;;  %v495_v56 = vld [vmem:[%s6833_s2 + $0x250] sm:$0xff]  ;;  %v461_v59 = vld [vmem:[%s6833_s2 + $0x140] sm:$0xff] }
  0x25   : > { %2926 = vmatmul.msk.f32.vlgmr.msrb.gmra.mxu0 %vm189_vm1, %v171_v8  ;;  %2929 = vmatmul.msk.f32.vlgmr.msrb.gmra.mxu1 %vm189_vm1, %v171_v8  ;;  %v535_v57 = vld [vmem:[%s6833_s2 + $0x390] sm:$0xff]  ;;  %v493_v60 = vld [vmem:[%s6833_s2 + $0x240] sm:$0xff] }
  0x26   : > { %2932 = vmatmul.msk.f32.vlgmr.msrb.gmra.mxu2 %vm189_vm1, %v171_v8  ;;  %2935 = vmatmul.msk.f32.vlgmr.msrb.gmra.mxu3 %vm189_vm1, %v171_v8  ;;  %v533_v61 = vld [vmem:[%s6833_s2 + $0x380] sm:$0xff]  ;;  %v427_v62 = vld [vmem:[%s6833_s2 + $0x30] sm:$0xff] }
  0x27   : > { %665 = vmatpush.msra.mxu0 %v443_v30  ;;  %688 = vmatpush.msra.mxu1 %v475_v31  ;;  %v459_v63 = vld [vmem:[%s6833_s2 + $0x130] sm:$0xff]  ;;  %v425_v2 = vld [vmem:[%s6833_s2 + $0x20] sm:$0xff] }
  0x28   : > { %711 = vmatpush.msra.mxu2 %v507_v32  ;;  %734 = vmatpush.msra.mxu3 %v539_v49  ;;  %v491_v0 = vld [vmem:[%s6833_s2 + $0x230] sm:$0xff]  ;;  %v457_v3 = vld [vmem:[%s6833_s2 + $0x120] sm:$0xff] }
  0x29   : > { %666 = vmatpush.msra.mxu0 %v441_v34  ;;  %689 = vmatpush.msra.mxu1 %v473_v35  ;;  %v531_v1 = vld [vmem:[%s6833_s2 + $0x370] sm:$0xff]  ;;  %v489_v4 = vld [vmem:[%s6833_s2 + $0x220] sm:$0xff] }
  0x2a   : > { %712 = vmatpush.msra.mxu2 %v505_v36  ;;  %735 = vmatpush.msra.mxu3 %v537_v53  ;;  %v529_v5 = vld [vmem:[%s6833_s2 + $0x360] sm:$0xff]  ;;  %v423_v6 = vld [vmem:[%s6833_s2 + $0x10] sm:$0xff] }
  0x2b   : > { %667 = vmatpush.msra.mxu0 %v439_v38  ;;  %690 = vmatpush.msra.mxu1 %v471_v39  ;;  %v455_v7 = vld [vmem:[%s6833_s2 + $0x110] sm:$0xff]  ;;  %v421_v10 = vld [vmem:[%s6833_s2] sm:$0xff] }
  0x2c   : > { %713 = vmatpush.msra.mxu2 %v503_v40  ;;  %736 = vmatpush.msra.mxu3 %v535_v57  ;;  %v487_v8 = vld [vmem:[%s6833_s2 + $0x210] sm:$0xff]  ;;  %v453_v11 = vld [vmem:[%s6833_s2 + $0x100] sm:$0xff] }
  0x2d   : > { %2930 = vmatmul.msk.f32.gmra.mxu1 %vm189_vm1, %v3738_v20  ;;  %2927 = vmatmul.msk.f32.gmra.mxu0 %vm189_vm1, %v3738_v20  ;;  %v527_v9 = vld [vmem:[%s6833_s2 + $0x350] sm:$0xff]  ;;  %v485_v14 = vld [vmem:[%s6833_s2 + $0x200] sm:$0xff] }
  0x2e   : > { %2933 = vmatmul.msk.f32.gmra.mxu2 %vm189_vm1, %v3738_v20  ;;  %2936 = vmatmul.msk.f32.gmra.mxu3 %vm189_vm1, %v3738_v20  ;;  %v579_v12 = vld [vmem:[%s6833_s2 + $0x4f0] sm:$0xff]  ;;  %v525_v15 = vld [vmem:[%s6833_s2 + $0x340] sm:$0xff] }
  0x2f   : > { %668 = vmatpush.msra.mxu0 %v437_v42  ;;  %691 = vmatpush.msra.mxu1 %v469_v43  ;;  %v611_v13 = vld [vmem:[%s6833_s2 + $0x5f0] sm:$0xff]  ;;  %v577_v16 = vld [vmem:[%s6833_s2 + $0x4e0] sm:$0xff] }
  0x30   : > { %714 = vmatpush.msra.mxu2 %v501_v44  ;;  %737 = vmatpush.msra.mxu3 %v533_v61  ;;  %v609_v17 = vld [vmem:[%s6833_s2 + $0x5e0] sm:$0xff]  ;;  %v643_v18 = vld [vmem:[%s6833_s2 + $0x6f0] sm:$0xff] }
  0x31   : > { %669 = vmatpush.msra.mxu0 %v435_v46  ;;  %692 = vmatpush.msra.mxu1 %v467_v47  ;;  %v575_v19 = vld [vmem:[%s6833_s2 + $0x4d0] sm:$0xff]  ;;  %v641_v21 = vld [vmem:[%s6833_s2 + $0x6e0] sm:$0xff] }
  0x32   : > { %715 = vmatpush.msra.mxu2 %v499_v48  ;;  %738 = vmatpush.msra.mxu3 %v531_v1  ;;  %v607_v20 = vld [vmem:[%s6833_s2 + $0x5d0] sm:$0xff]  ;;  %v573_v22 = vld [vmem:[%s6833_s2 + $0x4c0] sm:$0xff] }
  0x33   : > { %670 = vmatpush.msra.mxu0 %v433_v50  ;;  %693 = vmatpush.msra.mxu1 %v465_v51  ;;  %v605_v23 = vld [vmem:[%s6833_s2 + $0x5c0] sm:$0xff]  ;;  %v639_v24 = vld [vmem:[%s6833_s2 + $0x6d0] sm:$0xff] }
  0x34   : > { %716 = vmatpush.msra.mxu2 %v497_v52  ;;  %739 = vmatpush.msra.mxu3 %v529_v5  ;;  %v571_v25 = vld [vmem:[%s6833_s2 + $0x4b0] sm:$0xff]  ;;  %v637_v27 = vld [vmem:[%s6833_s2 + $0x6c0] sm:$0xff] }
  0x35   : > { %671 = vmatpush.msra.mxu0 %v431_v54  ;;  %694 = vmatpush.msra.mxu1 %v463_v55  ;;  %v603_v26 = vld [vmem:[%s6833_s2 + $0x5b0] sm:$0xff]  ;;  %v569_v28 = vld [vmem:[%s6833_s2 + $0x4a0] sm:$0xff] }
  0x36   : > { %717 = vmatpush.msra.mxu2 %v495_v56  ;;  %740 = vmatpush.msra.mxu3 %v527_v9  ;;  %v601_v29 = vld [vmem:[%s6833_s2 + $0x5a0] sm:$0xff]  ;;  %v635_v30 = vld [vmem:[%s6833_s2 + $0x6b0] sm:$0xff]  ;;  %v482_v9 = vld [vmem:[%s6833_s2 + $0x1e8] sm:$0xff] }
  0x37   : > { %672 = vmatpush.msra.mxu0 %v429_v58  ;;  %695 = vmatpush.msra.mxu1 %v461_v59  ;;  %v567_v31 = vld [vmem:[%s6833_s2 + $0x490] sm:$0xff]  ;;  %v633_v33 = vld [vmem:[%s6833_s2 + $0x6a0] sm:$0xff] }
  0x38   : > { %718 = vmatpush.msra.mxu2 %v493_v60  ;;  %741 = vmatpush.msra.mxu3 %v525_v15  ;;  %v599_v32 = vld [vmem:[%s6833_s2 + $0x590] sm:$0xff]  ;;  %v565_v34 = vld [vmem:[%s6833_s2 + $0x480] sm:$0xff] }
  0x39   : > { %673 = vmatpush.msra.mxu0 %v427_v62  ;;  %696 = vmatpush.msra.mxu1 %v459_v63  ;;  %v597_v35 = vld [vmem:[%s6833_s2 + $0x580] sm:$0xff]  ;;  %v631_v36 = vld [vmem:[%s6833_s2 + $0x690] sm:$0xff] }
  0x3a   : > { %719 = vmatpush.msra.mxu2 %v491_v0  ;;  %v563_v37 = vld [vmem:[%s6833_s2 + $0x470] sm:$0xff]  ;;  %v629_v39 = vld [vmem:[%s6833_s2 + $0x680] sm:$0xff] }
  0x3b   : > { %674 = vmatpush.msra.mxu0 %v425_v2  ;;  %697 = vmatpush.msra.mxu1 %v457_v3  ;;  %v595_v38 = vld [vmem:[%s6833_s2 + $0x570] sm:$0xff]  ;;  %v561_v40 = vld [vmem:[%s6833_s2 + $0x460] sm:$0xff] }
  0x3c   : > { %720 = vmatpush.msra.mxu2 %v489_v4  ;;  %v593_v41 = vld [vmem:[%s6833_s2 + $0x560] sm:$0xff]  ;;  %v627_v42 = vld [vmem:[%s6833_s2 + $0x670] sm:$0xff] }
  0x3d   : > { %675 = vmatpush.msra.mxu0 %v423_v6  ;;  %698 = vmatpush.msra.mxu1 %v455_v7  ;;  %v559_v43 = vld [vmem:[%s6833_s2 + $0x450] sm:$0xff]  ;;  %v625_v45 = vld [vmem:[%s6833_s2 + $0x660] sm:$0xff]  ;;  %v484_v7 = vld [vmem:[%s6833_s2 + $0x1f8] sm:$0xff] }
  0x3e   : > { %721 = vmatpush.msra.mxu2 %v487_v8  ;;  %v591_v44 = vld [vmem:[%s6833_s2 + $0x550] sm:$0xff]  ;;  %v557_v46 = vld [vmem:[%s6833_s2 + $0x440] sm:$0xff]  ;;  %v516_v8 = vld [vmem:[%s6833_s2 + $0x2f8] sm:$0xff] }
  0x3f   : > { %676 = vmatpush.msra.mxu0 %v421_v10  ;;  %699 = vmatpush.msra.mxu1 %v453_v11  ;;  %v589_v47 = vld [vmem:[%s6833_s2 + $0x540] sm:$0xff]  ;;  %v623_v48 = vld [vmem:[%s6833_s2 + $0x650] sm:$0xff]  ;;  %v514_v10 = vld [vmem:[%s6833_s2 + $0x2e8] sm:$0xff] }
  0x40   : > { %722 = vmatpush.msra.mxu2 %v485_v14  ;;  %v555_v49 = vld [vmem:[%s6833_s2 + $0x430] sm:$0xff]  ;;  %v553_v51 = vld [vmem:[%s6833_s2 + $0x420] sm:$0xff]  ;;  %v480_v11 = vld [vmem:[%s6833_s2 + $0x1d8] sm:$0xff] }
  0x41   : > { %753 = vmatpush.msrb.mxu0 %v579_v12  ;;  %776 = vmatpush.msrb.mxu1 %v611_v13  ;;  %v587_v50 = vld [vmem:[%s6833_s2 + $0x530] sm:$0xff]  ;;  %v585_v52 = vld [vmem:[%s6833_s2 + $0x520] sm:$0xff]  ;;  %v512_v12 = vld [vmem:[%s6833_s2 + $0x2d8] sm:$0xff] }
  0x42   : > { %799 = vmatpush.msrb.mxu2 %v643_v18  ;;  %v551_v53 = vld [vmem:[%s6833_s2 + $0x410] sm:$0xff]  ;;  %v621_v55 = vld [vmem:[%s6833_s2 + $0x640] sm:$0xff]  ;;  %v452_v18 = vld [vmem:[%s6833_s2 + $0xf8] sm:$0xff] }
  0x43   : > { %754 = vmatpush.msrb.mxu0 %v577_v16  ;;  %777 = vmatpush.msrb.mxu1 %v609_v17  ;;  %v583_v54 = vld [vmem:[%s6833_s2 + $0x510] sm:$0xff]  ;;  %v549_v57 = vld [vmem:[%s6833_s2 + $0x400] sm:$0xff] }
  0x44   : > { %800 = vmatpush.msrb.mxu2 %v641_v21  ;;  %v523_v56 = vld [vmem:[%s6833_s2 + $0x330] sm:$0xff]  ;;  %v581_v58 = vld [vmem:[%s6833_s2 + $0x500] sm:$0xff] }
  0x45   : > { %755 = vmatpush.msrb.mxu0 %v575_v19  ;;  %778 = vmatpush.msrb.mxu1 %v607_v20  ;;  %v619_v59 = vld [vmem:[%s6833_s2 + $0x630] sm:$0xff]  ;;  %v521_v60 = vld [vmem:[%s6833_s2 + $0x320] sm:$0xff]  ;;  %v478_v19 = vld [vmem:[%s6833_s2 + $0x1c8] sm:$0xff] }
  0x46   : > { %801 = vmatpush.msrb.mxu2 %v639_v24  ;;  %742 = vmatpush.msra.mxu3 %v523_v56  ;;  %v617_v61 = vld [vmem:[%s6833_s2 + $0x620] sm:$0xff]  ;;  %v519_v62 = vld [vmem:[%s6833_s2 + $0x310] sm:$0xff]  ;;  %v450_v24 = vld [vmem:[%s6833_s2 + $0xe8] sm:$0xff] }
  0x47   : > { %756 = vmatpush.msrb.mxu0 %v573_v22  ;;  %779 = vmatpush.msrb.mxu1 %v605_v23  ;;  %v615_v63 = vld [vmem:[%s6833_s2 + $0x610] sm:$0xff]  ;;  %v517_v0 = vld [vmem:[%s6833_s2 + $0x300] sm:$0xff]  ;;  %v510_v22 = vld [vmem:[%s6833_s2 + $0x2c8] sm:$0xff] }
  0x48   : > { %802 = vmatpush.msrb.mxu2 %v637_v27  ;;  %743 = vmatpush.msra.mxu3 %v521_v60  ;;  %v613_v1 = vld [vmem:[%s6833_s2 + $0x600] sm:$0xff]  ;;  %v548_v23 = vld [vmem:[%s6833_s2 + $0x3f8] sm:$0xff] }
  0x49   : > { %757 = vmatpush.msrb.mxu0 %v571_v25  ;;  %780 = vmatpush.msrb.mxu1 %v603_v26  ;;  %v645_v2 = vld [vmem:[%s6833_s2 + $0x700] sm:$0xf]  ;;  %v476_v26 = vld [vmem:[%s6833_s2 + $0x1b8] sm:$0xff] }
  0x4a   : > { %803 = vmatpush.msrb.mxu2 %v635_v30  ;;  %744 = vmatpush.msra.mxu3 %v519_v62  ;;  %v508_v27 = vld [vmem:[%s6833_s2 + $0x2b8] sm:$0xff]  ;;  %v474_v30 = vld [vmem:[%s6833_s2 + $0x1a8] sm:$0xff] }
  0x4b   : > { %758 = vmatpush.msrb.mxu0 %v569_v28  ;;  %781 = vmatpush.msrb.mxu1 %v601_v29  ;;  %v546_v28 = vld [vmem:[%s6833_s2 + $0x3e8] sm:$0xff]  ;;  %v448_v29 = vld [vmem:[%s6833_s2 + $0xd8] sm:$0xff] }
  0x4c   : > { %804 = vmatpush.msrb.mxu2 %v633_v33  ;;  %745 = vmatpush.msra.mxu3 %v517_v0  ;;  %v464_v60 = vld [vmem:[%s6833_s2 + $0x158] sm:$0xff]  ;;  %v534_v0 = vld [vmem:[%s6833_s2 + $0x388] sm:$0xff] }
  0x4d   : > { %759 = vmatpush.msrb.mxu0 %v567_v31  ;;  %782 = vmatpush.msrb.mxu1 %v599_v32  ;;  %v506_v31 = vld [vmem:[%s6833_s2 + $0x2a8] sm:$0xff]  ;;  %v544_v32 = vld [vmem:[%s6833_s2 + $0x3d8] sm:$0xff] }
  0x4e   : > { %805 = vmatpush.msrb.mxu2 %v631_v36  ;;  %2937 = vmatpush.msk.msrb.mxu3 %vm654_vm2, %v645_v2  ;;  %v472_v36 = vld [vmem:[%s6833_s2 + $0x198] sm:$0xff]  ;;  %v462_v2 = vld [vmem:[%s6833_s2 + $0x148] sm:$0xff] }
  0x4f   : > { %760 = vmatpush.msrb.mxu0 %v565_v34  ;;  %783 = vmatpush.msrb.mxu1 %v597_v35  ;;  %v446_v35 = vld [vmem:[%s6833_s2 + $0xc8] sm:$0xff] }
  0x50   : > { %806 = vmatpush.msrb.mxu2 %v629_v39  ;;  %v504_v39 = vld [vmem:[%s6833_s2 + $0x298] sm:$0xff] }
  0x51   : > { %761 = vmatpush.msrb.mxu0 %v563_v37  ;;  %784 = vmatpush.msrb.mxu1 %v595_v38 }
  0x52   : > { %807 = vmatpush.msrb.mxu2 %v627_v42  ;;  %v444_v42 = vld [vmem:[%s6833_s2 + $0xb8] sm:$0xff] }
  0x53   : > { %762 = vmatpush.msrb.mxu0 %v561_v40  ;;  %785 = vmatpush.msrb.mxu1 %v593_v41  ;;  %v542_v40 = vld [vmem:[%s6833_s2 + $0x3c8] sm:$0xff] }
  0x54   : > { %808 = vmatpush.msrb.mxu2 %v625_v45 }
  0x55   : > { %763 = vmatpush.msrb.mxu0 %v559_v43  ;;  %786 = vmatpush.msrb.mxu1 %v591_v44  ;;  %v470_v43 = vld [vmem:[%s6833_s2 + $0x188] sm:$0xff] }
  0x56   : > { %809 = vmatpush.msrb.mxu2 %v623_v48  ;;  %v442_v48 = vld [vmem:[%s6833_s2 + $0xa8] sm:$0xff] }
  0x57   : > { %764 = vmatpush.msrb.mxu0 %v557_v46  ;;  %787 = vmatpush.msrb.mxu1 %v589_v47  ;;  %v502_v46 = vld [vmem:[%s6833_s2 + $0x288] sm:$0xff]  ;;  %v540_v47 = vld [vmem:[%s6833_s2 + $0x3b8] sm:$0xff] }
  0x58   : > { %810 = vmatpush.msrb.mxu2 %v621_v55 }
  0x59   : > { %765 = vmatpush.msrb.mxu0 %v555_v49  ;;  %788 = vmatpush.msrb.mxu1 %v587_v50  ;;  %v468_v50 = vld [vmem:[%s6833_s2 + $0x178] sm:$0xff] }
  0x5a   : > { %811 = vmatpush.msrb.mxu2 %v619_v59  ;;  %v438_v59 = vld [vmem:[%s6833_s2 + $0x88] sm:$0xff] }
  0x5b   : > { %766 = vmatpush.msrb.mxu0 %v553_v51  ;;  %789 = vmatpush.msrb.mxu1 %v585_v52  ;;  %v500_v51 = vld [vmem:[%s6833_s2 + $0x278] sm:$0xff]  ;;  %v538_v52 = vld [vmem:[%s6833_s2 + $0x3a8] sm:$0xff] }
  0x5c   : > { %812 = vmatpush.msrb.mxu2 %v617_v61 }
  0x5d   : > { %767 = vmatpush.msrb.mxu0 %v551_v53  ;;  %790 = vmatpush.msrb.mxu1 %v583_v54  ;;  %v440_v53 = vld [vmem:[%s6833_s2 + $0x98] sm:$0xff]  ;;  %v466_v54 = vld [vmem:[%s6833_s2 + $0x168] sm:$0xff] }
  0x5e   : > { %813 = vmatpush.msrb.mxu2 %v615_v63  ;;  %v496_v63 = vld [vmem:[%s6833_s2 + $0x258] sm:$0xff] }
  0x5f   : > { %768 = vmatpush.msrb.mxu0 %v549_v57  ;;  %791 = vmatpush.msrb.mxu1 %v581_v58  ;;  %v498_v57 = vld [vmem:[%s6833_s2 + $0x268] sm:$0xff]  ;;  %v536_v58 = vld [vmem:[%s6833_s2 + $0x398] sm:$0xff] }
  0x60   : > { %814 = vmatpush.msrb.mxu2 %v613_v1  ;;  %v436_v1 = vld [vmem:[%s6833_s2 + $0x78] sm:$0xff] }
  0x92   : > { %v238_v3 = vpop.f32.mrf.mxu0  ;;  %v261_v4 = vpop.f32.mrf.mxu1 }
  0x93   : > { %v4091_v5 = vmax.f32 %v238_v3, 0.0  ;;  %v4093_v6 = vmax.f32 %v261_v4, 0.0  ;;  %v494_v4 = vld [vmem:[%s6833_s2 + $0x248] sm:$0xff] }
  0x95   : > { %677 = vmatmul.f32.vlgmr.msra.gmra.mxu0 %v4091_v5  ;;  %700 = vmatmul.f32.vlgmr.msra.gmra.mxu1 %v4093_v6 }
  0x96   : > { %868 = vmatpush.msra.mxu0 %v484_v7  ;;  %891 = vmatpush.msra.mxu1 %v516_v8  ;;  %v532_v7 = vld [vmem:[%s6833_s2 + $0x378] sm:$0xff]  ;;  %v434_v8 = vld [vmem:[%s6833_s2 + $0x68] sm:$0xff] }
  0x98   : > { %869 = vmatpush.msra.mxu0 %v482_v9  ;;  %892 = vmatpush.msra.mxu1 %v514_v10  ;;  %v460_v9 = vld [vmem:[%s6833_s2 + $0x138] sm:$0xff] }
  0x99   : > { %v284_v13 = vpop.f32.mrf.mxu2  ;;  %v307_v14 = vpop.f32.mrf.mxu3 }
  0x9a   : > { %v4115_v15 = vmax.f32 %v284_v13, 0.0  ;;  %v4117_v16 = vmax.f32 %v307_v14, 0.0  ;;  %870 = vmatpush.msra.mxu0 %v480_v11  ;;  %893 = vmatpush.msra.mxu1 %v512_v12  ;;  %v241_v17 = vpop.f32.mrf.mxu0  ;;  %v264_v20 = vpop.f32.mrf.mxu1  ;;  %v492_v11 = vld [vmem:[%s6833_s2 + $0x238] sm:$0xff]  ;;  %v530_v12 = vld [vmem:[%s6833_s2 + $0x368] sm:$0xff] }
  0x9b   : > { %v4125_v21 = vmax.f32 %v241_v17, 0.0  ;;  %v4138_v25 = vmax.f32 %v264_v20, 0.0  ;;  %v432_v13 = vld [vmem:[%s6833_s2 + $0x58] sm:$0xff]  ;;  %v458_v17 = vld [vmem:[%s6833_s2 + $0x128] sm:$0xff] }
  0x9c   : > { %723 = vmatmul.f32.vlgmr.msra.gmra.mxu2 %v4115_v15  ;;  %746 = vmatmul.f32.vlgmr.msra.gmra.mxu3 %v4117_v16 }
  0x9d   : > { %845 = vmatpush.msra.mxu3 %v452_v18  ;;  %871 = vmatpush.msra.mxu0 %v478_v19  ;;  %v490_v18 = vld [vmem:[%s6833_s2 + $0x228] sm:$0xff] }
  0x9e   : > { %894 = vmatpush.msra.mxu1 %v510_v22  ;;  %914 = vmatpush.msra.mxu2 %v548_v23  ;;  %v528_v22 = vld [vmem:[%s6833_s2 + $0x358] sm:$0xff]  ;;  %v430_v23 = vld [vmem:[%s6833_s2 + $0x48] sm:$0xff] }
  0x9f   : > { %680 = vmatmul.f32.gmra.mxu0 %v4125_v21  ;;  %846 = vmatpush.msra.mxu3 %v450_v24 }
  0xa0   : > { %872 = vmatpush.msra.mxu0 %v476_v26  ;;  %895 = vmatpush.msra.mxu1 %v508_v27  ;;  %v456_v26 = vld [vmem:[%s6833_s2 + $0x118] sm:$0xff] }
  0xa1   : > { %915 = vmatpush.msra.mxu2 %v546_v28  ;;  %703 = vmatmul.f32.gmra.mxu1 %v4138_v25  ;;  %v287_v33 = vpop.f32.mrf.mxu2  ;;  %v310_v34 = vpop.f32.mrf.mxu3  ;;  %v488_v27 = vld [vmem:[%s6833_s2 + $0x218] sm:$0xff] }
  0xa2   : > { %847 = vmatpush.msra.mxu3 %v448_v29  ;;  %873 = vmatpush.msra.mxu0 %v474_v30  ;;  %v4169_v37 = vmax.f32 %v287_v33, 0.0  ;;  %v4171_v38 = vmax.f32 %v310_v34, 0.0  ;;  %v330_v41 = vpop.f32.mrf.mxu0  ;;  %v353_v44 = vpop.f32.mrf.mxu1  ;;  %v526_v30 = vld [vmem:[%s6833_s2 + $0x348] sm:$0xff]  ;;  %v524_v34 = vld [vmem:[%s6833_s2 + $0x338] sm:$0xff] }
  0xa3   : > { %896 = vmatpush.msra.mxu1 %v506_v31  ;;  %916 = vmatpush.msra.mxu2 %v544_v32  ;;  %v4185_v45 = vmax.f32 %v330_v41, 0.0  ;;  %v4198_v49 = vmax.f32 %v353_v44, 0.0  ;;  %v428_v31 = vld [vmem:[%s6833_s2 + $0x38] sm:$0xff]  ;;  %v454_v32 = vld [vmem:[%s6833_s2 + $0x108] sm:$0xff] }
  0xa4   : > { %848 = vmatpush.msra.mxu3 %v446_v35  ;;  %874 = vmatpush.msra.mxu0 %v472_v36  ;;  %v486_v33 = vld [vmem:[%s6833_s2 + $0x208] sm:$0xff]  ;;  %v612_v35 = vld [vmem:[%s6833_s2 + $0x5f8] sm:$0xff] }
  0xa5   : > { %897 = vmatpush.msra.mxu1 %v504_v39  ;;  %917 = vmatpush.msra.mxu2 %v542_v40  ;;  %v644_v36 = vld [vmem:[%s6833_s2 + $0x6f8] sm:$0xff]  ;;  %v426_v39 = vld [vmem:[%s6833_s2 + $0x28] sm:$0xff] }
  0xa6   : > { %726 = vmatmul.f32.gmra.mxu2 %v4169_v37  ;;  %749 = vmatmul.f32.gmra.mxu3 %v4171_v38  ;;  %v522_v40 = vld [vmem:[%s6833_s2 + $0x328] sm:$0xff]  ;;  %v520_v44 = vld [vmem:[%s6833_s2 + $0x318] sm:$0xff] }
  0xa7   : > { %849 = vmatpush.msra.mxu3 %v444_v42  ;;  %875 = vmatpush.msra.mxu0 %v470_v43  ;;  %v610_v41 = vld [vmem:[%s6833_s2 + $0x5e8] sm:$0xff]  ;;  %v424_v43 = vld [vmem:[%s6833_s2 + $0x18] sm:$0xff] }
  0xa8   : > { %898 = vmatpush.msra.mxu1 %v502_v46  ;;  %918 = vmatpush.msra.mxu2 %v540_v47  ;;  %v642_v42 = vld [vmem:[%s6833_s2 + $0x6e8] sm:$0xff]  ;;  %v608_v46 = vld [vmem:[%s6833_s2 + $0x5d8] sm:$0xff] }
  0xa9   : > { %769 = vmatmul.f32.vlgmr.msrb.gmra.mxu0 %v4185_v45  ;;  %850 = vmatpush.msra.mxu3 %v442_v48  ;;  %v376_v55 = vpop.f32.mrf.mxu2  ;;  %v399_v56 = vpop.f32.mrf.mxu3  ;;  %v640_v47 = vld [vmem:[%s6833_s2 + $0x6d8] sm:$0xff]  ;;  %v422_v48 = vld [vmem:[%s6833_s2 + $0x8] sm:$0xff] }
  0xaa   : > { %876 = vmatpush.msra.mxu0 %v468_v50  ;;  %899 = vmatpush.msra.mxu1 %v500_v51  ;;  %v4229_v61 = vmax.f32 %v376_v55, 0.0  ;;  %v4231_v62 = vmax.f32 %v399_v56, 0.0  ;;  %v356_v3 = vpop.f32.mrf.mxu1  ;;  %v333_v14 = vpop.f32.mrf.mxu0  ;;  %v518_v50 = vld [vmem:[%s6833_s2 + $0x308] sm:$0xff]  ;;  %v580_v51 = vld [vmem:[%s6833_s2 + $0x4f8] sm:$0xff]  ;;  %v2973_v55 = vld [vmem:[%s6833_s2 + $0x800] sm:$0xff] }
  0xab   : > { %919 = vmatpush.msra.mxu2 %v538_v52  ;;  %792 = vmatmul.f32.vlgmr.msrb.gmra.mxu1 %v4198_v49  ;;  %v4260_v10 = vmax.f32 %v356_v3, 0.0  ;;  %v4284_v24 = vmax.f32 %v333_v14, 0.0  ;;  %v606_v52 = vld [vmem:[%s6833_s2 + $0x5c8] sm:$0xff]  ;;  %v600_v3 = vld [vmem:[%s6833_s2 + $0x598] sm:$0xff] }
  0xac   : > { %851 = vmatpush.msra.mxu3 %v440_v53  ;;  %877 = vmatpush.msra.mxu0 %v466_v54  ;;  %v638_v53 = vld [vmem:[%s6833_s2 + $0x6c8] sm:$0xff]  ;;  %v596_v14 = vld [vmem:[%s6833_s2 + $0x578] sm:$0xff] }
  0xad   : > { %900 = vmatpush.msra.mxu1 %v498_v57  ;;  %920 = vmatpush.msra.mxu2 %v536_v58  ;;  %v646_v54 = vld [vmem:[%s6833_s2 + $0x708] sm:$0xf]  ;;  %v604_v57 = vld [vmem:[%s6833_s2 + $0x5b8] sm:$0xff] }
  0xae   : > { %852 = vmatpush.msra.mxu3 %v438_v59  ;;  %878 = vmatpush.msra.mxu0 %v464_v60  ;;  %v578_v56 = vld [vmem:[%s6833_s2 + $0x4e8] sm:$0xff]  ;;  %v636_v58 = vld [vmem:[%s6833_s2 + $0x6b8] sm:$0xff]  ;;  %v2971_v59 = vld [vmem:[%s6833_s2 + $0x7f0] sm:$0xff] }
  0xaf   : > { %901 = vmatpush.msra.mxu1 %v496_v63  ;;  %921 = vmatpush.msra.mxu2 %v534_v0  ;;  %v576_v60 = vld [vmem:[%s6833_s2 + $0x4d8] sm:$0xff]  ;;  %v602_v63 = vld [vmem:[%s6833_s2 + $0x5a8] sm:$0xff] }
  0xb0   : > { %815 = vmatmul.f32.vlgmr.msrb.gmra.mxu2 %v4229_v61  ;;  %2938 = vmatmul.msk.f32.vlgmr.msrb.gmra.mxu3 %vm647_vm3, %v4231_v62  ;;  %v634_v0 = vld [vmem:[%s6833_s2 + $0x6a8] sm:$0xff] }
  0xb1   : > { %853 = vmatpush.msra.mxu3 %v436_v1  ;;  %879 = vmatpush.msra.mxu0 %v462_v2  ;;  %v379_v19 = vpop.f32.mrf.mxu2  ;;  %v402_v20 = vpop.f32.mrf.mxu3  ;;  %v2969_v1 = vld [vmem:[%s6833_s2 + $0x7e0] sm:$0xff]  ;;  %v574_v2 = vld [vmem:[%s6833_s2 + $0x4c8] sm:$0xff] }
  0xb2   : > { %902 = vmatpush.msra.mxu1 %v494_v4  ;;  %922 = vmatpush.msra.mxu2 %v532_v7  ;;  %v4292_v28 = vmax.f32 %v379_v19, 0.0  ;;  %v4294_v29 = vmax.f32 %v402_v20, 0.0  ;;  %v632_v4 = vld [vmem:[%s6833_s2 + $0x698] sm:$0xff]  ;;  %v2967_v7 = vld [vmem:[%s6833_s2 + $0x7d0] sm:$0xff]  ;;  %v594_v20 = vld [vmem:[%s6833_s2 + $0x568] sm:$0xff] }
  0xb3   : > { %854 = vmatpush.msra.mxu3 %v434_v8  ;;  %880 = vmatpush.msra.mxu0 %v460_v9  ;;  %v572_v8 = vld [vmem:[%s6833_s2 + $0x4b8] sm:$0xff]  ;;  %v598_v9 = vld [vmem:[%s6833_s2 + $0x588] sm:$0xff]  ;;  %v2963_v19 = vld [vmem:[%s6833_s2 + $0x7b0] sm:$0xff] }
  0xb4   : > { %903 = vmatpush.msra.mxu1 %v492_v11  ;;  %923 = vmatpush.msra.mxu2 %v530_v12  ;;  %v630_v11 = vld [vmem:[%s6833_s2 + $0x688] sm:$0xff] }
  0xb5   : > { %795 = vmatmul.f32.gmra.mxu1 %v4260_v10  ;;  %855 = vmatpush.msra.mxu3 %v432_v13  ;;  %v570_v12 = vld [vmem:[%s6833_s2 + $0x4a8] sm:$0xff]  ;;  %v2965_v13 = vld [vmem:[%s6833_s2 + $0x7c0] sm:$0xff] }
  0xb6   : > { %881 = vmatpush.msra.mxu0 %v458_v17  ;;  %904 = vmatpush.msra.mxu1 %v490_v18  ;;  %v628_v17 = vld [vmem:[%s6833_s2 + $0x678] sm:$0xff] }
  0xb7   : > { %924 = vmatpush.msra.mxu2 %v528_v22  ;;  %856 = vmatpush.msra.mxu3 %v430_v23  ;;  %v568_v18 = vld [vmem:[%s6833_s2 + $0x498] sm:$0xff]  ;;  %v626_v22 = vld [vmem:[%s6833_s2 + $0x668] sm:$0xff] }
  0xb8   : > { %882 = vmatpush.msra.mxu0 %v456_v26  ;;  %905 = vmatpush.msra.mxu1 %v488_v27  ;;  %v566_v23 = vld [vmem:[%s6833_s2 + $0x488] sm:$0xff]  ;;  %v2961_v26 = vld [vmem:[%s6833_s2 + $0x7a0] sm:$0xff]  ;;  %v592_v27 = vld [vmem:[%s6833_s2 + $0x558] sm:$0xff] }
  0xb9   : > { %925 = vmatpush.msra.mxu2 %v526_v30  ;;  %772 = vmatmul.f32.gmra.mxu0 %v4284_v24  ;;  %v624_v30 = vld [vmem:[%s6833_s2 + $0x658] sm:$0xff] }
  0xba   : > { %818 = vmatmul.f32.gmra.mxu2 %v4292_v28  ;;  %2939 = vmatmul.msk.f32.gmra.mxu3 %vm647_vm3, %v4294_v29 }
  0xbb   : > { %857 = vmatpush.msra.mxu3 %v428_v31  ;;  %883 = vmatpush.msra.mxu0 %v454_v32  ;;  %v2959_v31 = vld [vmem:[%s6833_s2 + $0x790] sm:$0xff]  ;;  %v564_v32 = vld [vmem:[%s6833_s2 + $0x478] sm:$0xff] }
  0xbc   : > { %906 = vmatpush.msra.mxu1 %v486_v33  ;;  %926 = vmatpush.msra.mxu2 %v524_v34  ;;  %v590_v33 = vld [vmem:[%s6833_s2 + $0x548] sm:$0xff] }
  0xbd   : > { %960 = vmatpush.msrb.mxu0 %v612_v35  ;;  %858 = vmatpush.msra.mxu3 %v426_v39  ;;  %v622_v34 = vld [vmem:[%s6833_s2 + $0x648] sm:$0xff]  ;;  %v588_v39 = vld [vmem:[%s6833_s2 + $0x538] sm:$0xff] }
  0xbe   : > { %983 = vmatpush.msrb.mxu1 %v644_v36  ;;  %927 = vmatpush.msra.mxu2 %v522_v40  ;;  %v562_v35 = vld [vmem:[%s6833_s2 + $0x468] sm:$0xff]  ;;  %v2957_v36 = vld [vmem:[%s6833_s2 + $0x780] sm:$0xff]  ;;  %v620_v40 = vld [vmem:[%s6833_s2 + $0x638] sm:$0xff] }
  0xbf   : > { %961 = vmatpush.msrb.mxu0 %v610_v41  ;;  %859 = vmatpush.msra.mxu3 %v424_v43  ;;  %v560_v41 = vld [vmem:[%s6833_s2 + $0x458] sm:$0xff]  ;;  %v586_v43 = vld [vmem:[%s6833_s2 + $0x528] sm:$0xff] }
  0xc0   : > { %984 = vmatpush.msrb.mxu1 %v642_v42  ;;  %928 = vmatpush.msra.mxu2 %v520_v44  ;;  %v2955_v42 = vld [vmem:[%s6833_s2 + $0x770] sm:$0xff]  ;;  %v618_v44 = vld [vmem:[%s6833_s2 + $0x628] sm:$0xff] }
  0xc1   : > { %907 = vmatmul.f32.vlgmr.msra.gmra.mxu1 %v4115_v15  ;;  %962 = vmatpush.msrb.mxu0 %v608_v46  ;;  %v558_v46 = vld [vmem:[%s6833_s2 + $0x448] sm:$0xff] }
  0xc2   : > { %985 = vmatpush.msrb.mxu1 %v640_v47  ;;  %860 = vmatpush.msra.mxu3 %v422_v48  ;;  %v2953_v47 = vld [vmem:[%s6833_s2 + $0x760] sm:$0xff]  ;;  %v584_v48 = vld [vmem:[%s6833_s2 + $0x518] sm:$0xff] }
  0xc3   : > { %929 = vmatpush.msra.mxu2 %v518_v50  ;;  %963 = vmatpush.msrb.mxu0 %v606_v52  ;;  %v616_v50 = vld [vmem:[%s6833_s2 + $0x618] sm:$0xff]  ;;  %v2951_v52 = vld [vmem:[%s6833_s2 + $0x750] sm:$0xff] }
  0xc4   : > { %937 = vmatpush.msrb.mxu3 %v580_v51  ;;  %986 = vmatpush.msrb.mxu1 %v638_v53  ;;  %v556_v51 = vld [vmem:[%s6833_s2 + $0x438] sm:$0xff]  ;;  %v582_v53 = vld [vmem:[%s6833_s2 + $0x508] sm:$0xff] }
  0xc5   : > { %2940 = vmatpush.msk.msrb.mxu2 %vm654_vm2, %v646_v54  ;;  %861 = vmatmul.f32.vlgmr.msra.gmra.mxu3 %v4091_v5  ;;  %v614_v54 = vld [vmem:[%s6833_s2 + $0x608] sm:$0xff] }
  0xc6   : > { %884 = vmatmul.f32.vlgmr.msra.gmra.mxu0 %v4093_v6  ;;  %930 = vmatmul.f32.vlgmr.msra.gmra.mxu2 %v4117_v16 }
  0xc7   : > { %1262 = vmatpush.msra.mxu2 %v2973_v55  ;;  %938 = vmatpush.msrb.mxu3 %v578_v56  ;;  %v2949_v55 = vld [vmem:[%s6833_s2 + $0x740] sm:$0xff] }
  0xc8   : > { %964 = vmatpush.msrb.mxu0 %v604_v57  ;;  %987 = vmatpush.msrb.mxu1 %v636_v58  ;;  %v3037_v56 = vld [vmem:[%s6833_s2 + $0xa00] sm:$0xff]  ;;  %v554_v58 = vld [vmem:[%s6833_s2 + $0x428] sm:$0xff] }
  0xc9   : > { %1263 = vmatpush.msra.mxu2 %v2971_v59  ;;  %939 = vmatpush.msrb.mxu3 %v576_v60  ;;  %v3069_v57 = vld [vmem:[%s6833_s2 + $0xb00] sm:$0xff]  ;;  %v2947_v59 = vld [vmem:[%s6833_s2 + $0x730] sm:$0xff] }
  0xca   : > { %965 = vmatpush.msrb.mxu0 %v602_v63  ;;  %988 = vmatpush.msrb.mxu1 %v634_v0  ;;  %v3035_v60 = vld [vmem:[%s6833_s2 + $0x9f0] sm:$0xff]  ;;  %v552_v0 = vld [vmem:[%s6833_s2 + $0x418] sm:$0xff] }
  0xcb   : > { %910 = vmatmul.f32.gmra.mxu1 %v4169_v37  ;;  %1264 = vmatpush.msra.mxu2 %v2969_v1  ;;  %v3067_v63 = vld [vmem:[%s6833_s2 + $0xaf0] sm:$0xff]  ;;  %v2945_v1 = vld [vmem:[%s6833_s2 + $0x720] sm:$0xff] }
  0xcc   : > { %940 = vmatpush.msrb.mxu3 %v574_v2  ;;  %966 = vmatpush.msrb.mxu0 %v600_v3  ;;  %v3033_v2 = vld [vmem:[%s6833_s2 + $0x9e0] sm:$0xff] }
  0xcd   : > { %989 = vmatpush.msrb.mxu1 %v632_v4  ;;  %1265 = vmatpush.msra.mxu2 %v2967_v7  ;;  %v3065_v3 = vld [vmem:[%s6833_s2 + $0xae0] sm:$0xff]  ;;  %v550_v4 = vld [vmem:[%s6833_s2 + $0x408] sm:$0xff]  ;;  %v2943_v7 = vld [vmem:[%s6833_s2 + $0x710] sm:$0xff] }
  0xce   : > { %941 = vmatpush.msrb.mxu3 %v572_v8  ;;  %967 = vmatpush.msrb.mxu0 %v598_v9  ;;  %v3031_v8 = vld [vmem:[%s6833_s2 + $0x9d0] sm:$0xff]  ;;  %v3005_v9 = vld [vmem:[%s6833_s2 + $0x900] sm:$0xff] }
  0xcf   : > { %990 = vmatpush.msrb.mxu1 %v630_v11  ;;  %864 = vmatmul.f32.gmra.mxu3 %v4125_v21  ;;  %v3063_v11 = vld [vmem:[%s6833_s2 + $0xad0] sm:$0xff] }
  0xd0   : > { %933 = vmatmul.f32.gmra.mxu2 %v4171_v38  ;;  %942 = vmatpush.msrb.mxu3 %v570_v12  ;;  %v3101_v12 = vld [vmem:[%s6833_s2 + $0xc00] sm:$0xff] }
  0xd1   : > { %1266 = vmatpush.msra.mxu2 %v2965_v13  ;;  %968 = vmatpush.msrb.mxu0 %v596_v14  ;;  %v3003_v13 = vld [vmem:[%s6833_s2 + $0x8f0] sm:$0xff]  ;;  %v3029_v14 = vld [vmem:[%s6833_s2 + $0x9c0] sm:$0xff] }
  0xd2   : > { %991 = vmatpush.msrb.mxu1 %v628_v17  ;;  %943 = vmatpush.msrb.mxu3 %v568_v18  ;;  %v3061_v17 = vld [vmem:[%s6833_s2 + $0xac0] sm:$0xff]  ;;  %v3099_v18 = vld [vmem:[%s6833_s2 + $0xbf0] sm:$0xff] }
  0xd3   : > { %1267 = vmatpush.msra.mxu2 %v2963_v19  ;;  %969 = vmatpush.msrb.mxu0 %v594_v20  ;;  %v3001_v19 = vld [vmem:[%s6833_s2 + $0x8e0] sm:$0xff]  ;;  %v3027_v20 = vld [vmem:[%s6833_s2 + $0x9b0] sm:$0xff] }
  0xd4   : > { %992 = vmatpush.msrb.mxu1 %v626_v22  ;;  %944 = vmatpush.msrb.mxu3 %v566_v23  ;;  %v3059_v22 = vld [vmem:[%s6833_s2 + $0xab0] sm:$0xff]  ;;  %v3097_v23 = vld [vmem:[%s6833_s2 + $0xbe0] sm:$0xff] }
  0xd5   : > { %1268 = vmatpush.msra.mxu2 %v2961_v26  ;;  %970 = vmatpush.msrb.mxu0 %v592_v27  ;;  %v2999_v26 = vld [vmem:[%s6833_s2 + $0x8d0] sm:$0xff]  ;;  %v3025_v27 = vld [vmem:[%s6833_s2 + $0x9a0] sm:$0xff] }
  0xd6   : > { %993 = vmatpush.msrb.mxu1 %v624_v30  ;;  %887 = vmatmul.f32.gmra.mxu0 %v4138_v25  ;;  %v3057_v30 = vld [vmem:[%s6833_s2 + $0xaa0] sm:$0xff] }
  0xd7   : > { %1269 = vmatpush.msra.mxu2 %v2959_v31  ;;  %945 = vmatpush.msrb.mxu3 %v564_v32  ;;  %v3095_v31 = vld [vmem:[%s6833_s2 + $0xbd0] sm:$0xff] }
  0xd8   : > { %971 = vmatpush.msrb.mxu0 %v590_v33  ;;  %994 = vmatpush.msrb.mxu1 %v622_v34  ;;  %v3023_v32 = vld [vmem:[%s6833_s2 + $0x990] sm:$0xff]  ;;  %v2997_v33 = vld [vmem:[%s6833_s2 + $0x8c0] sm:$0xff] }
  0xd9   : > { %2941 = vmatmul.msk.f32.vlgmr.msrb.gmra.mxu2 %vm647_vm3, %v4231_v62  ;;  %946 = vmatpush.msrb.mxu3 %v562_v35  ;;  %v3055_v34 = vld [vmem:[%s6833_s2 + $0xa90] sm:$0xff]  ;;  %v3093_v35 = vld [vmem:[%s6833_s2 + $0xbc0] sm:$0xff] }
  0xda   : > { %1270 = vmatpush.msra.mxu2 %v2957_v36  ;;  %972 = vmatpush.msrb.mxu0 %v588_v39  ;;  %v3021_v36 = vld [vmem:[%s6833_s2 + $0x980] sm:$0xff]  ;;  %v2995_v39 = vld [vmem:[%s6833_s2 + $0x8b0] sm:$0xff] }
  0xdb   : > { %995 = vmatpush.msrb.mxu1 %v620_v40  ;;  %947 = vmatpush.msrb.mxu3 %v560_v41  ;;  %v3053_v40 = vld [vmem:[%s6833_s2 + $0xa80] sm:$0xff]  ;;  %v3091_v41 = vld [vmem:[%s6833_s2 + $0xbb0] sm:$0xff] }
  0xdc   : > { %1271 = vmatpush.msra.mxu2 %v2955_v42  ;;  %973 = vmatpush.msrb.mxu0 %v586_v43  ;;  %v2993_v42 = vld [vmem:[%s6833_s2 + $0x8a0] sm:$0xff]  ;;  %v3019_v43 = vld [vmem:[%s6833_s2 + $0x970] sm:$0xff] }
  0xdd   : > { %996 = vmatpush.msrb.mxu1 %v618_v44  ;;  %948 = vmatpush.msrb.mxu3 %v558_v46  ;;  %v3051_v44 = vld [vmem:[%s6833_s2 + $0xa70] sm:$0xff]  ;;  %v3089_v46 = vld [vmem:[%s6833_s2 + $0xba0] sm:$0xff] }
  0xde   : > { %1272 = vmatpush.msra.mxu2 %v2953_v47  ;;  %974 = vmatpush.msrb.mxu0 %v584_v48  ;;  %v2991_v47 = vld [vmem:[%s6833_s2 + $0x890] sm:$0xff]  ;;  %v3017_v48 = vld [vmem:[%s6833_s2 + $0x960] sm:$0xff] }
  0xdf   : > { %997 = vmatpush.msrb.mxu1 %v616_v50  ;;  %949 = vmatpush.msrb.mxu3 %v556_v51  ;;  %v3049_v50 = vld [vmem:[%s6833_s2 + $0xa60] sm:$0xff]  ;;  %v3087_v51 = vld [vmem:[%s6833_s2 + $0xb90] sm:$0xff] }
  0xe0   : > { %1273 = vmatpush.msra.mxu2 %v2951_v52  ;;  %975 = vmatpush.msrb.mxu0 %v582_v53  ;;  %v2989_v52 = vld [vmem:[%s6833_s2 + $0x880] sm:$0xff]  ;;  %v3015_v53 = vld [vmem:[%s6833_s2 + $0x950] sm:$0xff] }
  0xe1   : > { %998 = vmatpush.msrb.mxu1 %v614_v54  ;;  %2942 = vmatmul.msk.f32.gmra.mxu2 %vm647_vm3, %v4294_v29  ;;  %v3047_v54 = vld [vmem:[%s6833_s2 + $0xa50] sm:$0xff] }
  0xe2   : > { %999 = vmatmul.f32.vlgmr.msrb.gmra.mxu1 %v4229_v61  ;;  %1274 = vmatpush.msra.mxu2 %v2949_v55  ;;  %v3085_v55 = vld [vmem:[%s6833_s2 + $0xb80] sm:$0xff] }
  0xe3   : > { %1308 = vmatpush.msra.mxu0 %v3037_v56  ;;  %1331 = vmatpush.msra.mxu1 %v3069_v57  ;;  %v2987_v56 = vld [vmem:[%s6833_s2 + $0x870] sm:$0xff]  ;;  %v3013_v57 = vld [vmem:[%s6833_s2 + $0x940] sm:$0xff] }
  0xe4   : > { %950 = vmatpush.msrb.mxu3 %v554_v58  ;;  %1275 = vmatpush.msra.mxu2 %v2947_v59  ;;  %v3045_v58 = vld [vmem:[%s6833_s2 + $0xa40] sm:$0xff]  ;;  %v3083_v59 = vld [vmem:[%s6833_s2 + $0xb70] sm:$0xff] }
  0xe5   : > { %1309 = vmatpush.msra.mxu0 %v3035_v60  ;;  %1332 = vmatpush.msra.mxu1 %v3067_v63  ;;  %v2985_v60 = vld [vmem:[%s6833_s2 + $0x860] sm:$0xff]  ;;  %v3011_v63 = vld [vmem:[%s6833_s2 + $0x930] sm:$0xff] }
  0xe6   : > { %951 = vmatpush.msrb.mxu3 %v552_v0  ;;  %1276 = vmatpush.msra.mxu2 %v2945_v1  ;;  %v3043_v0 = vld [vmem:[%s6833_s2 + $0xa30] sm:$0xff]  ;;  %v3081_v1 = vld [vmem:[%s6833_s2 + $0xb60] sm:$0xff] }
  0xe7   : > { %1310 = vmatpush.msra.mxu0 %v3033_v2  ;;  %1333 = vmatpush.msra.mxu1 %v3065_v3  ;;  %v2983_v2 = vld [vmem:[%s6833_s2 + $0x850] sm:$0xff]  ;;  %v3009_v3 = vld [vmem:[%s6833_s2 + $0x920] sm:$0xff] }
  0xe8   : > { %952 = vmatpush.msrb.mxu3 %v550_v4  ;;  %1277 = vmatpush.msra.mxu2 %v2943_v7  ;;  %v3041_v4 = vld [vmem:[%s6833_s2 + $0xa20] sm:$0xff]  ;;  %v3079_v7 = vld [vmem:[%s6833_s2 + $0xb50] sm:$0xff] }
  0xe9   : > { %953 = vmatmul.f32.vlgmr.msrb.gmra.mxu3 %v4185_v45  ;;  %1311 = vmatpush.msra.mxu0 %v3031_v8  ;;  %v2981_v8 = vld [vmem:[%s6833_s2 + $0x840] sm:$0xff] }
  0xea   : > { %1285 = vmatpush.msra.mxu3 %v3005_v9  ;;  %1334 = vmatpush.msra.mxu1 %v3063_v11  ;;  %v3007_v9 = vld [vmem:[%s6833_s2 + $0x910] sm:$0xff] }
  0xeb   : > { %976 = vmatmul.f32.vlgmr.msrb.gmra.mxu0 %v4198_v49  ;;  %1354 = vmatpush.msrb.mxu2 %v3101_v12  ;;  %v3039_v11 = vld [vmem:[%s6833_s2 + $0xa10] sm:$0xff]  ;;  %v3077_v12 = vld [vmem:[%s6833_s2 + $0xb40] sm:$0xff] }
  0xec   : > { %1002 = vmatmul.f32.gmra.mxu1 %v4292_v28  ;;  %1278 = vmatmul.f32.vlgmr.msra.gmra.mxu2 %v4091_v5 }
  0xed   : > { %1286 = vmatpush.msra.mxu3 %v3003_v13  ;;  %1312 = vmatpush.msra.mxu0 %v3029_v14  ;;  %v3165_v13 = vld [vmem:[%s6833_s2 + $0xe00] sm:$0xff]  ;;  %v3167_v14 = vld [vmem:[%s6833_s2 + $0xe10] sm:$0xf] }
  0xee   : > { %1335 = vmatpush.msra.mxu1 %v3061_v17  ;;  %1355 = vmatpush.msrb.mxu2 %v3099_v18  ;;  %v2979_v17 = vld [vmem:[%s6833_s2 + $0x830] sm:$0xff]  ;;  %v2974_v18 = vld [vmem:[%s6833_s2 + $0x808] sm:$0xff] }
  0xef   : > { %1287 = vmatpush.msra.mxu3 %v3001_v19  ;;  %1313 = vmatpush.msra.mxu0 %v3027_v20  ;;  %v3075_v19 = vld [vmem:[%s6833_s2 + $0xb30] sm:$0xff] }
  0xf0   : > { %1336 = vmatpush.msra.mxu1 %v3059_v22  ;;  %1356 = vmatpush.msrb.mxu2 %v3097_v23  ;;  %v3163_v20 = vld [vmem:[%s6833_s2 + $0xdf0] sm:$0xff]  ;;  %v2977_v22 = vld [vmem:[%s6833_s2 + $0x820] sm:$0xff]  ;;  %v2972_v23 = vld [vmem:[%s6833_s2 + $0x7f8] sm:$0xff] }
  0xf1   : > { %1288 = vmatpush.msra.mxu3 %v2999_v26  ;;  %1314 = vmatpush.msra.mxu0 %v3025_v27  ;;  %v3073_v26 = vld [vmem:[%s6833_s2 + $0xb20] sm:$0xff] }
  0xf2   : > { %1337 = vmatpush.msra.mxu1 %v3057_v30  ;;  %1357 = vmatpush.msrb.mxu2 %v3095_v31  ;;  %v3161_v27 = vld [vmem:[%s6833_s2 + $0xde0] sm:$0xff]  ;;  %v2975_v30 = vld [vmem:[%s6833_s2 + $0x810] sm:$0xff]  ;;  %v2970_v31 = vld [vmem:[%s6833_s2 + $0x7e8] sm:$0xff] }
  0xf3   : > { %956 = vmatmul.f32.gmra.mxu3 %v4284_v24  ;;  %1315 = vmatpush.msra.mxu0 %v3023_v32  ;;  %v3071_v32 = vld [vmem:[%s6833_s2 + $0xb10] sm:$0xff] }
  0xf4   : > { %1289 = vmatpush.msra.mxu3 %v2997_v33  ;;  %1338 = vmatpush.msra.mxu1 %v3055_v34  ;;  %v3133_v33 = vld [vmem:[%s6833_s2 + $0xd00] sm:$0xff]  ;;  %v3159_v34 = vld [vmem:[%s6833_s2 + $0xdd0] sm:$0xff] }
  0xf5   : > { %1358 = vmatpush.msrb.mxu2 %v3093_v35  ;;  %1316 = vmatpush.msra.mxu0 %v3021_v36  ;;  %v2968_v35 = vld [vmem:[%s6833_s2 + $0x7d8] sm:$0xff]  ;;  %v3006_v36 = vld [vmem:[%s6833_s2 + $0x908] sm:$0xff] }
  0xf6   : > { %1281 = vmatmul.f32.gmra.mxu2 %v4125_v21  ;;  %1290 = vmatpush.msra.mxu3 %v2995_v39  ;;  %v3131_v39 = vld [vmem:[%s6833_s2 + $0xcf0] sm:$0xff] }
  0xf7   : > { %1339 = vmatpush.msra.mxu1 %v3053_v40  ;;  %1359 = vmatpush.msrb.mxu2 %v3091_v41  ;;  %v3157_v40 = vld [vmem:[%s6833_s2 + $0xdc0] sm:$0xff]  ;;  %v2966_v41 = vld [vmem:[%s6833_s2 + $0x7c8] sm:$0xff] }
  0xf8   : > { %1291 = vmatpush.msra.mxu3 %v2993_v42  ;;  %1317 = vmatpush.msra.mxu0 %v3019_v43  ;;  %v3004_v42 = vld [vmem:[%s6833_s2 + $0x8f8] sm:$0xff]  ;;  %v3129_v43 = vld [vmem:[%s6833_s2 + $0xce0] sm:$0xff] }
  0xf9   : > { %1340 = vmatpush.msra.mxu1 %v3051_v44  ;;  %1360 = vmatpush.msrb.mxu2 %v3089_v46  ;;  %v3155_v44 = vld [vmem:[%s6833_s2 + $0xdb0] sm:$0xff]  ;;  %v2964_v46 = vld [vmem:[%s6833_s2 + $0x7b8] sm:$0xff] }
  0xfa   : > { %1292 = vmatpush.msra.mxu3 %v2991_v47  ;;  %1318 = vmatpush.msra.mxu0 %v3017_v48  ;;  %v3002_v47 = vld [vmem:[%s6833_s2 + $0x8e8] sm:$0xff]  ;;  %v3127_v48 = vld [vmem:[%s6833_s2 + $0xcd0] sm:$0xff] }
  0xfb   : > { %1341 = vmatpush.msra.mxu1 %v3049_v50  ;;  %1361 = vmatpush.msrb.mxu2 %v3087_v51  ;;  %v3153_v50 = vld [vmem:[%s6833_s2 + $0xda0] sm:$0xff]  ;;  %v2962_v51 = vld [vmem:[%s6833_s2 + $0x7a8] sm:$0xff] }
  0xfc   : > { %979 = vmatmul.f32.gmra.mxu0 %v4260_v10  ;;  %1293 = vmatpush.msra.mxu3 %v2989_v52  ;;  %v3000_v52 = vld [vmem:[%s6833_s2 + $0x8d8] sm:$0xff] }
  0xfd   : > { %1319 = vmatpush.msra.mxu0 %v3015_v53  ;;  %1342 = vmatpush.msra.mxu1 %v3047_v54  ;;  %v3151_v53 = vld [vmem:[%s6833_s2 + $0xd90] sm:$0xff]  ;;  %v3125_v54 = vld [vmem:[%s6833_s2 + $0xcc0] sm:$0xff] }
  0xfe   : > { %1362 = vmatpush.msrb.mxu2 %v3085_v55  ;;  %1294 = vmatpush.msra.mxu3 %v2987_v56  ;;  %v2960_v55 = vld [vmem:[%s6833_s2 + $0x798] sm:$0xff]  ;;  %v2998_v56 = vld [vmem:[%s6833_s2 + $0x8c8] sm:$0xff] }
  0xff   : > { %1320 = vmatpush.msra.mxu0 %v3013_v57  ;;  %1343 = vmatpush.msra.mxu1 %v3045_v58  ;;  %v3123_v57 = vld [vmem:[%s6833_s2 + $0xcb0] sm:$0xff]  ;;  %v3149_v58 = vld [vmem:[%s6833_s2 + $0xd80] sm:$0xff] }
 0x100   : > { %1363 = vmatpush.msrb.mxu2 %v3083_v59  ;;  %1295 = vmatpush.msra.mxu3 %v2985_v60  ;;  %v2996_v59 = vld [vmem:[%s6833_s2 + $0x8b8] sm:$0xff]  ;;  %v2958_v60 = vld [vmem:[%s6833_s2 + $0x788] sm:$0xff] }
 0x101   : > { %1321 = vmatpush.msra.mxu0 %v3011_v63  ;;  %1344 = vmatpush.msra.mxu1 %v3043_v0  ;;  %v3121_v63 = vld [vmem:[%s6833_s2 + $0xca0] sm:$0xff]  ;;  %v3147_v0 = vld [vmem:[%s6833_s2 + $0xd70] sm:$0xff] }
 0x102   : > { %1364 = vmatpush.msrb.mxu2 %v3081_v1  ;;  %1296 = vmatpush.msra.mxu3 %v2983_v2  ;;  %v2994_v1 = vld [vmem:[%s6833_s2 + $0x8a8] sm:$0xff]  ;;  %v2956_v2 = vld [vmem:[%s6833_s2 + $0x778] sm:$0xff] }
 0x103   : > { %1322 = vmatpush.msra.mxu0 %v3009_v3  ;;  %1345 = vmatpush.msra.mxu1 %v3041_v4  ;;  %v3119_v3 = vld [vmem:[%s6833_s2 + $0xc90] sm:$0xff]  ;;  %v3145_v4 = vld [vmem:[%s6833_s2 + $0xd60] sm:$0xff] }
 0x104   : > { %1365 = vmatpush.msrb.mxu2 %v3079_v7  ;;  %1297 = vmatpush.msra.mxu3 %v2981_v8  ;;  %v2992_v7 = vld [vmem:[%s6833_s2 + $0x898] sm:$0xff]  ;;  %v2954_v8 = vld [vmem:[%s6833_s2 + $0x768] sm:$0xff] }
 0x105   : > { %1323 = vmatpush.msra.mxu0 %v3007_v9  ;;  %1346 = vmatpush.msra.mxu1 %v3039_v11  ;;  %v3117_v9 = vld [vmem:[%s6833_s2 + $0xc80] sm:$0xff]  ;;  %v3143_v11 = vld [vmem:[%s6833_s2 + $0xd50] sm:$0xff] }
 0x106   : > { %1324 = vmatmul.f32.vlgmr.msra.gmra.mxu0 %v4115_v15  ;;  %1347 = vmatmul.f32.vlgmr.msra.gmra.mxu1 %v4117_v16 }
 0x107   : > { %1366 = vmatpush.msrb.mxu2 %v3077_v12  ;;  %1400 = vmatpush.msrb.mxu0 %v3165_v13  ;;  %v2990_v12 = vld [vmem:[%s6833_s2 + $0x888] sm:$0xff]  ;;  %v2952_v13 = vld [vmem:[%s6833_s2 + $0x758] sm:$0xff] }
 0x108   : > { %3169 = vmatpush.msk.msrb.mxu1 %vm654_vm2, %v3167_v14  ;;  %1298 = vmatpush.msra.mxu3 %v2979_v17  ;;  %v3115_v14 = vld [vmem:[%s6833_s2 + $0xc70] sm:$0xff]  ;;  %v3141_v17 = vld [vmem:[%s6833_s2 + $0xd40] sm:$0xff] }
 0x109   : > { %1367 = vmatpush.msrb.mxu2 %v3075_v19  ;;  %1401 = vmatpush.msrb.mxu0 %v3163_v20  ;;  %v2988_v19 = vld [vmem:[%s6833_s2 + $0x878] sm:$0xff]  ;;  %v3113_v20 = vld [vmem:[%s6833_s2 + $0xc60] sm:$0xff] }
 0x10a   : > { %1446 = vmatpush.msra.mxu1 %v2974_v18  ;;  %1299 = vmatpush.msra.mxu3 %v2977_v22  ;;  %v2950_v18 = vld [vmem:[%s6833_s2 + $0x748] sm:$0xff]  ;;  %v3139_v22 = vld [vmem:[%s6833_s2 + $0xd30] sm:$0xff] }
 0x10b   : > { %1368 = vmatpush.msrb.mxu2 %v3073_v26  ;;  %1402 = vmatpush.msrb.mxu0 %v3161_v27  ;;  %v2986_v26 = vld [vmem:[%s6833_s2 + $0x868] sm:$0xff]  ;;  %v3111_v27 = vld [vmem:[%s6833_s2 + $0xc50] sm:$0xff] }
 0x10c   : > { %1447 = vmatpush.msra.mxu1 %v2972_v23  ;;  %1300 = vmatpush.msra.mxu3 %v2975_v30  ;;  %v2948_v23 = vld [vmem:[%s6833_s2 + $0x738] sm:$0xff]  ;;  %v3137_v30 = vld [vmem:[%s6833_s2 + $0xd20] sm:$0xff] }
 0x10d   : > { %1301 = vmatmul.f32.vlgmr.msra.gmra.mxu3 %v4093_v6  ;;  %1369 = vmatpush.msrb.mxu2 %v3071_v32  ;;  %v2984_v32 = vld [vmem:[%s6833_s2 + $0x858] sm:$0xff] }
 0x10e   : > { %1448 = vmatpush.msra.mxu1 %v2970_v31  ;;  %1377 = vmatpush.msrb.mxu3 %v3133_v33  ;;  %v2946_v31 = vld [vmem:[%s6833_s2 + $0x728] sm:$0xff]  ;;  %v3109_v33 = vld [vmem:[%s6833_s2 + $0xc40] sm:$0xff] }
 0x10f   : > { %1403 = vmatpush.msrb.mxu0 %v3159_v34  ;;  %1370 = vmatmul.f32.vlgmr.msrb.gmra.mxu2 %v4185_v45  ;;  %v3135_v34 = vld [vmem:[%s6833_s2 + $0xd10] sm:$0xff] }
 0x110   : > { %1449 = vmatpush.msra.mxu1 %v2968_v35  ;;  %1469 = vmatpush.msra.mxu2 %v3006_v36  ;;  %v2944_v35 = vld [vmem:[%s6833_s2 + $0x718] sm:$0xff]  ;;  %v2982_v36 = vld [vmem:[%s6833_s2 + $0x848] sm:$0xff] }
 0x111   : > { %1327 = vmatmul.f32.gmra.mxu0 %v4169_v37  ;;  %1350 = vmatmul.f32.gmra.mxu1 %v4171_v38 }
 0x112   : > { %1378 = vmatpush.msrb.mxu3 %v3131_v39  ;;  %1404 = vmatpush.msrb.mxu0 %v3157_v40  ;;  %v3070_v39 = vld [vmem:[%s6833_s2 + $0xb08] sm:$0xff]  ;;  %v3107_v40 = vld [vmem:[%s6833_s2 + $0xc30] sm:$0xff] }
 0x113   : > { %1450 = vmatpush.msra.mxu1 %v2966_v41  ;;  %1470 = vmatpush.msra.mxu2 %v3004_v42  ;;  %v3102_v41 = vld [vmem:[%s6833_s2 + $0xc08] sm:$0xff]  ;;  %v2980_v42 = vld [vmem:[%s6833_s2 + $0x838] sm:$0xff] }
 0x114   : > { %1379 = vmatpush.msrb.mxu3 %v3129_v43  ;;  %1405 = vmatpush.msrb.mxu0 %v3155_v44  ;;  %v3068_v43 = vld [vmem:[%s6833_s2 + $0xaf8] sm:$0xff]  ;;  %v3105_v44 = vld [vmem:[%s6833_s2 + $0xc20] sm:$0xff] }
 0x115   : > { %1451 = vmatpush.msra.mxu1 %v2964_v46  ;;  %1471 = vmatpush.msra.mxu2 %v3002_v47  ;;  %v3100_v46 = vld [vmem:[%s6833_s2 + $0xbf8] sm:$0xff]  ;;  %v2978_v47 = vld [vmem:[%s6833_s2 + $0x828] sm:$0xff] }
 0x116   : > { %1380 = vmatpush.msrb.mxu3 %v3127_v48  ;;  %1406 = vmatpush.msrb.mxu0 %v3153_v50  ;;  %v3066_v48 = vld [vmem:[%s6833_s2 + $0xae8] sm:$0xff]  ;;  %v3103_v50 = vld [vmem:[%s6833_s2 + $0xc10] sm:$0xff] }
 0x117   : > { %1452 = vmatpush.msra.mxu1 %v2962_v51  ;;  %1472 = vmatpush.msra.mxu2 %v3000_v52  ;;  %v3098_v51 = vld [vmem:[%s6833_s2 + $0xbe8] sm:$0xff]  ;;  %v2976_v52 = vld [vmem:[%s6833_s2 + $0x818] sm:$0xff] }
 0x118   : > { %1304 = vmatmul.f32.gmra.mxu3 %v4138_v25  ;;  %1407 = vmatpush.msrb.mxu0 %v3151_v53  ;;  %v3038_v53 = vld [vmem:[%s6833_s2 + $0xa08] sm:$0xff] }
 0x119   : > { %1381 = vmatpush.msrb.mxu3 %v3125_v54  ;;  %1373 = vmatmul.f32.gmra.mxu2 %v4284_v24  ;;  %v3064_v54 = vld [vmem:[%s6833_s2 + $0xad8] sm:$0xff] }
 0x11a   : > { %1453 = vmatpush.msra.mxu1 %v2960_v55  ;;  %1473 = vmatpush.msra.mxu2 %v2998_v56  ;;  %v3096_v55 = vld [vmem:[%s6833_s2 + $0xbd8] sm:$0xff]  ;;  %v3134_v56 = vld [vmem:[%s6833_s2 + $0xd08] sm:$0xff] }
 0x11b   : > { %1382 = vmatpush.msrb.mxu3 %v3123_v57  ;;  %1408 = vmatpush.msrb.mxu0 %v3149_v58  ;;  %v3036_v57 = vld [vmem:[%s6833_s2 + $0x9f8] sm:$0xff]  ;;  %v3062_v58 = vld [vmem:[%s6833_s2 + $0xac8] sm:$0xff] }
 0x11c   : > { %3170 = vmatmul.msk.f32.vlgmr.msrb.gmra.mxu1 %vm647_vm3, %v4231_v62  ;;  %1474 = vmatpush.msra.mxu2 %v2996_v59 }
 0x11d   : > { %1454 = vmatpush.msra.mxu1 %v2958_v60  ;;  %1383 = vmatpush.msrb.mxu3 %v3121_v63  ;;  %v3094_v60 = vld [vmem:[%s6833_s2 + $0xbc8] sm:$0xff]  ;;  %v3132_v63 = vld [vmem:[%s6833_s2 + $0xcf8] sm:$0xff] }
 0x11e   : > { %1409 = vmatpush.msrb.mxu0 %v3147_v0  ;;  %1475 = vmatpush.msra.mxu2 %v2994_v1  ;;  %v3034_v0 = vld [vmem:[%s6833_s2 + $0x9e8] sm:$0xff]  ;;  %v3060_v1 = vld [vmem:[%s6833_s2 + $0xab8] sm:$0xff] }
 0x11f   : > { %1455 = vmatpush.msra.mxu1 %v2956_v2  ;;  %1384 = vmatpush.msrb.mxu3 %v3119_v3  ;;  %v4989_v59 = vpop.f32.mrf.mxu2  ;;  %v3092_v2 = vld [vmem:[%s6833_s2 + $0xbb8] sm:$0xff]  ;;  %v3130_v3 = vld [vmem:[%s6833_s2 + $0xce8] sm:$0xff] }
 0x120   : > { %1410 = vmatpush.msrb.mxu0 %v3145_v4  ;;  %1476 = vmatpush.msra.mxu2 %v2992_v7  ;;  %v3032_v4 = vld [vmem:[%s6833_s2 + $0x9d8] sm:$0xff]  ;;  %v3058_v7 = vld [vmem:[%s6833_s2 + $0xaa8] sm:$0xff] }
 0x121   : > { %1456 = vmatpush.msra.mxu1 %v2954_v8  ;;  %1385 = vmatpush.msrb.mxu3 %v3117_v9  ;;  %v3090_v8 = vld [vmem:[%s6833_s2 + $0xba8] sm:$0xff]  ;;  %v3128_v9 = vld [vmem:[%s6833_s2 + $0xcd8] sm:$0xff] }
 0x122   : > { %1411 = vmatpush.msrb.mxu0 %v3143_v11  ;;  %1477 = vmatpush.msra.mxu2 %v2990_v12  ;;  %v3056_v11 = vld [vmem:[%s6833_s2 + $0xa98] sm:$0xff]  ;;  %v3030_v12 = vld [vmem:[%s6833_s2 + $0x9c8] sm:$0xff] }
 0x123   : > { %1457 = vmatpush.msra.mxu1 %v2952_v13  ;;  %1386 = vmatpush.msrb.mxu3 %v3115_v14  ;;  %v3088_v13 = vld [vmem:[%s6833_s2 + $0xb98] sm:$0xff]  ;;  %v3126_v14 = vld [vmem:[%s6833_s2 + $0xcc8] sm:$0xff] }
 0x124   : > { %1412 = vmatpush.msrb.mxu0 %v3141_v17  ;;  %3171 = vmatmul.msk.f32.gmra.mxu1 %vm647_vm3, %v4294_v29  ;;  %v3028_v17 = vld [vmem:[%s6833_s2 + $0x9b8] sm:$0xff] }
 0x125   : > { %1458 = vmatpush.msra.mxu1 %v2950_v18  ;;  %1478 = vmatpush.msra.mxu2 %v2988_v19  ;;  %v3054_v18 = vld [vmem:[%s6833_s2 + $0xa88] sm:$0xff] }
 0x126   : > { %1387 = vmatpush.msrb.mxu3 %v3113_v20  ;;  %1413 = vmatpush.msrb.mxu0 %v3139_v22  ;;  %v3086_v19 = vld [vmem:[%s6833_s2 + $0xb88] sm:$0xff]  ;;  %v3124_v20 = vld [vmem:[%s6833_s2 + $0xcb8] sm:$0xff] }
 0x127   : > { %1459 = vmatpush.msra.mxu1 %v2948_v23  ;;  %1479 = vmatpush.msra.mxu2 %v2986_v26  ;;  %v3026_v23 = vld [vmem:[%s6833_s2 + $0x9a8] sm:$0xff]  ;;  %v3052_v26 = vld [vmem:[%s6833_s2 + $0xa78] sm:$0xff] }
 0x128   : > { %1388 = vmatpush.msrb.mxu3 %v3111_v27  ;;  %1414 = vmatpush.msrb.mxu0 %v3137_v30  ;;  %v3084_v27 = vld [vmem:[%s6833_s2 + $0xb78] sm:$0xff]  ;;  %v3122_v30 = vld [vmem:[%s6833_s2 + $0xca8] sm:$0xff] }
 0x129   : > { %1460 = vmatpush.msra.mxu1 %v2946_v31  ;;  %1480 = vmatpush.msra.mxu2 %v2984_v32  ;;  %v5049_v22 = vpop.f32.mrf.mxu2  ;;  %v3024_v31 = vld [vmem:[%s6833_s2 + $0x998] sm:$0xff]  ;;  %v3050_v32 = vld [vmem:[%s6833_s2 + $0xa68] sm:$0xff] }
 0x12a   : > { %1389 = vmatpush.msrb.mxu3 %v3109_v33  ;;  %1415 = vmatpush.msrb.mxu0 %v3135_v34  ;;  %v3082_v33 = vld [vmem:[%s6833_s2 + $0xb68] sm:$0xff]  ;;  %v3120_v34 = vld [vmem:[%s6833_s2 + $0xc98] sm:$0xff] }
 0x12b   : > { %1416 = vmatmul.f32.vlgmr.msrb.gmra.mxu0 %v4229_v61  ;;  %1461 = vmatpush.msra.mxu1 %v2944_v35  ;;  %v5075_v35 = vpop.f32.mrf.mxu1 }
 0x12c   : > { %1481 = vmatpush.msra.mxu2 %v2982_v36  ;;  %1515 = vmatpush.msra.mxu0 %v3070_v39  ;;  %v3022_v36 = vld [vmem:[%s6833_s2 + $0x988] sm:$0xff]  ;;  %v3048_v39 = vld [vmem:[%s6833_s2 + $0xa58] sm:$0xff] }
 0x12d   : > { %1390 = vmatpush.msrb.mxu3 %v3107_v40  ;;  %1462 = vmatmul.f32.vlgmr.msra.gmra.mxu1 %v4091_v5  ;;  %v5083_v40 = vpop.f32.mrf.mxu3 }
 0x12e   : > { %1538 = vmatpush.msrb.mxu1 %v3102_v41  ;;  %1482 = vmatpush.msra.mxu2 %v2980_v42  ;;  %v3080_v41 = vld [vmem:[%s6833_s2 + $0xb58] sm:$0xff]  ;;  %v3118_v42 = vld [vmem:[%s6833_s2 + $0xc88] sm:$0xff] }
 0x12f   : > { %1516 = vmatpush.msra.mxu0 %v3068_v43  ;;  %1391 = vmatpush.msrb.mxu3 %v3105_v44  ;;  %v3020_v43 = vld [vmem:[%s6833_s2 + $0x978] sm:$0xff]  ;;  %v3046_v44 = vld [vmem:[%s6833_s2 + $0xa48] sm:$0xff] }
 0x130   : > { %1539 = vmatpush.msrb.mxu1 %v3100_v46  ;;  %1483 = vmatpush.msra.mxu2 %v2978_v47  ;;  %v3078_v46 = vld [vmem:[%s6833_s2 + $0xb48] sm:$0xff]  ;;  %v3116_v47 = vld [vmem:[%s6833_s2 + $0xc78] sm:$0xff] }
 0x131   : > { %1517 = vmatpush.msra.mxu0 %v3066_v48  ;;  %1392 = vmatpush.msrb.mxu3 %v3103_v50  ;;  %v3018_v48 = vld [vmem:[%s6833_s2 + $0x968] sm:$0xff]  ;;  %v3044_v50 = vld [vmem:[%s6833_s2 + $0xa38] sm:$0xff] }
 0x132   : > { %1540 = vmatpush.msrb.mxu1 %v3098_v51  ;;  %1393 = vmatmul.f32.vlgmr.msrb.gmra.mxu3 %v4198_v49  ;;  %v3076_v51 = vld [vmem:[%s6833_s2 + $0xb38] sm:$0xff] }
 0x133   : > { %1484 = vmatpush.msra.mxu2 %v2976_v52  ;;  %1492 = vmatpush.msra.mxu3 %v3038_v53  ;;  %v3114_v52 = vld [vmem:[%s6833_s2 + $0xc68] sm:$0xff]  ;;  %v5115_v53 = vpop.f32.mrf.mxu2 }
 0x134   : > { %1518 = vmatpush.msra.mxu0 %v3064_v54  ;;  %1485 = vmatmul.f32.vlgmr.msra.gmra.mxu2 %v4093_v6  ;;  %v3016_v54 = vld [vmem:[%s6833_s2 + $0x958] sm:$0xff] }
 0x135   : > { %1541 = vmatpush.msrb.mxu1 %v3096_v55  ;;  %1561 = vmatpush.msrb.mxu2 %v3134_v56  ;;  %v3042_v55 = vld [vmem:[%s6833_s2 + $0xa28] sm:$0xff]  ;;  %v5123_v56 = vpop.f32.mrf.mxu0 }
 0x136   : > { %1419 = vmatmul.f32.gmra.mxu0 %v4292_v28  ;;  %1493 = vmatpush.msra.mxu3 %v3036_v57  ;;  %v3074_v57 = vld [vmem:[%s6833_s2 + $0xb28] sm:$0xff] }
 0x137   : > { %1519 = vmatpush.msra.mxu0 %v3062_v58  ;;  %1465 = vmatmul.f32.gmra.mxu1 %v4125_v21  ;;  %v3112_v58 = vld [vmem:[%s6833_s2 + $0xc58] sm:$0xff] }
 0x138   : > { %1542 = vmatpush.msrb.mxu1 %v3094_v60  ;;  %1562 = vmatpush.msrb.mxu2 %v3132_v63  ;;  %v3014_v60 = vld [vmem:[%s6833_s2 + $0x948] sm:$0xff]  ;;  %v3040_v63 = vld [vmem:[%s6833_s2 + $0xa18] sm:$0xff] }
 0x139   : > { %1494 = vmatpush.msra.mxu3 %v3034_v0  ;;  %1520 = vmatpush.msra.mxu0 %v3060_v1  ;;  %v3072_v0 = vld [vmem:[%s6833_s2 + $0xb18] sm:$0xff]  ;;  %v5140_v1 = vpop.f32.mrf.mxu1 }
 0x13a   : > { %1543 = vmatpush.msrb.mxu1 %v3092_v2  ;;  %1563 = vmatpush.msrb.mxu2 %v3130_v3  ;;  %v3110_v2 = vld [vmem:[%s6833_s2 + $0xc48] sm:$0xff]  ;;  %v3168_v3 = vld [vmem:[%s6833_s2 + $0xe18] sm:$0xf] }
 0x13b   : > { %1495 = vmatpush.msra.mxu3 %v3032_v4  ;;  %1521 = vmatpush.msra.mxu0 %v3058_v7  ;;  %v5148_v4 = vpop.f32.mrf.mxu3  ;;  %v3012_v7 = vld [vmem:[%s6833_s2 + $0x938] sm:$0xff] }
 0x13c   : > { %1544 = vmatpush.msrb.mxu1 %v3090_v8  ;;  %1564 = vmatpush.msrb.mxu2 %v3128_v9  ;;  %v3205_v8 = vld [vmem:[%s6833_s2 + $0xf10] sm:$0xff] }
 0x13d   : > { %1396 = vmatmul.f32.gmra.mxu3 %v4260_v10  ;;  %1522 = vmatpush.msra.mxu0 %v3056_v11  ;;  %v3237_v9 = vld [vmem:[%s6833_s2 + $0x1010] sm:$0xff]  ;;  %v3108_v11 = vld [vmem:[%s6833_s2 + $0xc38] sm:$0xff] }
 0x13e   : > { %1496 = vmatpush.msra.mxu3 %v3030_v12  ;;  %1488 = vmatmul.f32.gmra.mxu2 %v4138_v25  ;;  %v3010_v12 = vld [vmem:[%s6833_s2 + $0x928] sm:$0xff] }
 0x13f   : > { %1545 = vmatpush.msrb.mxu1 %v3088_v13  ;;  %1565 = vmatpush.msrb.mxu2 %v3126_v14  ;;  %v3203_v13 = vld [vmem:[%s6833_s2 + $0xf00] sm:$0xff] }
 0x140   : > { %1497 = vmatpush.msra.mxu3 %v3028_v17  ;;  %1523 = vmatpush.msra.mxu0 %v3054_v18  ;;  %v3235_v14 = vld [vmem:[%s6833_s2 + $0x1000] sm:$0xff]  ;;  %v3106_v17 = vld [vmem:[%s6833_s2 + $0xc28] sm:$0xff]  ;;  %v3008_v18 = vld [vmem:[%s6833_s2 + $0x918] sm:$0xff] }
 0x141   : > { %1546 = vmatpush.msrb.mxu1 %v3086_v19  ;;  %1566 = vmatpush.msrb.mxu2 %v3124_v20  ;;  %v5180_v19 = vpop.f32.mrf.mxu2  ;;  %v3201_v20 = vld [vmem:[%s6833_s2 + $0xef0] sm:$0xff] }
 0x142   : > { %1498 = vmatpush.msra.mxu3 %v3026_v23  ;;  %1524 = vmatpush.msra.mxu0 %v3052_v26  ;;  %v3233_v23 = vld [vmem:[%s6833_s2 + $0xff0] sm:$0xff]  ;;  %v5188_v26 = vpop.f32.mrf.mxu0 }
 0x143   : > { %1547 = vmatpush.msrb.mxu1 %v3084_v27  ;;  %1567 = vmatpush.msrb.mxu2 %v3122_v30  ;;  %v3104_v27 = vld [vmem:[%s6833_s2 + $0xc18] sm:$0xff]  ;;  %v3166_v30 = vld [vmem:[%s6833_s2 + $0xe08] sm:$0xff] }
 0x144   : > { %1499 = vmatpush.msra.mxu3 %v3024_v31  ;;  %1525 = vmatpush.msra.mxu0 %v3050_v32  ;;  %v3199_v31 = vld [vmem:[%s6833_s2 + $0xee0] sm:$0xff] }
 0x145   : > { %1548 = vmatpush.msrb.mxu1 %v3082_v33  ;;  %1568 = vmatpush.msrb.mxu2 %v3120_v34  ;;  %v3231_v32 = vld [vmem:[%s6833_s2 + $0xfe0] sm:$0xff]  ;;  %v5202_v33 = vpop.f32.mrf.mxu1  ;;  %v3269_v34 = vld [vmem:[%s6833_s2 + $0x1110] sm:$0xff] }
 0x146   : > { %1500 = vmatpush.msra.mxu3 %v3022_v36  ;;  %1526 = vmatpush.msra.mxu0 %v3048_v39  ;;  %v5208_v36 = vpop.f32.mrf.mxu3  ;;  %v3164_v39 = vld [vmem:[%s6833_s2 + $0xdf8] sm:$0xff] }
 0x147   : > { %1549 = vmatpush.msrb.mxu1 %v3080_v41  ;;  %1569 = vmatpush.msrb.mxu2 %v3118_v42  ;;  %v3197_v41 = vld [vmem:[%s6833_s2 + $0xed0] sm:$0xff] }
 0x148   : > { %1501 = vmatpush.msra.mxu3 %v3020_v43  ;;  %1527 = vmatpush.msra.mxu0 %v3046_v44  ;;  %v3229_v42 = vld [vmem:[%s6833_s2 + $0xfd0] sm:$0xff]  ;;  %v3267_v43 = vld [vmem:[%s6833_s2 + $0x1100] sm:$0xff]  ;;  %v3162_v44 = vld [vmem:[%s6833_s2 + $0xde8] sm:$0xff] }
 0x149   : > { %1550 = vmatpush.msrb.mxu1 %v3078_v46  ;;  %1570 = vmatpush.msrb.mxu2 %v3116_v47  ;;  %v3195_v46 = vld [vmem:[%s6833_s2 + $0xec0] sm:$0xff] }
 0x14a   : > { %1502 = vmatpush.msra.mxu3 %v3018_v48  ;;  %1528 = vmatpush.msra.mxu0 %v3044_v50  ;;  %v3227_v47 = vld [vmem:[%s6833_s2 + $0xfc0] sm:$0xff]  ;;  %v3265_v48 = vld [vmem:[%s6833_s2 + $0x10f0] sm:$0xff]  ;;  %v3160_v50 = vld [vmem:[%s6833_s2 + $0xdd8] sm:$0xff] }
 0x14b   : > { %1551 = vmatpush.msrb.mxu1 %v3076_v51  ;;  %1571 = vmatpush.msrb.mxu2 %v3114_v52  ;;  %v5240_v51 = vpop.f32.mrf.mxu2  ;;  %v3193_v52 = vld [vmem:[%s6833_s2 + $0xeb0] sm:$0xff] }
 0x14c   : > { %1503 = vmatpush.msra.mxu3 %v3016_v54  ;;  %1529 = vmatpush.msra.mxu0 %v3042_v55  ;;  %v3225_v54 = vld [vmem:[%s6833_s2 + $0xfb0] sm:$0xff]  ;;  %v5248_v55 = vpop.f32.mrf.mxu0 }
 0x14d   : > { %1552 = vmatpush.msrb.mxu1 %v3074_v57  ;;  %1572 = vmatpush.msrb.mxu2 %v3112_v58  ;;  %v3263_v57 = vld [vmem:[%s6833_s2 + $0x10e0] sm:$0xff]  ;;  %v3158_v58 = vld [vmem:[%s6833_s2 + $0xdc8] sm:$0xff] }
 0x14e   : > { %1504 = vmatpush.msra.mxu3 %v3014_v60  ;;  %1530 = vmatpush.msra.mxu0 %v3040_v63  ;;  %v3191_v60 = vld [vmem:[%s6833_s2 + $0xea0] sm:$0xff] }
 0x14f   : > { %1531 = vmatmul.f32.vlgmr.msra.gmra.mxu0 %v4117_v16  ;;  %1553 = vmatpush.msrb.mxu1 %v3072_v0  ;;  %v3223_v63 = vld [vmem:[%s6833_s2 + $0xfa0] sm:$0xff]  ;;  %v5262_v0 = vpop.f32.mrf.mxu1 }
 0x150   : > { %1573 = vmatpush.msrb.mxu2 %v3110_v2  ;;  %3172 = vmatpush.msk.msrb.mxu0 %vm654_vm2, %v3168_v3  ;;  %v3261_v2 = vld [vmem:[%s6833_s2 + $0x10d0] sm:$0xff]  ;;  %v3156_v3 = vld [vmem:[%s6833_s2 + $0xdb8] sm:$0xff] }
 0x151   : > { %1505 = vmatpush.msra.mxu3 %v3012_v7  ;;  %1554 = vmatmul.f32.vlgmr.msrb.gmra.mxu1 %v4185_v45  ;;  %v5271_v7 = vpop.f32.mrf.mxu3 }
 0x152   : > { %1867 = vmatpush.msra.mxu0 %v3205_v8  ;;  %1890 = vmatpush.msra.mxu1 %v3237_v9  ;;  %v3221_v8 = vld [vmem:[%s6833_s2 + $0xf90] sm:$0xff] }
 0x153   : > { %1574 = vmatpush.msrb.mxu2 %v3108_v11  ;;  %1506 = vmatpush.msra.mxu3 %v3010_v12  ;;  %v3189_v9 = vld [vmem:[%s6833_s2 + $0xe90] sm:$0xff]  ;;  %v3259_v11 = vld [vmem:[%s6833_s2 + $0x10c0] sm:$0xff]  ;;  %v3154_v12 = vld [vmem:[%s6833_s2 + $0xda8] sm:$0xff] }
 0x154   : > { %1868 = vmatpush.msra.mxu0 %v3203_v13  ;;  %1891 = vmatpush.msra.mxu1 %v3235_v14  ;;  %v3219_v13 = vld [vmem:[%s6833_s2 + $0xf80] sm:$0xff] }
 0x155   : > { %1575 = vmatpush.msrb.mxu2 %v3106_v17  ;;  %1507 = vmatpush.msra.mxu3 %v3008_v18  ;;  %v3187_v14 = vld [vmem:[%s6833_s2 + $0xe80] sm:$0xff]  ;;  %v3257_v17 = vld [vmem:[%s6833_s2 + $0x10b0] sm:$0xff]  ;;  %v5297_v18 = vpop.f32.mrf.mxu0 }
 0x156   : > { %1869 = vmatpush.msra.mxu0 %v3201_v20  ;;  %1892 = vmatpush.msra.mxu1 %v3233_v23  ;;  %v3152_v20 = vld [vmem:[%s6833_s2 + $0xd98] sm:$0xff]  ;;  %v3217_v23 = vld [vmem:[%s6833_s2 + $0xf70] sm:$0xff] }
 0x157   : > { %1508 = vmatmul.f32.vlgmr.msra.gmra.mxu3 %v4115_v15  ;;  %1576 = vmatpush.msrb.mxu2 %v3104_v27  ;;  %v5305_v27 = vpop.f32.mrf.mxu2 }
 0x158   : > { %1584 = vmatpush.msrb.mxu3 %v3166_v30  ;;  %1577 = vmatmul.f32.vlgmr.msrb.gmra.mxu2 %v4198_v49  ;;  %v3185_v30 = vld [vmem:[%s6833_s2 + $0xe70] sm:$0xff] }
 0x159   : > { %1870 = vmatpush.msra.mxu0 %v3199_v31  ;;  %1893 = vmatpush.msra.mxu1 %v3231_v32  ;;  %v3255_v31 = vld [vmem:[%s6833_s2 + $0x10a0] sm:$0xff]  ;;  %v3150_v32 = vld [vmem:[%s6833_s2 + $0xd88] sm:$0xff] }
 0x15a   : > { %1913 = vmatpush.msra.mxu2 %v3269_v34  ;;  %1534 = vmatmul.f32.gmra.mxu0 %v4171_v38  ;;  %v3215_v34 = vld [vmem:[%s6833_s2 + $0xf60] sm:$0xff] }
 0x15b   : > { %1585 = vmatpush.msrb.mxu3 %v3164_v39  ;;  %1557 = vmatmul.f32.gmra.mxu1 %v4284_v24  ;;  %v3183_v39 = vld [vmem:[%s6833_s2 + $0xe60] sm:$0xff] }
 0x15c   : > { %1871 = vmatpush.msra.mxu0 %v3197_v41  ;;  %1894 = vmatpush.msra.mxu1 %v3229_v42  ;;  %v3253_v41 = vld [vmem:[%s6833_s2 + $0x1090] sm:$0xff]  ;;  %v3148_v42 = vld [vmem:[%s6833_s2 + $0xd78] sm:$0xff] }
 0x15d   : > { %1914 = vmatpush.msra.mxu2 %v3267_v43  ;;  %1586 = vmatpush.msrb.mxu3 %v3162_v44  ;;  %v5328_v43 = vpop.f32.mrf.mxu1  ;;  %v3181_v44 = vld [vmem:[%s6833_s2 + $0xe50] sm:$0xff] }
 0x15e   : > { %1872 = vmatpush.msra.mxu0 %v3195_v46  ;;  %1895 = vmatpush.msra.mxu1 %v3227_v47  ;;  %v3213_v46 = vld [vmem:[%s6833_s2 + $0xf50] sm:$0xff]  ;;  %v5336_v47 = vpop.f32.mrf.mxu3 }
 0x15f   : > { %1915 = vmatpush.msra.mxu2 %v3265_v48  ;;  %1587 = vmatpush.msrb.mxu3 %v3160_v50  ;;  %v3251_v48 = vld [vmem:[%s6833_s2 + $0x1080] sm:$0xff]  ;;  %v3146_v50 = vld [vmem:[%s6833_s2 + $0xd68] sm:$0xff] }
 0x160   : > { %1873 = vmatpush.msra.mxu0 %v3193_v52  ;;  %1896 = vmatpush.msra.mxu1 %v3225_v54  ;;  %v3179_v52 = vld [vmem:[%s6833_s2 + $0xe40] sm:$0xff] }
 0x161   : > { %1916 = vmatpush.msra.mxu2 %v3263_v57  ;;  %1511 = vmatmul.f32.gmra.mxu3 %v4169_v37  ;;  %v3211_v54 = vld [vmem:[%s6833_s2 + $0xf40] sm:$0xff]  ;;  %v3249_v57 = vld [vmem:[%s6833_s2 + $0x1070] sm:$0xff] }
 0x162   : > { %1588 = vmatpush.msrb.mxu3 %v3158_v58  ;;  %1580 = vmatmul.f32.gmra.mxu2 %v4260_v10  ;;  %v3144_v58 = vld [vmem:[%s6833_s2 + $0xd58] sm:$0xff] }
 0x163   : > { %1874 = vmatpush.msra.mxu0 %v3191_v60  ;;  %1897 = vmatpush.msra.mxu1 %v3223_v63  ;;  %v3177_v60 = vld [vmem:[%s6833_s2 + $0xe30] sm:$0xff] }
 0x164   : > { %1917 = vmatpush.msra.mxu2 %v3261_v2  ;;  %1589 = vmatpush.msrb.mxu3 %v3156_v3  ;;  %v3209_v63 = vld [vmem:[%s6833_s2 + $0xf30] sm:$0xff]  ;;  %v5364_v2 = vpop.f32.mrf.mxu0  ;;  %v3247_v3 = vld [vmem:[%s6833_s2 + $0x1060] sm:$0xff] }
 0x165   : > { %3173 = vmatmul.msk.f32.vlgmr.msrb.gmra.mxu0 %vm647_vm3, %v4231_v62  ;;  %1898 = vmatpush.msra.mxu1 %v3221_v8  ;;  %v5369_v8 = vpop.f32.mrf.mxu2 }
 0x166   : > { %1875 = vmatpush.msra.mxu0 %v3189_v9  ;;  %1918 = vmatpush.msra.mxu2 %v3259_v11  ;;  %6835 = vst [vmem:[#allocation2_spill] sm:$0xff] %v5369_v8  ;;  %v3142_v9 = vld [vmem:[%s6833_s2 + $0xd48] sm:$0xff]  ;;  %v3175_v11 = vld [vmem:[%s6833_s2 + $0xe20] sm:$0xff]  ;;  %v3475_v8 = vld [vmem:[%s6833_s2 + $0x1750] sm:$0xff] }
 0x167   : > { %1590 = vmatpush.msrb.mxu3 %v3154_v12  ;;  %1899 = vmatpush.msra.mxu1 %v3219_v13  ;;  %v3207_v12 = vld [vmem:[%s6833_s2 + $0xf20] sm:$0xff]  ;;  %v3245_v13 = vld [vmem:[%s6833_s2 + $0x1050] sm:$0xff] }
 0x168   : > { %1876 = vmatpush.msra.mxu0 %v3187_v14  ;;  %1919 = vmatpush.msra.mxu2 %v3257_v17  ;;  %v3140_v14 = vld [vmem:[%s6833_s2 + $0xd38] sm:$0xff]  ;;  %v3333_v17 = vld [vmem:[%s6833_s2 + $0x1310] sm:$0xff] }
 0x169   : > { %1591 = vmatpush.msrb.mxu3 %v3152_v20  ;;  %1900 = vmatpush.msra.mxu1 %v3217_v23  ;;  %v3365_v20 = vld [vmem:[%s6833_s2 + $0x1410] sm:$0xff]  ;;  %v5392_v23 = vpop.f32.mrf.mxu1 }
 0x16a   : > { %1877 = vmatpush.msra.mxu0 %v3185_v30  ;;  %1920 = vmatpush.msra.mxu2 %v3255_v31  ;;  %v3243_v30 = vld [vmem:[%s6833_s2 + $0x1040] sm:$0xff]  ;;  %v3138_v31 = vld [vmem:[%s6833_s2 + $0xd28] sm:$0xff] }
 0x16b   : > { %1592 = vmatpush.msrb.mxu3 %v3150_v32  ;;  %1901 = vmatpush.msra.mxu1 %v3215_v34  ;;  %v5400_v32 = vpop.f32.mrf.mxu3  ;;  %v3331_v34 = vld [vmem:[%s6833_s2 + $0x1300] sm:$0xff] }
 0x16c   : > { %1878 = vmatpush.msra.mxu0 %v3183_v39  ;;  %1921 = vmatpush.msra.mxu2 %v3253_v41  ;;  %v3363_v39 = vld [vmem:[%s6833_s2 + $0x1400] sm:$0xff]  ;;  %v3241_v41 = vld [vmem:[%s6833_s2 + $0x1030] sm:$0xff] }
 0x16d   : > { %1593 = vmatpush.msrb.mxu3 %v3148_v42  ;;  %3174 = vmatmul.msk.f32.gmra.mxu0 %vm647_vm3, %v4294_v29  ;;  %v3136_v42 = vld [vmem:[%s6833_s2 + $0xd18] sm:$0xff] }
 0x16e   : > { %1879 = vmatpush.msra.mxu0 %v3181_v44  ;;  %1902 = vmatpush.msra.mxu1 %v3213_v46  ;;  %v5416_v44 = vpop.f32.mrf.mxu0  ;;  %v3329_v46 = vld [vmem:[%s6833_s2 + $0x12f0] sm:$0xff] }
 0x16f   : > { %1922 = vmatpush.msra.mxu2 %v3251_v48  ;;  %1594 = vmatpush.msrb.mxu3 %v3146_v50  ;;  %v3361_v48 = vld [vmem:[%s6833_s2 + $0x13f0] sm:$0xff]  ;;  %v3239_v50 = vld [vmem:[%s6833_s2 + $0x1020] sm:$0xff] }
 0x170   : > { %1880 = vmatpush.msra.mxu0 %v3179_v52  ;;  %1903 = vmatpush.msra.mxu1 %v3211_v54  ;;  %v3301_v52 = vld [vmem:[%s6833_s2 + $0x1210] sm:$0xff]  ;;  %v5430_v54 = vpop.f32.mrf.mxu2 }
 0x171   : > { %1923 = vmatpush.msra.mxu2 %v3249_v57  ;;  %1595 = vmatpush.msrb.mxu3 %v3144_v58  ;;  %6836 = vst [vmem:[#allocation3_spill] sm:$0xff] %v5430_v54  ;;  %v3327_v57 = vld [vmem:[%s6833_s2 + $0x12e0] sm:$0xff] }
 0x172   : > { %1881 = vmatpush.msra.mxu0 %v3177_v60  ;;  %1904 = vmatpush.msra.mxu1 %v3209_v63  ;;  %v3359_v58 = vld [vmem:[%s6833_s2 + $0x13e0] sm:$0xff]  ;;  %v3397_v60 = vld [vmem:[%s6833_s2 + $0x1510] sm:$0xff] }
 0x173   : > { %1924 = vmatpush.msra.mxu2 %v3247_v3  ;;  %1596 = vmatpush.msrb.mxu3 %v3142_v9  ;;  %v3299_v63 = vld [vmem:[%s6833_s2 + $0x1200] sm:$0xff]  ;;  %v5445_v3 = vpop.f32.mrf.mxu1  ;;  %v3325_v9 = vld [vmem:[%s6833_s2 + $0x12d0] sm:$0xff] }
 0x174   : > { %1882 = vmatpush.msra.mxu0 %v3175_v11  ;;  %1905 = vmatpush.msra.mxu1 %v3207_v12  ;;  %v3357_v11 = vld [vmem:[%s6833_s2 + $0x13d0] sm:$0xff]  ;;  %v5454_v12 = vpop.f32.mrf.mxu3 }
 0x175   : > { %1925 = vmatpush.msra.mxu2 %v3245_v13  ;;  %1597 = vmatpush.msrb.mxu3 %v3140_v14  ;;  %v3395_v13 = vld [vmem:[%s6833_s2 + $0x1500] sm:$0xff]  ;;  %v3297_v14 = vld [vmem:[%s6833_s2 + $0x11f0] sm:$0xff] }
 0x176   : > { %1883 = vmatmul.f32.vlgmr.msra.gmra.mxu0 %v4091_v5  ;;  %1906 = vmatmul.f32.vlgmr.msra.gmra.mxu1 %v4093_v6 }
 0x177   : > { %1959 = vmatpush.msrb.mxu0 %v3333_v17  ;;  %1982 = vmatpush.msrb.mxu1 %v3365_v20  ;;  %v5462_v17 = vpop.f32.mrf.mxu0  ;;  %v3323_v20 = vld [vmem:[%s6833_s2 + $0x12c0] sm:$0xff] }
 0x178   : > { %1926 = vmatpush.msra.mxu2 %v3243_v30  ;;  %1598 = vmatpush.msrb.mxu3 %v3138_v31  ;;  %v3355_v30 = vld [vmem:[%s6833_s2 + $0x13c0] sm:$0xff]  ;;  %v3393_v31 = vld [vmem:[%s6833_s2 + $0x14f0] sm:$0xff] }
 0x179   : > { %1960 = vmatpush.msrb.mxu0 %v3331_v34  ;;  %1983 = vmatpush.msrb.mxu1 %v3363_v39  ;;  %v3295_v34 = vld [vmem:[%s6833_s2 + $0x11e0] sm:$0xff]  ;;  %v3321_v39 = vld [vmem:[%s6833_s2 + $0x12b0] sm:$0xff] }
 0x17a   : > { %1927 = vmatpush.msra.mxu2 %v3241_v41  ;;  %1599 = vmatpush.msrb.mxu3 %v3136_v42  ;;  %v3353_v41 = vld [vmem:[%s6833_s2 + $0x13b0] sm:$0xff]  ;;  %v3391_v42 = vld [vmem:[%s6833_s2 + $0x14e0] sm:$0xff] }
 0x17b   : > { %1961 = vmatpush.msrb.mxu0 %v3329_v46  ;;  %1984 = vmatpush.msrb.mxu1 %v3361_v48  ;;  %v3293_v46 = vld [vmem:[%s6833_s2 + $0x11d0] sm:$0xff]  ;;  %v1279_v48 = vpop.f32.mrf.mxu2 }
 0x17c   : > { %1600 = vmatmul.f32.vlgmr.msrb.gmra.mxu3 %v4229_v61  ;;  %1928 = vmatpush.msra.mxu2 %v3239_v50  ;;  %v3319_v50 = vld [vmem:[%s6833_s2 + $0x12a0] sm:$0xff] }
 0x17d   : > { %1936 = vmatpush.msra.mxu3 %v3301_v52  ;;  %1929 = vmatmul.f32.vlgmr.msra.gmra.mxu2 %v4115_v15  ;;  %v3351_v52 = vld [vmem:[%s6833_s2 + $0x13a0] sm:$0xff] }
 0x17e   : > { %1962 = vmatpush.msrb.mxu0 %v3327_v57  ;;  %1985 = vmatpush.msrb.mxu1 %v3359_v58  ;;  %v3389_v57 = vld [vmem:[%s6833_s2 + $0x14d0] sm:$0xff]  ;;  %v3291_v58 = vld [vmem:[%s6833_s2 + $0x11c0] sm:$0xff] }
 0x17f   : > { %2005 = vmatpush.msrb.mxu2 %v3397_v60  ;;  %1937 = vmatpush.msra.mxu3 %v3299_v63  ;;  %v5503_v60 = vpop.f32.mrf.mxu1  ;;  %v3317_v63 = vld [vmem:[%s6833_s2 + $0x1290] sm:$0xff] }
 0x180   : > { %1886 = vmatmul.f32.gmra.mxu0 %v4125_v21  ;;  %1909 = vmatmul.f32.gmra.mxu1 %v4138_v25  ;;  %6837 = vst [vmem:[#allocation4_spill] sm:$0xff] %v5503_v60  ;;  %v3184_v60 = vld [vmem:[%s6833_s2 + $0xe68] sm:$0xff] }
 0x181   : > { %1963 = vmatpush.msrb.mxu0 %v3325_v9  ;;  %1986 = vmatpush.msrb.mxu1 %v3357_v11  ;;  %v3349_v9 = vld [vmem:[%s6833_s2 + $0x1390] sm:$0xff]  ;;  %v3387_v11 = vld [vmem:[%s6833_s2 + $0x14c0] sm:$0xff] }
 0x182   : > { %2006 = vmatpush.msrb.mxu2 %v3395_v13  ;;  %1938 = vmatpush.msra.mxu3 %v3297_v14  ;;  %v3289_v13 = vld [vmem:[%s6833_s2 + $0x11b0] sm:$0xff]  ;;  %v5518_v14 = vpop.f32.mrf.mxu3 }
 0x183   : > { %1964 = vmatpush.msrb.mxu0 %v3323_v20  ;;  %1987 = vmatpush.msrb.mxu1 %v3355_v30  ;;  %6838 = vst [vmem:[#allocation5_spill] sm:$0xff] %v5518_v14  ;;  %v5520_v20 = vpop.f32.mrf.mxu0  ;;  %v3315_v30 = vld [vmem:[%s6833_s2 + $0x1280] sm:$0xff] }
 0x184   : > { %2007 = vmatpush.msrb.mxu2 %v3393_v31  ;;  %1939 = vmatpush.msra.mxu3 %v3295_v34  ;;  %6839 = vst [vmem:[#allocation6_spill] sm:$0xff] %v5520_v20  ;;  %v3347_v31 = vld [vmem:[%s6833_s2 + $0x1380] sm:$0xff]  ;;  %v3385_v34 = vld [vmem:[%s6833_s2 + $0x14b0] sm:$0xff] }
 0x185   : > { %1965 = vmatpush.msrb.mxu0 %v3321_v39  ;;  %1988 = vmatpush.msrb.mxu1 %v3353_v41  ;;  %v3287_v39 = vld [vmem:[%s6833_s2 + $0x11a0] sm:$0xff]  ;;  %v3313_v41 = vld [vmem:[%s6833_s2 + $0x1270] sm:$0xff] }
 0x186   : > { %2008 = vmatpush.msrb.mxu2 %v3391_v42  ;;  %1603 = vmatmul.f32.gmra.mxu3 %v4292_v28  ;;  %v3345_v42 = vld [vmem:[%s6833_s2 + $0x1370] sm:$0xff]  ;;  %v3473_v14 = vld [vmem:[%s6833_s2 + $0x1740] sm:$0xff] }
 0x187   : > { %1940 = vmatpush.msra.mxu3 %v3293_v46  ;;  %1932 = vmatmul.f32.gmra.mxu2 %v4169_v37  ;;  %v3383_v46 = vld [vmem:[%s6833_s2 + $0x14a0] sm:$0xff] }
 0x188   : > { %1966 = vmatpush.msrb.mxu0 %v3319_v50  ;;  %1989 = vmatpush.msrb.mxu1 %v3351_v52  ;;  %v3285_v50 = vld [vmem:[%s6833_s2 + $0x1190] sm:$0xff]  ;;  %v3311_v52 = vld [vmem:[%s6833_s2 + $0x1260] sm:$0xff] }
 0x189   : > { %2009 = vmatpush.msrb.mxu2 %v3389_v57  ;;  %1941 = vmatpush.msra.mxu3 %v3291_v58  ;;  %v3343_v57 = vld [vmem:[%s6833_s2 + $0x1360] sm:$0xff]  ;;  %v5552_v58 = vpop.f32.mrf.mxu2 }
 0x18a   : > { %1967 = vmatpush.msrb.mxu0 %v3317_v63  ;;  %1990 = vmatpush.msrb.mxu1 %v3349_v9  ;;  %v3381_v63 = vld [vmem:[%s6833_s2 + $0x1490] sm:$0xff]  ;;  %v3283_v9 = vld [vmem:[%s6833_s2 + $0x1180] sm:$0xff] }
 0x18b   : > { %2010 = vmatpush.msrb.mxu2 %v3387_v11  ;;  %1942 = vmatpush.msra.mxu3 %v3289_v13  ;;  %v3309_v11 = vld [vmem:[%s6833_s2 + $0x1250] sm:$0xff] }
 0x18c   : > { %1968 = vmatpush.msrb.mxu0 %v3315_v30  ;;  %1991 = vmatpush.msrb.mxu1 %v3347_v31  ;;  %v3341_v13 = vld [vmem:[%s6833_s2 + $0x1350] sm:$0xff]  ;;  %v1348_v30 = vpop.f32.mrf.mxu1  ;;  %v3379_v31 = vld [vmem:[%s6833_s2 + $0x1480] sm:$0xff] }
 0x18d   : > { %2011 = vmatpush.msrb.mxu2 %v3385_v34  ;;  %1943 = vmatpush.msra.mxu3 %v3287_v39  ;;  %v3281_v34 = vld [vmem:[%s6833_s2 + $0x1170] sm:$0xff] }
 0x18e   : > { %1969 = vmatpush.msrb.mxu0 %v3313_v41  ;;  %1992 = vmatpush.msrb.mxu1 %v3345_v42  ;;  %v3307_v41 = vld [vmem:[%s6833_s2 + $0x1240] sm:$0xff] }
 0x18f   : > { %2012 = vmatpush.msrb.mxu2 %v3383_v46  ;;  %1944 = vmatpush.msra.mxu3 %v3285_v50  ;;  %v3339_v42 = vld [vmem:[%s6833_s2 + $0x1340] sm:$0xff]  ;;  %v3377_v50 = vld [vmem:[%s6833_s2 + $0x1470] sm:$0xff] }
 0x190   : > { %1970 = vmatpush.msrb.mxu0 %v3311_v52  ;;  %1993 = vmatpush.msrb.mxu1 %v3343_v57  ;;  %v1302_v39 = vpop.f32.mrf.mxu3  ;;  %v3279_v52 = vld [vmem:[%s6833_s2 + $0x1160] sm:$0xff]  ;;  %v1325_v57 = vpop.f32.mrf.mxu0 }
 0x191   : > { %2013 = vmatpush.msrb.mxu2 %v3381_v63  ;;  %1945 = vmatpush.msra.mxu3 %v3283_v9  ;;  %v1303_v46 = vadd.f32 %v1302_v39, %v1279_v48  ;;  %v3305_v63 = vld [vmem:[%s6833_s2 + $0x1230] sm:$0xff] }
 0x192   : > { %1971 = vmatpush.msrb.mxu0 %v3309_v11  ;;  %1994 = vmatpush.msrb.mxu1 %v3341_v13  ;;  %v3337_v48 = vld [vmem:[%s6833_s2 + $0x1330] sm:$0xff]  ;;  %v3375_v11 = vld [vmem:[%s6833_s2 + $0x1460] sm:$0xff] }
 0x193   : > { %2014 = vmatpush.msrb.mxu2 %v3379_v31  ;;  %1946 = vmatpush.msra.mxu3 %v3281_v34  ;;  %v1326_v9 = vadd.f32 %v1325_v57, %v1303_v46  ;;  %v3277_v13 = vld [vmem:[%s6833_s2 + $0x1150] sm:$0xff]  ;;  %v3303_v31 = vld [vmem:[%s6833_s2 + $0x1220] sm:$0xff]  ;;  %v1371_v46 = vpop.f32.mrf.mxu2 }
 0x194   : > { %1972 = vmatpush.msrb.mxu0 %v3307_v41  ;;  %1995 = vmatpush.msrb.mxu1 %v3339_v42  ;;  %v3335_v34 = vld [vmem:[%s6833_s2 + $0x1320] sm:$0xff]  ;;  %v3373_v41 = vld [vmem:[%s6833_s2 + $0x1450] sm:$0xff] }
 0x195   : > { %2015 = vmatpush.msrb.mxu2 %v3377_v50  ;;  %1947 = vmatpush.msra.mxu3 %v3279_v52  ;;  %v1349_v39 = vadd.f32 %v1348_v30, %v1326_v9  ;;  %v3275_v42 = vld [vmem:[%s6833_s2 + $0x1140] sm:$0xff]  ;;  %v3238_v30 = vld [vmem:[%s6833_s2 + $0x1018] sm:$0xff]  ;;  %v3236_v9 = vld [vmem:[%s6833_s2 + $0x1008] sm:$0xff] }
 0x196   : > { %1973 = vmatpush.msrb.mxu0 %v3305_v63  ;;  %1996 = vmatpush.msrb.mxu1 %v3337_v48  ;;  %v3270_v52 = vld [vmem:[%s6833_s2 + $0x1118] sm:$0xff]  ;;  %v3371_v57 = vld [vmem:[%s6833_s2 + $0x1440] sm:$0xff]  ;;  %v3273_v63 = vld [vmem:[%s6833_s2 + $0x1130] sm:$0xff]  ;;  %v1351_v48 = vpop.f32.mrf.mxu1 }
 0x197   : > { %2016 = vmatpush.msrb.mxu2 %v3375_v11  ;;  %1948 = vmatpush.msra.mxu3 %v3277_v13  ;;  %v5608_v50 = vadd.f32 %v1371_v46, %v1349_v39  ;;  %v3268_v11 = vld [vmem:[%s6833_s2 + $0x1108] sm:$0xff]  ;;  %v3369_v13 = vld [vmem:[%s6833_s2 + $0x1430] sm:$0xff]  ;;  %v3234_v39 = vld [vmem:[%s6833_s2 + $0xff8] sm:$0xff] }
 0x198   : > { %1974 = vmatpush.msrb.mxu0 %v3303_v31  ;;  %1997 = vmatpush.msrb.mxu1 %v3335_v34  ;;  %v3271_v31 = vld [vmem:[%s6833_s2 + $0x1120] sm:$0xff] }
 0x199   : > { %2017 = vmatpush.msrb.mxu2 %v3373_v41  ;;  %1949 = vmatpush.msra.mxu3 %v3275_v42  ;;  %v3266_v41 = vld [vmem:[%s6833_s2 + $0x10f8] sm:$0xff]  ;;  %v3367_v46 = vld [vmem:[%s6833_s2 + $0x1420] sm:$0xff] }
 0x19a   : > { %1975 = vmatmul.f32.vlgmr.msrb.gmra.mxu0 %v4185_v45  ;;  %1998 = vmatmul.f32.vlgmr.msrb.gmra.mxu1 %v4198_v49 }
 0x19b   : > { %2074 = vmatpush.msra.mxu0 %v3238_v30  ;;  %2097 = vmatpush.msra.mxu1 %v3270_v52  ;;  %v1305_v34 = vpop.f32.mrf.mxu3  ;;  %v1328_v30 = vpop.f32.mrf.mxu0  ;;  %v3399_v52 = vld [vmem:[%s6833_s2 + $0x1520] sm:$0xf] }
 0x19c   : > { %2018 = vmatpush.msrb.mxu2 %v3371_v57  ;;  %1950 = vmatpush.msra.mxu3 %v3273_v63  ;;  %v1306_v42 = vadd.f32 %v1305_v34, %v5552_v58  ;;  %v3206_v58 = vld [vmem:[%s6833_s2 + $0xf18] sm:$0xff]  ;;  %v3232_v63 = vld [vmem:[%s6833_s2 + $0xfe8] sm:$0xff] }
 0x19d   : > { %2075 = vmatpush.msra.mxu0 %v3236_v9  ;;  %2098 = vmatpush.msra.mxu1 %v3268_v11  ;;  %v3264_v9 = vld [vmem:[%s6833_s2 + $0x10e8] sm:$0xff]  ;;  %v3302_v11 = vld [vmem:[%s6833_s2 + $0x1218] sm:$0xff] }
 0x19e   : > { %2019 = vmatpush.msrb.mxu2 %v3369_v13  ;;  %1951 = vmatpush.msra.mxu3 %v3271_v31  ;;  %v1329_v57 = vadd.f32 %v1328_v30, %v1306_v42  ;;  %v1374_v31 = vpop.f32.mrf.mxu2  ;;  %v3204_v34 = vld [vmem:[%s6833_s2 + $0xf08] sm:$0xff]  ;;  %v3202_v30 = vld [vmem:[%s6833_s2 + $0xef8] sm:$0xff] }
 0x19f   : > { %2076 = vmatpush.msra.mxu0 %v3234_v39  ;;  %2099 = vmatpush.msra.mxu1 %v3266_v41  ;;  %v3230_v39 = vld [vmem:[%s6833_s2 + $0xfd8] sm:$0xff]  ;;  %v3300_v42 = vld [vmem:[%s6833_s2 + $0x1208] sm:$0xff] }
 0x1a0   : > { %1952 = vmatmul.f32.vlgmr.msra.gmra.mxu3 %v4117_v16  ;;  %2020 = vmatpush.msrb.mxu2 %v3367_v46  ;;  %v1352_v13 = vadd.f32 %v1351_v48, %v1329_v57  ;;  %v3262_v48 = vld [vmem:[%s6833_s2 + $0x10d8] sm:$0xff]  ;;  %v5678_v46 = vpop.f32.mrf.mxu1  ;;  %v3260_v57 = vld [vmem:[%s6833_s2 + $0x10c8] sm:$0xff] }
 0x1a1   : > { %3401 = vmatpush.msk.msrb.mxu3 %vm654_vm2, %v3399_v52  ;;  %2021 = vmatmul.f32.vlgmr.msrb.gmra.mxu2 %v4229_v61  ;;  %v3228_v52 = vld [vmem:[%s6833_s2 + $0xfc8] sm:$0xff] }
 0x1a2   : > { %2077 = vmatpush.msra.mxu0 %v3232_v63  ;;  %v5670_v41 = vadd.f32 %v1374_v31, %v1352_v13  ;;  %2100 = vmatpush.msra.mxu1 %v3264_v9  ;;  %v3200_v63 = vld [vmem:[%s6833_s2 + $0xee8] sm:$0xff]  ;;  %v3226_v9 = vld [vmem:[%s6833_s2 + $0xfb8] sm:$0xff] }
 0x1a3   : > { %2051 = vmatpush.msra.mxu3 %v3206_v58  ;;  %2120 = vmatpush.msra.mxu2 %v3302_v11  ;;  %v3298_v58 = vld [vmem:[%s6833_s2 + $0x11f8] sm:$0xff]  ;;  %v3296_v13 = vld [vmem:[%s6833_s2 + $0x11e8] sm:$0xff] }
 0x1a4   : > { %1978 = vmatmul.f32.gmra.mxu0 %v4284_v24  ;;  %2001 = vmatmul.f32.gmra.mxu1 %v4260_v10  ;;  %v3258_v11 = vld [vmem:[%s6833_s2 + $0x10b8] sm:$0xff] }
 0x1a5   : > { %2052 = vmatpush.msra.mxu3 %v3204_v34  ;;  %2078 = vmatpush.msra.mxu0 %v3230_v39  ;;  %v3198_v31 = vld [vmem:[%s6833_s2 + $0xed8] sm:$0xff]  ;;  %v3224_v34 = vld [vmem:[%s6833_s2 + $0xfa8] sm:$0xff] }
 0x1a6   : > { %2101 = vmatpush.msra.mxu1 %v3262_v48  ;;  %2121 = vmatpush.msra.mxu2 %v3300_v42  ;;  %v3256_v39 = vld [vmem:[%s6833_s2 + $0x10a8] sm:$0xff]  ;;  %v3294_v48 = vld [vmem:[%s6833_s2 + $0x11d8] sm:$0xff] }
 0x1a7   : > { %2053 = vmatpush.msra.mxu3 %v3202_v30  ;;  %2079 = vmatpush.msra.mxu0 %v3228_v52  ;;  %v3196_v42 = vld [vmem:[%s6833_s2 + $0xec8] sm:$0xff]  ;;  %v3222_v30 = vld [vmem:[%s6833_s2 + $0xf98] sm:$0xff] }
 0x1a8   : > { %2102 = vmatpush.msra.mxu1 %v3260_v57  ;;  %2122 = vmatpush.msra.mxu2 %v3298_v58  ;;  %v3254_v52 = vld [vmem:[%s6833_s2 + $0x1098] sm:$0xff]  ;;  %v3292_v57 = vld [vmem:[%s6833_s2 + $0x11c8] sm:$0xff] }
 0x1a9   : > { %2054 = vmatpush.msra.mxu3 %v3200_v63  ;;  %2080 = vmatpush.msra.mxu0 %v3226_v9  ;;  %v3194_v58 = vld [vmem:[%s6833_s2 + $0xeb8] sm:$0xff]  ;;  %v3220_v63 = vld [vmem:[%s6833_s2 + $0xf88] sm:$0xff]  ;;  %v5738_v9 = vpop.f32.mrf.mxu1 }
 0x1aa   : > { %2103 = vmatpush.msra.mxu1 %v3258_v11  ;;  %2123 = vmatpush.msra.mxu2 %v3296_v13  ;;  %v3252_v11 = vld [vmem:[%s6833_s2 + $0x1088] sm:$0xff]  ;;  %v3290_v13 = vld [vmem:[%s6833_s2 + $0x11b8] sm:$0xff] }
 0x1ab   : > { %1955 = vmatmul.f32.gmra.mxu3 %v4171_v38  ;;  %2024 = vmatmul.f32.gmra.mxu2 %v4292_v28 }
 0x1ac   : > { %2055 = vmatpush.msra.mxu3 %v3198_v31  ;;  %2081 = vmatpush.msra.mxu0 %v3224_v34  ;;  %v3192_v31 = vld [vmem:[%s6833_s2 + $0xea8] sm:$0xff]  ;;  %v3218_v34 = vld [vmem:[%s6833_s2 + $0xf78] sm:$0xff] }
 0x1ad   : > { %2104 = vmatpush.msra.mxu1 %v3256_v39  ;;  %2124 = vmatpush.msra.mxu2 %v3294_v48  ;;  %v3250_v39 = vld [vmem:[%s6833_s2 + $0x1078] sm:$0xff]  ;;  %v3288_v48 = vld [vmem:[%s6833_s2 + $0x11a8] sm:$0xff] }
 0x1ae   : > { %2056 = vmatpush.msra.mxu3 %v3196_v42  ;;  %2082 = vmatpush.msra.mxu0 %v3222_v30  ;;  %v3216_v42 = vld [vmem:[%s6833_s2 + $0xf68] sm:$0xff]  ;;  %v3190_v30 = vld [vmem:[%s6833_s2 + $0xe98] sm:$0xff] }
 0x1af   : > { %2105 = vmatpush.msra.mxu1 %v3254_v52  ;;  %2125 = vmatpush.msra.mxu2 %v3292_v57  ;;  %v3248_v52 = vld [vmem:[%s6833_s2 + $0x1068] sm:$0xff]  ;;  %v3286_v57 = vld [vmem:[%s6833_s2 + $0x1198] sm:$0xff] }
 0x1b0   : > { %2057 = vmatpush.msra.mxu3 %v3194_v58  ;;  %2083 = vmatpush.msra.mxu0 %v3220_v63  ;;  %v3214_v58 = vld [vmem:[%s6833_s2 + $0xf58] sm:$0xff]  ;;  %v3188_v63 = vld [vmem:[%s6833_s2 + $0xe88] sm:$0xff] }
 0x1b1   : > { %2106 = vmatpush.msra.mxu1 %v3252_v11  ;;  %2126 = vmatpush.msra.mxu2 %v3290_v13  ;;  %v3246_v11 = vld [vmem:[%s6833_s2 + $0x1058] sm:$0xff]  ;;  %v3284_v13 = vld [vmem:[%s6833_s2 + $0x1188] sm:$0xff] }
 0x1b2   : > { %2058 = vmatpush.msra.mxu3 %v3192_v31  ;;  %2084 = vmatpush.msra.mxu0 %v3218_v34  ;;  %v3212_v31 = vld [vmem:[%s6833_s2 + $0xf48] sm:$0xff] }
 0x1b3   : > { %2107 = vmatpush.msra.mxu1 %v3250_v39  ;;  %2127 = vmatpush.msra.mxu2 %v3288_v48  ;;  %v3186_v39 = vld [vmem:[%s6833_s2 + $0xe78] sm:$0xff]  ;;  %v3244_v48 = vld [vmem:[%s6833_s2 + $0x1048] sm:$0xff] }
 0x1b4   : > { %3402 = vmatmul.msk.f32.vlgmr.msrb.gmra.mxu3 %vm647_vm3, %v4231_v62  ;;  %2085 = vmatpush.msra.mxu0 %v3216_v42  ;;  %v1417_v42 = vpop.f32.mrf.mxu0 }
 0x1b5   : > { %2059 = vmatpush.msra.mxu3 %v3190_v30  ;;  %2108 = vmatpush.msra.mxu1 %v3248_v52  ;;  %v1394_v34 = vpop.f32.mrf.mxu3  ;;  %v3282_v52 = vld [vmem:[%s6833_s2 + $0x1178] sm:$0xff] }
 0x1b6   : > { %2128 = vmatpush.msra.mxu2 %v3286_v57  ;;  %2086 = vmatpush.msra.mxu0 %v3214_v58  ;;  %v1395_v30 = vadd.f32 %v1394_v34, %v5608_v50  ;;  %v3210_v57 = vld [vmem:[%s6833_s2 + $0xf38] sm:$0xff]  ;;  %v1463_v58 = vpop.f32.mrf.mxu1  ;;  %v3280_v34 = vld [vmem:[%s6833_s2 + $0x1168] sm:$0xff] }
 0x1b7   : > { %2060 = vmatpush.msra.mxu3 %v3188_v63  ;;  %2109 = vmatpush.msra.mxu1 %v3246_v11  ;;  %v1486_v54 = vpop.f32.mrf.mxu2  ;;  %v3242_v50 = vld [vmem:[%s6833_s2 + $0x1038] sm:$0xff] }
 0x1b8   : > { %2129 = vmatpush.msra.mxu2 %v3284_v13  ;;  %2087 = vmatpush.msra.mxu0 %v3212_v31  ;;  %v1418_v63 = vadd.f32 %v1417_v42, %v1395_v30  ;;  %v5806_v11 = vadd.f32 %v1486_v54, %v1463_v58  ;;  %v3182_v13 = vld [vmem:[%s6833_s2 + $0xe58] sm:$0xff]  ;;  %v3208_v31 = vld [vmem:[%s6833_s2 + $0xf28] sm:$0xff] }
 0x1b9   : > { %2061 = vmatpush.msra.mxu3 %v3186_v39  ;;  %2110 = vmatpush.msra.mxu1 %v3244_v48  ;;  %v3240_v54 = vld [vmem:[%s6833_s2 + $0x1028] sm:$0xff]  ;;  %v3278_v39 = vld [vmem:[%s6833_s2 + $0x1158] sm:$0xff] }
 0x1ba   : > { %2130 = vmatpush.msra.mxu2 %v3282_v52  ;;  %2088 = vmatpush.msra.mxu0 %v3210_v57  ;;  %v5818_v42 = vadd.f32 %v5678_v46, %v1418_v63  ;;  %v3366_v46 = vld [vmem:[%s6833_s2 + $0x1418] sm:$0xff]  ;;  %v3180_v48 = vld [vmem:[%s6833_s2 + $0xe48] sm:$0xff] }
 0x1bb   : > { %2062 = vmatpush.msra.mxu3 %v3184_v60  ;;  %2111 = vmatpush.msra.mxu1 %v3242_v50  ;;  %v3398_v60 = vld [vmem:[%s6833_s2 + $0x1518] sm:$0xff]  ;;  %v3276_v30 = vld [vmem:[%s6833_s2 + $0x1148] sm:$0xff] }
 0x1bc   : > { %2131 = vmatpush.msra.mxu2 %v3280_v34  ;;  %3403 = vmatmul.msk.f32.gmra.mxu3 %vm647_vm3, %v4294_v29  ;;  %v3364_v52 = vld [vmem:[%s6833_s2 + $0x1408] sm:$0xff]  ;;  %v3178_v58 = vld [vmem:[%s6833_s2 + $0xe38] sm:$0xff] }
 0x1bd   : > { %2063 = vmatpush.msra.mxu3 %v3182_v13  ;;  %2089 = vmatpush.msra.mxu0 %v3208_v31  ;;  %v3396_v57 = vld [vmem:[%s6833_s2 + $0x1508] sm:$0xff]  ;;  %v3274_v50 = vld [vmem:[%s6833_s2 + $0x1138] sm:$0xff] }
 0x1be   : > { %2112 = vmatpush.msra.mxu1 %v3240_v54  ;;  %2132 = vmatpush.msra.mxu2 %v3278_v39  ;;  %v3362_v34 = vld [vmem:[%s6833_s2 + $0x13f8] sm:$0xff]  ;;  %v1466_v31 = vpop.f32.mrf.mxu1 }
 0x1bf   : > { %2090 = vmatmul.f32.vlgmr.msra.gmra.mxu0 %v4093_v6  ;;  %2113 = vmatmul.f32.vlgmr.msra.gmra.mxu1 %v4115_v15  ;;  %v3394_v13 = vld [vmem:[%s6833_s2 + $0x14f8] sm:$0xff] }
 0x1c0   : > { %2166 = vmatpush.msrb.mxu0 %v3366_v46  ;;  %2189 = vmatpush.msrb.mxu1 %v3398_v60  ;;  %v1397_v63 = vpop.f32.mrf.mxu3  ;;  %v3176_v46 = vld [vmem:[%s6833_s2 + $0xe28] sm:$0xff] }
 0x1c1   : > { %2064 = vmatpush.msra.mxu3 %v3180_v48  ;;  %2133 = vmatpush.msra.mxu2 %v3276_v30  ;;  %v1398_v54 = vadd.f32 %v1397_v63, %v5670_v41  ;;  %v1489_v39 = vpop.f32.mrf.mxu2  ;;  %v3272_v60 = vld [vmem:[%s6833_s2 + $0x1128] sm:$0xff]  ;;  %v1420_v48 = vpop.f32.mrf.mxu0  ;;  %v3334_v41 = vld [vmem:[%s6833_s2 + $0x1318] sm:$0xff]  ;;  %v3437_v63 = vld [vmem:[%s6833_s2 + $0x1620] sm:$0xff] }
 0x1c2   : > { %2167 = vmatpush.msrb.mxu0 %v3364_v52  ;;  %2190 = vmatpush.msrb.mxu1 %v3396_v57  ;;  %v5867_v30 = vadd.f32 %v1489_v39, %v1466_v31  ;;  %v3360_v52 = vld [vmem:[%s6833_s2 + $0x13e8] sm:$0xff]  ;;  %v3330_v31 = vld [vmem:[%s6833_s2 + $0x12f8] sm:$0xff] }
 0x1c3   : > { %2065 = vmatpush.msra.mxu3 %v3178_v58  ;;  %2134 = vmatpush.msra.mxu2 %v3274_v50  ;;  %v1421_v20 = vadd.f32 %v1420_v48, %v1398_v54  ;;  %v3392_v57 = vld [vmem:[%s6833_s2 + $0x14e8] sm:$0xff]  ;;  %v3354_v48 = vld [vmem:[%s6833_s2 + $0x13b8] sm:$0xff] }
 0x1c4   : > { %2168 = vmatpush.msrb.mxu0 %v3362_v34  ;;  %2191 = vmatpush.msrb.mxu1 %v3394_v13  ;;  %v3400_v58 = vld [vmem:[%s6833_s2 + $0x1528] sm:$0xf]  ;;  %v3435_v13 = vld [vmem:[%s6833_s2 + $0x1610] sm:$0xff] }
 0x1c5   : > { %2066 = vmatpush.msra.mxu3 %v3176_v46  ;;  %2135 = vmatpush.msra.mxu2 %v3272_v60  ;;  %v5882_v50 = vadd.f32 %v5738_v9, %v1421_v20  ;;  %v3332_v34 = vld [vmem:[%s6833_s2 + $0x1308] sm:$0xff]  ;;  %v3358_v20 = vld [vmem:[%s6833_s2 + $0x13d8] sm:$0xff]  ;;  %v3433_v46 = vld [vmem:[%s6833_s2 + $0x1600] sm:$0xff] }
 0x1c6   : > { %2067 = vmatmul.f32.vlgmr.msra.gmra.mxu3 %v4091_v5  ;;  %2136 = vmatmul.f32.vlgmr.msra.gmra.mxu2 %v4117_v16  ;;  %v3390_v9 = vld [vmem:[%s6833_s2 + $0x14d8] sm:$0xff]  ;;  %v3356_v54 = vld [vmem:[%s6833_s2 + $0x13c8] sm:$0xff] }
 0x1c7   : > { %2143 = vmatpush.msrb.mxu3 %v3334_v41  ;;  %2169 = vmatpush.msrb.mxu0 %v3360_v52  ;;  %v3388_v39 = vld [vmem:[%s6833_s2 + $0x14c8] sm:$0xff]  ;;  %v3386_v41 = vld [vmem:[%s6833_s2 + $0x14b8] sm:$0xff]  ;;  %v3431_v52 = vld [vmem:[%s6833_s2 + $0x15f0] sm:$0xff] }
 0x1c8   : > { %2192 = vmatpush.msrb.mxu1 %v3392_v57  ;;  %3404 = vmatpush.msk.msrb.mxu2 %vm654_vm2, %v3400_v58  ;;  %v3328_v60 = vld [vmem:[%s6833_s2 + $0x12e8] sm:$0xff]  ;;  %v3326_v57 = vld [vmem:[%s6833_s2 + $0x12d8] sm:$0xff] }
 0x1c9   : > { %2093 = vmatmul.f32.gmra.mxu0 %v4138_v25  ;;  %2116 = vmatmul.f32.gmra.mxu1 %v4169_v37 }
 0x1ca   : > { %2472 = vmatpush.msra.mxu2 %v3437_v63  ;;  %2144 = vmatpush.msrb.mxu3 %v3332_v34  ;;  %v3352_v63 = vld [vmem:[%s6833_s2 + $0x13a8] sm:$0xff] }
 0x1cb   : > { %2170 = vmatpush.msrb.mxu0 %v3358_v20  ;;  %2193 = vmatpush.msrb.mxu1 %v3390_v9  ;;  %v3384_v34 = vld [vmem:[%s6833_s2 + $0x14a8] sm:$0xff]  ;;  %v3429_v20 = vld [vmem:[%s6833_s2 + $0x15e0] sm:$0xff] }
 0x1cc   : > { %2473 = vmatpush.msra.mxu2 %v3435_v13  ;;  %2145 = vmatpush.msrb.mxu3 %v3330_v31  ;;  %v5931_v58 = vpop.f32.mrf.mxu0  ;;  %v3324_v9 = vld [vmem:[%s6833_s2 + $0x12c8] sm:$0xff]  ;;  %v3350_v13 = vld [vmem:[%s6833_s2 + $0x1398] sm:$0xff] }
 0x1cd   : > { %2171 = vmatpush.msrb.mxu0 %v3356_v54  ;;  %2194 = vmatpush.msrb.mxu1 %v3388_v39  ;;  %v3382_v31 = vld [vmem:[%s6833_s2 + $0x1498] sm:$0xff]  ;;  %v3427_v54 = vld [vmem:[%s6833_s2 + $0x15d0] sm:$0xff] }
 0x1ce   : > { %2474 = vmatpush.msra.mxu2 %v3433_v46  ;;  %2146 = vmatpush.msrb.mxu3 %v3328_v60  ;;  %v3322_v39 = vld [vmem:[%s6833_s2 + $0x12b8] sm:$0xff]  ;;  %v3348_v46 = vld [vmem:[%s6833_s2 + $0x1388] sm:$0xff] }
 0x1cf   : > { %2172 = vmatpush.msrb.mxu0 %v3354_v48  ;;  %2195 = vmatpush.msrb.mxu1 %v3386_v41  ;;  %v3380_v60 = vld [vmem:[%s6833_s2 + $0x1488] sm:$0xff]  ;;  %v3425_v48 = vld [vmem:[%s6833_s2 + $0x15c0] sm:$0xff] }
 0x1d0   : > { %2475 = vmatpush.msra.mxu2 %v3431_v52  ;;  %2070 = vmatmul.f32.gmra.mxu3 %v4125_v21  ;;  %v3320_v41 = vld [vmem:[%s6833_s2 + $0x12a8] sm:$0xff]  ;;  %v3346_v52 = vld [vmem:[%s6833_s2 + $0x1378] sm:$0xff] }
 0x1d1   : > { %2139 = vmatmul.f32.gmra.mxu2 %v4171_v38  ;;  %2147 = vmatpush.msrb.mxu3 %v3326_v57  ;;  %v3378_v57 = vld [vmem:[%s6833_s2 + $0x1478] sm:$0xff] }
 0x1d2   : > { %2173 = vmatpush.msrb.mxu0 %v3352_v63  ;;  %2196 = vmatpush.msrb.mxu1 %v3384_v34  ;;  %v3423_v63 = vld [vmem:[%s6833_s2 + $0x15b0] sm:$0xff]  ;;  %v3318_v34 = vld [vmem:[%s6833_s2 + $0x1298] sm:$0xff] }
 0x1d3   : > { %2476 = vmatpush.msra.mxu2 %v3429_v20  ;;  %2148 = vmatpush.msrb.mxu3 %v3324_v9  ;;  %v3344_v20 = vld [vmem:[%s6833_s2 + $0x1368] sm:$0xff] }
 0x1d4   : > { %2174 = vmatpush.msrb.mxu0 %v3350_v13  ;;  %2197 = vmatpush.msrb.mxu1 %v3382_v31  ;;  %v3376_v9 = vld [vmem:[%s6833_s2 + $0x1468] sm:$0xff] }
 0x1d5   : > { %2477 = vmatpush.msra.mxu2 %v3427_v54  ;;  %2149 = vmatpush.msrb.mxu3 %v3322_v39  ;;  %v3316_v13 = vld [vmem:[%s6833_s2 + $0x1288] sm:$0xff]  ;;  %v3421_v54 = vld [vmem:[%s6833_s2 + $0x15a0] sm:$0xff]  ;;  %v3342_v39 = vld [vmem:[%s6833_s2 + $0x1358] sm:$0xff] }
 0x1d6   : > { %2175 = vmatpush.msrb.mxu0 %v3348_v46  ;;  %2198 = vmatpush.msrb.mxu1 %v3380_v60  ;;  %v3374_v46 = vld [vmem:[%s6833_s2 + $0x1458] sm:$0xff] }
 0x1d7   : > { %2478 = vmatpush.msra.mxu2 %v3425_v48  ;;  %2150 = vmatpush.msrb.mxu3 %v3320_v41  ;;  %v5992_v31 = vpop.f32.mrf.mxu0  ;;  %v3314_v60 = vld [vmem:[%s6833_s2 + $0x1278] sm:$0xff]  ;;  %v3419_v41 = vld [vmem:[%s6833_s2 + $0x1590] sm:$0xff] }
 0x1d8   : > { %2176 = vmatpush.msrb.mxu0 %v3346_v52  ;;  %2199 = vmatpush.msrb.mxu1 %v3378_v57  ;;  %v3340_v52 = vld [vmem:[%s6833_s2 + $0x1348] sm:$0xff] }
 0x1d9   : > { %2479 = vmatpush.msra.mxu2 %v3423_v63  ;;  %2151 = vmatpush.msrb.mxu3 %v3318_v34  ;;  %v3372_v63 = vld [vmem:[%s6833_s2 + $0x1448] sm:$0xff] }
 0x1da   : > { %2177 = vmatpush.msrb.mxu0 %v3344_v20  ;;  %2200 = vmatpush.msrb.mxu1 %v3376_v9  ;;  %v1509_v48 = vpop.f32.mrf.mxu3  ;;  %v3312_v34 = vld [vmem:[%s6833_s2 + $0x1268] sm:$0xff]  ;;  %v3417_v20 = vld [vmem:[%s6833_s2 + $0x1580] sm:$0xff] }
 0x1db   : > { %3405 = vmatmul.msk.f32.vlgmr.msrb.gmra.mxu2 %vm647_vm3, %v4231_v62  ;;  %2152 = vmatpush.msrb.mxu3 %v3316_v13  ;;  %v1510_v57 = vadd.f32 %v1509_v48, %v5806_v11  ;;  %v3338_v11 = vld [vmem:[%s6833_s2 + $0x1338] sm:$0xff]  ;;  %v3368_v48 = vld [vmem:[%s6833_s2 + $0x1428] sm:$0xff] }
 0x1dc   : > { %2480 = vmatpush.msra.mxu2 %v3421_v54  ;;  %2178 = vmatpush.msrb.mxu0 %v3342_v39  ;;  %v3370_v13 = vld [vmem:[%s6833_s2 + $0x1438] sm:$0xff]  ;;  %v1555_v39 = vpop.f32.mrf.mxu1 }
 0x1dd   : > { %2201 = vmatpush.msrb.mxu1 %v3374_v46  ;;  %2153 = vmatpush.msrb.mxu3 %v3314_v60  ;;  %v1533_v9 = vadd.f32 %v5931_v58, %v1510_v57  ;;  %v3310_v54 = vld [vmem:[%s6833_s2 + $0x1258] sm:$0xff]  ;;  %v3415_v46 = vld [vmem:[%s6833_s2 + $0x1570] sm:$0xff]  ;;  %v3336_v58 = vld [vmem:[%s6833_s2 + $0x1328] sm:$0xff] }
 0x1de   : > { %2481 = vmatpush.msra.mxu2 %v3419_v41  ;;  %2179 = vmatpush.msrb.mxu0 %v3340_v52  ;;  %v1578_v41 = vpop.f32.mrf.mxu2  ;;  %v3413_v57 = vld [vmem:[%s6833_s2 + $0x1560] sm:$0xff] }
 0x1df   : > { %2202 = vmatpush.msrb.mxu1 %v3372_v63  ;;  %2154 = vmatpush.msrb.mxu3 %v3312_v34  ;;  %v1556_v60 = vadd.f32 %v1555_v39, %v1533_v9  ;;  %v3501_v63 = vld [vmem:[%s6833_s2 + $0x1820] sm:$0xff]  ;;  %v3411_v9 = vld [vmem:[%s6833_s2 + $0x1550] sm:$0xff] }
 0x1e0   : > { %2482 = vmatpush.msra.mxu2 %v3417_v20  ;;  %2180 = vmatpush.msrb.mxu0 %v3338_v11  ;;  %v3533_v20 = vld [vmem:[%s6833_s2 + $0x1920] sm:$0xff]  ;;  %v3308_v11 = vld [vmem:[%s6833_s2 + $0x1248] sm:$0xff]  ;;  %v3531_v39 = vld [vmem:[%s6833_s2 + $0x1910] sm:$0xff] }
 0x1e1   : > { %2203 = vmatpush.msrb.mxu1 %v3370_v13  ;;  %2155 = vmatpush.msrb.mxu3 %v3310_v54  ;;  %v6043_v52 = vadd.f32 %v1578_v41, %v1556_v60  ;;  %v3499_v13 = vld [vmem:[%s6833_s2 + $0x1810] sm:$0xff]  ;;  %v3409_v60 = vld [vmem:[%s6833_s2 + $0x1540] sm:$0xff] }
 0x1e2   : > { %2483 = vmatpush.msra.mxu2 %v3415_v46  ;;  %2181 = vmatpush.msrb.mxu0 %v3336_v58  ;;  %v6051_v34 = vpop.f32.mrf.mxu0  ;;  %v3306_v46 = vld [vmem:[%s6833_s2 + $0x1238] sm:$0xff]  ;;  %v3529_v41 = vld [vmem:[%s6833_s2 + $0x1900] sm:$0xff] }
 0x1e3   : > { %2204 = vmatpush.msrb.mxu1 %v3368_v48  ;;  %3406 = vmatmul.msk.f32.gmra.mxu2 %vm647_vm3, %v4294_v29  ;;  %v3497_v48 = vld [vmem:[%s6833_s2 + $0x1800] sm:$0xff] }
 0x1e4   : > { %2182 = vmatmul.f32.vlgmr.msrb.gmra.mxu0 %v4198_v49  ;;  %2205 = vmatmul.f32.vlgmr.msrb.gmra.mxu1 %v4229_v61  ;;  %v1512_v54 = vpop.f32.mrf.mxu3 }
 0x1e5   : > { %2484 = vmatpush.msra.mxu2 %v3413_v57  ;;  %2518 = vmatpush.msra.mxu0 %v3501_v63  ;;  %v1513_v58 = vadd.f32 %v1512_v54, %v5867_v30  ;;  %v3304_v30 = vld [vmem:[%s6833_s2 + $0x1228] sm:$0xff]  ;;  %v3407_v63 = vld [vmem:[%s6833_s2 + $0x1530] sm:$0xff] }
 0x1e6   : > { %2541 = vmatpush.msra.mxu1 %v3533_v20  ;;  %2156 = vmatpush.msrb.mxu3 %v3308_v11  ;;  %v1558_v20 = vpop.f32.mrf.mxu1  ;;  %v3469_v11 = vld [vmem:[%s6833_s2 + $0x1720] sm:$0xff]  ;;  %v1581_v54 = vpop.f32.mrf.mxu2 }
 0x1e7   : > { %2485 = vmatpush.msra.mxu2 %v3411_v9  ;;  %2519 = vmatpush.msra.mxu0 %v3499_v13  ;;  %v1536_v57 = vadd.f32 %v5992_v31, %v1513_v58  ;;  %v3495_v9 = vld [vmem:[%s6833_s2 + $0x17f0] sm:$0xff] }
 0x1e8   : > { %2542 = vmatpush.msra.mxu1 %v3531_v39  ;;  %2157 = vmatpush.msrb.mxu3 %v3306_v46  ;;  %v3527_v31 = vld [vmem:[%s6833_s2 + $0x18f0] sm:$0xff]  ;;  %v3565_v46 = vld [vmem:[%s6833_s2 + $0x1a20] sm:$0xff] }
 0x1e9   : > { %2486 = vmatpush.msra.mxu2 %v3409_v60  ;;  %2520 = vmatpush.msra.mxu0 %v3497_v48  ;;  %v1559_v13 = vadd.f32 %v1558_v20, %v1536_v57  ;;  %v3467_v60 = vld [vmem:[%s6833_s2 + $0x1710] sm:$0xff]  ;;  %v3493_v48 = vld [vmem:[%s6833_s2 + $0x17e0] sm:$0xff] }
 0x1ea   : > { %2543 = vmatpush.msra.mxu1 %v3529_v41  ;;  %2158 = vmatpush.msrb.mxu3 %v3304_v30  ;;  %v6101_v39 = vpop.f32.mrf.mxu0  ;;  %v3525_v41 = vld [vmem:[%s6833_s2 + $0x18e0] sm:$0xff]  ;;  %v3563_v30 = vld [vmem:[%s6833_s2 + $0x1a10] sm:$0xff] }
 0x1eb   : > { %2159 = vmatmul.f32.vlgmr.msrb.gmra.mxu3 %v4185_v45  ;;  %2487 = vmatpush.msra.mxu2 %v3407_v63  ;;  %v6107_v58 = vadd.f32 %v1581_v54, %v1559_v13  ;;  %v3465_v57 = vld [vmem:[%s6833_s2 + $0x1700] sm:$0xff]  ;;  %v3491_v63 = vld [vmem:[%s6833_s2 + $0x17d0] sm:$0xff] }
 0x1ec   : > { %2495 = vmatpush.msra.mxu3 %v3469_v11  ;;  %2521 = vmatpush.msra.mxu0 %v3495_v9  ;;  %v3523_v20 = vld [vmem:[%s6833_s2 + $0x18d0] sm:$0xff]  ;;  %v3561_v11 = vld [vmem:[%s6833_s2 + $0x1a00] sm:$0xff] }
 0x1ed   : > { %2544 = vmatpush.msra.mxu1 %v3527_v31  ;;  %2488 = vmatmul.f32.vlgmr.msra.gmra.mxu2 %v4091_v5  ;;  %v3463_v9 = vld [vmem:[%s6833_s2 + $0x16f0] sm:$0xff]  ;;  %v3489_v13 = vld [vmem:[%s6833_s2 + $0x17c0] sm:$0xff] }
 0x1ee   : > { %2564 = vmatpush.msrb.mxu2 %v3565_v46  ;;  %2185 = vmatmul.f32.gmra.mxu0 %v4260_v10  ;;  %v3521_v31 = vld [vmem:[%s6833_s2 + $0x18c0] sm:$0xff]  ;;  %v3559_v54 = vld [vmem:[%s6833_s2 + $0x19f0] sm:$0xff] }
 0x1ef   : > { %2208 = vmatmul.f32.gmra.mxu1 %v4292_v28  ;;  %2496 = vmatpush.msra.mxu3 %v3467_v60  ;;  %v3461_v46 = vld [vmem:[%s6833_s2 + $0x16e0] sm:$0xff]  ;;  %v3487_v60 = vld [vmem:[%s6833_s2 + $0x17b0] sm:$0xff] }
 0x1f0   : > { %2522 = vmatpush.msra.mxu0 %v3493_v48  ;;  %2545 = vmatpush.msra.mxu1 %v3525_v41 }
 0x1f1   : > { %2565 = vmatpush.msrb.mxu2 %v3563_v30  ;;  %2497 = vmatpush.msra.mxu3 %v3465_v57  ;;  %v3519_v30 = vld [vmem:[%s6833_s2 + $0x18b0] sm:$0xff] }
 0x1f2   : > { %2523 = vmatpush.msra.mxu0 %v3491_v63  ;;  %2546 = vmatpush.msra.mxu1 %v3523_v20  ;;  %v3557_v63 = vld [vmem:[%s6833_s2 + $0x19e0] sm:$0xff]  ;;  %v3459_v20 = vld [vmem:[%s6833_s2 + $0x16d0] sm:$0xff] }
 0x1f3   : > { %2566 = vmatpush.msrb.mxu2 %v3561_v11  ;;  %2498 = vmatpush.msra.mxu3 %v3463_v9  ;;  %v1884_v48 = vpop.f32.mrf.mxu0  ;;  %v1907_v41 = vpop.f32.mrf.mxu1  ;;  %v3485_v11 = vld [vmem:[%s6833_s2 + $0x17a0] sm:$0xff] }
 0x1f4   : > { %2524 = vmatpush.msra.mxu0 %v3489_v13  ;;  %2547 = vmatpush.msra.mxu1 %v3521_v31  ;;  %v1908_v57 = vadd.f32 %v1907_v41, %v1884_v48  ;;  %v3517_v9 = vld [vmem:[%s6833_s2 + $0x18a0] sm:$0xff]  ;;  %v3555_v13 = vld [vmem:[%s6833_s2 + $0x19d0] sm:$0xff] }
 0x1f5   : > { %2567 = vmatpush.msrb.mxu2 %v3559_v54  ;;  %2162 = vmatmul.f32.gmra.mxu3 %v4284_v24  ;;  %v3457_v31 = vld [vmem:[%s6833_s2 + $0x16c0] sm:$0xff]  ;;  %v3483_v54 = vld [vmem:[%s6833_s2 + $0x1790] sm:$0xff] }
 0x1f6   : > { %2499 = vmatpush.msra.mxu3 %v3461_v46  ;;  %2525 = vmatpush.msra.mxu0 %v3487_v60  ;;  %v3515_v46 = vld [vmem:[%s6833_s2 + $0x1890] sm:$0xff]  ;;  %v3553_v60 = vld [vmem:[%s6833_s2 + $0x19c0] sm:$0xff] }
 0x1f7   : > { %2548 = vmatpush.msra.mxu1 %v3519_v30  ;;  %2491 = vmatmul.f32.gmra.mxu2 %v4125_v21  ;;  %v3455_v48 = vld [vmem:[%s6833_s2 + $0x16b0] sm:$0xff]  ;;  %v3481_v41 = vld [vmem:[%s6833_s2 + $0x1780] sm:$0xff] }
 0x1f8   : > { %2568 = vmatpush.msrb.mxu2 %v3557_v63  ;;  %2500 = vmatpush.msra.mxu3 %v3459_v20  ;;  %v3513_v30 = vld [vmem:[%s6833_s2 + $0x1880] sm:$0xff]  ;;  %v3551_v63 = vld [vmem:[%s6833_s2 + $0x19b0] sm:$0xff] }
 0x1f9   : > { %2526 = vmatpush.msra.mxu0 %v3485_v11  ;;  %2549 = vmatpush.msra.mxu1 %v3517_v9  ;;  %v3453_v20 = vld [vmem:[%s6833_s2 + $0x16a0] sm:$0xff]  ;;  %v3479_v11 = vld [vmem:[%s6833_s2 + $0x1770] sm:$0xff] }
 0x1fa   : > { %2569 = vmatpush.msrb.mxu2 %v3555_v13  ;;  %2501 = vmatpush.msra.mxu3 %v3457_v31  ;;  %v3511_v9 = vld [vmem:[%s6833_s2 + $0x1870] sm:$0xff]  ;;  %v3549_v13 = vld [vmem:[%s6833_s2 + $0x19a0] sm:$0xff] }
 0x1fb   : > { %2527 = vmatpush.msra.mxu0 %v3483_v54  ;;  %2550 = vmatpush.msra.mxu1 %v3515_v46  ;;  %v3451_v31 = vld [vmem:[%s6833_s2 + $0x1690] sm:$0xff] }
 0x1fc   : > { %2570 = vmatpush.msrb.mxu2 %v3553_v60  ;;  %2502 = vmatpush.msra.mxu3 %v3455_v48  ;;  %v3477_v60 = vld [vmem:[%s6833_s2 + $0x1760] sm:$0xff] }
 0x1fd   : > { %2528 = vmatpush.msra.mxu0 %v3481_v41  ;;  %2551 = vmatpush.msra.mxu1 %v3513_v30  ;;  %v1887_v54 = vpop.f32.mrf.mxu0  ;;  %v1910_v46 = vpop.f32.mrf.mxu1  ;;  %v3509_v48 = vld [vmem:[%s6833_s2 + $0x1860] sm:$0xff]  ;;  %v3547_v30 = vld [vmem:[%s6833_s2 + $0x1990] sm:$0xff] }
 0x1fe   : > { %2571 = vmatpush.msrb.mxu2 %v3551_v63  ;;  %2503 = vmatpush.msra.mxu3 %v3453_v20  ;;  %v1911_v41 = vadd.f32 %v1910_v46, %v1887_v54  ;;  %v3449_v63 = vld [vmem:[%s6833_s2 + $0x1680] sm:$0xff] }
 0x1ff   : > { %2529 = vmatpush.msra.mxu0 %v3479_v11  ;;  %2552 = vmatpush.msra.mxu1 %v3511_v9  ;;  %v1601_v20 = vpop.f32.mrf.mxu3  ;;  %v3507_v11 = vld [vmem:[%s6833_s2 + $0x1850] sm:$0xff]  ;;  %v3545_v46 = vld [vmem:[%s6833_s2 + $0x1980] sm:$0xff] }
 0x200   : > { %2572 = vmatpush.msrb.mxu2 %v3549_v13  ;;  %2504 = vmatpush.msra.mxu3 %v3451_v31  ;;  %v1602_v9 = vadd.f32 %v1601_v20, %v6043_v52  ;;  %v1930_v54 = vpop.f32.mrf.mxu2  ;;  %v3447_v13 = vld [vmem:[%s6833_s2 + $0x1670] sm:$0xff]  ;;  %v3505_v52 = vld [vmem:[%s6833_s2 + $0x1840] sm:$0xff] }
 0x201   : > { %2530 = vmatpush.msra.mxu0 %v3477_v60  ;;  %2553 = vmatpush.msra.mxu1 %v3509_v48  ;;  %v6238_v31 = vadd.f32 %v1930_v54, %v1908_v57  ;;  %v3543_v57 = vld [vmem:[%s6833_s2 + $0x1970] sm:$0xff]  ;;  %v3445_v48 = vld [vmem:[%s6833_s2 + $0x1660] sm:$0xff] }
 0x202   : > { %2573 = vmatpush.msrb.mxu2 %v3547_v30  ;;  %2505 = vmatpush.msra.mxu3 %v3449_v63  ;;  %v6247_v60 = vadd.f32 %v6051_v34, %v1602_v9  ;;  %v3471_v30 = vld [vmem:[%s6833_s2 + $0x1730] sm:$0xff]  ;;  %v3629_v63 = vld [vmem:[%s6833_s2 + $0x1c20] sm:$0xff] }
 0x203   : > { %2531 = vmatpush.msra.mxu0 %v3475_v8  ;;  %2554 = vmatpush.msra.mxu1 %v3507_v11  ;;  %v3503_v34 = vld [vmem:[%s6833_s2 + $0x1830] sm:$0xff]  ;;  %v3541_v8 = vld [vmem:[%s6833_s2 + $0x1960] sm:$0xff]  ;;  %v3438_v11 = vld [vmem:[%s6833_s2 + $0x1628] sm:$0xff] }
 0x204   : > { %2574 = vmatpush.msrb.mxu2 %v3545_v46  ;;  %2506 = vmatpush.msra.mxu3 %v3447_v13  ;;  %v3631_v20 = vld [vmem:[%s6833_s2 + $0x1c30] sm:$0xf]  ;;  %v3441_v46 = vld [vmem:[%s6833_s2 + $0x1640] sm:$0xff] }
 0x205   : > { %2532 = vmatpush.msra.mxu0 %v3473_v14  ;;  %2555 = vmatpush.msra.mxu1 %v3505_v52  ;;  %v3443_v14 = vld [vmem:[%s6833_s2 + $0x1650] sm:$0xff]  ;;  %v3436_v52 = vld [vmem:[%s6833_s2 + $0x1618] sm:$0xff] }
 0x206   : > { %2575 = vmatpush.msrb.mxu2 %v3543_v57  ;;  %2507 = vmatpush.msra.mxu3 %v3445_v48  ;;  %v3539_v9 = vld [vmem:[%s6833_s2 + $0x1950] sm:$0xff]  ;;  %v3537_v57 = vld [vmem:[%s6833_s2 + $0x1940] sm:$0xff] }
 0x207   : > { %2533 = vmatpush.msra.mxu0 %v3471_v30  ;;  %2556 = vmatpush.msra.mxu1 %v3503_v34  ;;  %v3627_v54 = vld [vmem:[%s6833_s2 + $0x1c10] sm:$0xff]  ;;  %v3625_v34 = vld [vmem:[%s6833_s2 + $0x1c00] sm:$0xff] }
 0x208   : > { %2534 = vmatmul.f32.vlgmr.msra.gmra.mxu0 %v4115_v15  ;;  %2557 = vmatmul.f32.vlgmr.msra.gmra.mxu1 %v4117_v16 }
 0x209   : > { %2576 = vmatpush.msrb.mxu2 %v3541_v8  ;;  %2610 = vmatpush.msrb.mxu0 %v3629_v63  ;;  %v1604_v13 = vpop.f32.mrf.mxu3  ;;  %v3439_v8 = vld [vmem:[%s6833_s2 + $0x1630] sm:$0xff] }
 0x20a   : > { %3633 = vmatpush.msk.msrb.mxu1 %vm654_vm2, %v3631_v20  ;;  %2508 = vmatpush.msra.mxu3 %v3443_v14  ;;  %v1605_v48 = vadd.f32 %v1604_v13, %v6107_v58  ;;  %v1933_v30 = vpop.f32.mrf.mxu2  ;;  %v3434_v20 = vld [vmem:[%s6833_s2 + $0x1608] sm:$0xff]  ;;  %v3535_v14 = vld [vmem:[%s6833_s2 + $0x1930] sm:$0xff] }
 0x20b   : > { %2577 = vmatpush.msrb.mxu2 %v3539_v9  ;;  %v6301_v63 = vadd.f32 %v1933_v30, %v1911_v41  ;;  %2611 = vmatpush.msrb.mxu0 %v3627_v54  ;;  %v3597_v41 = vld [vmem:[%s6833_s2 + $0x1b20] sm:$0xff]  ;;  %v3470_v9 = vld [vmem:[%s6833_s2 + $0x1728] sm:$0xff]  ;;  %v3595_v54 = vld [vmem:[%s6833_s2 + $0x1b10] sm:$0xff] }
 0x20c   : > { %2656 = vmatpush.msra.mxu1 %v3438_v11  ;;  %2509 = vmatpush.msra.mxu3 %v3441_v46  ;;  %v6307_v58 = vadd.f32 %v6101_v39, %v1605_v48  ;;  %v3623_v11 = vld [vmem:[%s6833_s2 + $0x1bf0] sm:$0xff]  ;;  %v3432_v39 = vld [vmem:[%s6833_s2 + $0x15f8] sm:$0xff]  ;;  %v3621_v46 = vld [vmem:[%s6833_s2 + $0x1be0] sm:$0xff] }
 0x20d   : > { %2578 = vmatpush.msrb.mxu2 %v3537_v57  ;;  %2612 = vmatpush.msrb.mxu0 %v3625_v34  ;;  %v3430_v13 = vld [vmem:[%s6833_s2 + $0x15e8] sm:$0xff]  ;;  %v3593_v57 = vld [vmem:[%s6833_s2 + $0x1b00] sm:$0xff]  ;;  %v3619_v48 = vld [vmem:[%s6833_s2 + $0x1bd0] sm:$0xff] }
 0x20e   : > { %2657 = vmatpush.msra.mxu1 %v3436_v52  ;;  %2510 = vmatpush.msra.mxu3 %v3439_v8  ;;  %v3468_v52 = vld [vmem:[%s6833_s2 + $0x1718] sm:$0xff]  ;;  %v3466_v34 = vld [vmem:[%s6833_s2 + $0x1708] sm:$0xff]  ;;  %v3591_v8 = vld [vmem:[%s6833_s2 + $0x1af0] sm:$0xff] }
 0x20f   : > { %2511 = vmatmul.f32.vlgmr.msra.gmra.mxu3 %v4093_v6  ;;  %2579 = vmatpush.msrb.mxu2 %v3535_v14  ;;  %v3428_v30 = vld [vmem:[%s6833_s2 + $0x15d8] sm:$0xff]  ;;  %v3426_v14 = vld [vmem:[%s6833_s2 + $0x15c8] sm:$0xff] }
 0x210   : > { %2658 = vmatpush.msra.mxu1 %v3434_v20  ;;  %2587 = vmatpush.msrb.mxu3 %v3597_v41  ;;  %v3617_v20 = vld [vmem:[%s6833_s2 + $0x1bc0] sm:$0xff]  ;;  %v3464_v41 = vld [vmem:[%s6833_s2 + $0x16f8] sm:$0xff] }
 0x211   : > { %2613 = vmatpush.msrb.mxu0 %v3623_v11  ;;  %2580 = vmatmul.f32.vlgmr.msrb.gmra.mxu2 %v4185_v45  ;;  %v3615_v11 = vld [vmem:[%s6833_s2 + $0x1bb0] sm:$0xff] }
 0x212   : > { %2659 = vmatpush.msra.mxu1 %v3432_v39  ;;  %2679 = vmatpush.msra.mxu2 %v3470_v9  ;;  %v3589_v39 = vld [vmem:[%s6833_s2 + $0x1ae0] sm:$0xff]  ;;  %v3424_v9 = vld [vmem:[%s6833_s2 + $0x15b8] sm:$0xff] }
 0x213   : > { %2537 = vmatmul.f32.gmra.mxu0 %v4169_v37  ;;  %2560 = vmatmul.f32.gmra.mxu1 %v4171_v38 }
 0x214   : > { %2588 = vmatpush.msrb.mxu3 %v3595_v54  ;;  %2614 = vmatpush.msrb.mxu0 %v3621_v46  ;;  %v3462_v54 = vld [vmem:[%s6833_s2 + $0x16e8] sm:$0xff]  ;;  %v3587_v46 = vld [vmem:[%s6833_s2 + $0x1ad0] sm:$0xff] }
 0x215   : > { %2660 = vmatpush.msra.mxu1 %v3430_v13  ;;  %2680 = vmatpush.msra.mxu2 %v3468_v52  ;;  %v3613_v13 = vld [vmem:[%s6833_s2 + $0x1ba0] sm:$0xff]  ;;  %v3460_v52 = vld [vmem:[%s6833_s2 + $0x16d8] sm:$0xff] }
 0x216   : > { %2589 = vmatpush.msrb.mxu3 %v3593_v57  ;;  %2615 = vmatpush.msrb.mxu0 %v3619_v48  ;;  %v3422_v57 = vld [vmem:[%s6833_s2 + $0x15a8] sm:$0xff]  ;;  %v3585_v48 = vld [vmem:[%s6833_s2 + $0x1ac0] sm:$0xff] }
 0x217   : > { %2661 = vmatpush.msra.mxu1 %v3428_v30  ;;  %2681 = vmatpush.msra.mxu2 %v3466_v34  ;;  %v3611_v30 = vld [vmem:[%s6833_s2 + $0x1b90] sm:$0xff]  ;;  %v3458_v34 = vld [vmem:[%s6833_s2 + $0x16c8] sm:$0xff] }
 0x218   : > { %2590 = vmatpush.msrb.mxu3 %v3591_v8  ;;  %2616 = vmatpush.msrb.mxu0 %v3617_v20  ;;  %v3420_v8 = vld [vmem:[%s6833_s2 + $0x1598] sm:$0xff]  ;;  %v3583_v20 = vld [vmem:[%s6833_s2 + $0x1ab0] sm:$0xff] }
 0x219   : > { %2662 = vmatpush.msra.mxu1 %v3426_v14  ;;  %2682 = vmatpush.msra.mxu2 %v3464_v41  ;;  %v3609_v14 = vld [vmem:[%s6833_s2 + $0x1b80] sm:$0xff]  ;;  %v3456_v41 = vld [vmem:[%s6833_s2 + $0x16b8] sm:$0xff] }
 0x21a   : > { %2514 = vmatmul.f32.gmra.mxu3 %v4138_v25  ;;  %2617 = vmatpush.msrb.mxu0 %v3615_v11  ;;  %v702_v11 = vadd.f32 %v5075_v35, %v5123_v56  ;;  %v3454_v35 = vld [vmem:[%s6833_s2 + $0x16a8] sm:$0xff]  ;;  %v3416_v56 = vld [vmem:[%s6833_s2 + $0x1578] sm:$0xff] }
 0x21b   : > { %2591 = vmatpush.msrb.mxu3 %v3589_v39  ;;  %2583 = vmatmul.f32.gmra.mxu2 %v4284_v24  ;;  %v3418_v39 = vld [vmem:[%s6833_s2 + $0x1588] sm:$0xff] }
 0x21c   : > { %2663 = vmatpush.msra.mxu1 %v3424_v9  ;;  %2683 = vmatpush.msra.mxu2 %v3462_v54  ;;  %v3581_v9 = vld [vmem:[%s6833_s2 + $0x1aa0] sm:$0xff]  ;;  %v3607_v54 = vld [vmem:[%s6833_s2 + $0x1b70] sm:$0xff] }
 0x21d   : > { %2592 = vmatpush.msrb.mxu3 %v3587_v46  ;;  %2618 = vmatpush.msrb.mxu0 %v3613_v13  ;;  %v3579_v46 = vld [vmem:[%s6833_s2 + $0x1a90] sm:$0xff]  ;;  %v3605_v13 = vld [vmem:[%s6833_s2 + $0x1b60] sm:$0xff] }
 0x21e   : > { %3634 = vmatmul.msk.f32.vlgmr.msrb.gmra.mxu1 %vm647_vm3, %v4231_v62  ;;  %2684 = vmatpush.msra.mxu2 %v3460_v52 }
 0x21f   : > { %2664 = vmatpush.msra.mxu1 %v3422_v57  ;;  %2593 = vmatpush.msrb.mxu3 %v3585_v48  ;;  %v725_v57 = vadd.f32 %v4989_v59, %v702_v11  ;;  %v3414_v48 = vld [vmem:[%s6833_s2 + $0x1568] sm:$0xff]  ;;  %v3603_v59 = vld [vmem:[%s6833_s2 + $0x1b50] sm:$0xff] }
 0x220   : > { %2619 = vmatpush.msrb.mxu0 %v3611_v30  ;;  %2685 = vmatpush.msra.mxu2 %v3458_v34  ;;  %v3452_v30 = vld [vmem:[%s6833_s2 + $0x1698] sm:$0xff] }
 0x221   : > { %2665 = vmatpush.msra.mxu1 %v3420_v8  ;;  %2594 = vmatpush.msrb.mxu3 %v3583_v20  ;;  %v3577_v8 = vld [vmem:[%s6833_s2 + $0x1a80] sm:$0xff]  ;;  %v1976_v20 = vpop.f32.mrf.mxu0 }
 0x222   : > { %2620 = vmatpush.msrb.mxu0 %v3609_v14  ;;  %2686 = vmatpush.msra.mxu2 %v3456_v41  ;;  %v705_v14 = vadd.f32 %v5140_v1, %v5188_v26  ;;  %v3450_v41 = vld [vmem:[%s6833_s2 + $0x1688] sm:$0xff]  ;;  %v3601_v1 = vld [vmem:[%s6833_s2 + $0x1b40] sm:$0xff]  ;;  %v1999_v26 = vpop.f32.mrf.mxu1 }
 0x223   : > { %2666 = vmatpush.msra.mxu1 %v3418_v39  ;;  %2595 = vmatpush.msrb.mxu3 %v3581_v9  ;;  %v1953_v52 = vpop.f32.mrf.mxu3  ;;  %v3575_v39 = vld [vmem:[%s6833_s2 + $0x1a70] sm:$0xff]  ;;  %v748_v9 = vadd.f32 %v5083_v40, %v725_v57  ;;  %v3408_v57 = vld [vmem:[%s6833_s2 + $0x1538] sm:$0xff] }
 0x224   : > { %2621 = vmatpush.msrb.mxu0 %v3607_v54  ;;  %2687 = vmatpush.msra.mxu2 %v3454_v35  ;;  %v1954_v34 = vadd.f32 %v1953_v52, %v6238_v31  ;;  %v3412_v31 = vld [vmem:[%s6833_s2 + $0x1558] sm:$0xff]  ;;  %v3410_v54 = vld [vmem:[%s6833_s2 + $0x1548] sm:$0xff]  ;;  %v3599_v40 = vld [vmem:[%s6833_s2 + $0x1b30] sm:$0xff]  ;;  %v728_v52 = vadd.f32 %v5049_v22, %v705_v14 }
 0x225   : > { %2667 = vmatpush.msra.mxu1 %v3416_v56  ;;  %2596 = vmatpush.msrb.mxu3 %v3579_v46  ;;  %v3448_v35 = vld [vmem:[%s6833_s2 + $0x1678] sm:$0xff]  ;;  %v3573_v46 = vld [vmem:[%s6833_s2 + $0x1a60] sm:$0xff]  ;;  %v771_v22 = vadd.f32 %v5248_v55, %v748_v9 }
 0x226   : > { %2622 = vmatpush.msrb.mxu0 %v3605_v13  ;;  %3635 = vmatmul.msk.f32.gmra.mxu1 %vm647_vm3, %v4294_v29  ;;  %v1977_v11 = vadd.f32 %v1976_v20, %v1954_v34  ;;  %v2022_v13 = vpop.f32.mrf.mxu2  ;;  %v3534_v34 = vld [vmem:[%s6833_s2 + $0x1928] sm:$0xff]  ;;  %v3444_v20 = vld [vmem:[%s6833_s2 + $0x1658] sm:$0xff]  ;;  %v751_v14 = vadd.f32 %v5148_v4, %v728_v52 }
 0x227   : > { %2668 = vmatpush.msra.mxu1 %v3414_v48  ;;  %2688 = vmatpush.msra.mxu2 %v3452_v30  ;;  %v3446_v30 = vld [vmem:[%s6833_s2 + $0x1668] sm:$0xff]  ;;  %v3532_v55 = vld [vmem:[%s6833_s2 + $0x1918] sm:$0xff] }
 0x228   : > { %2597 = vmatpush.msrb.mxu3 %v3577_v8  ;;  %2623 = vmatpush.msrb.mxu0 %v3603_v59  ;;  %v2000_v56 = vadd.f32 %v1999_v26, %v1977_v11  ;;  %v3571_v8 = vld [vmem:[%s6833_s2 + $0x1a50] sm:$0xff]  ;;  %v3566_v59 = vld [vmem:[%s6833_s2 + $0x1a28] sm:$0xff]  ;;  %v3564_v11 = vld [vmem:[%s6833_s2 + $0x1a18] sm:$0xff] }
 0x229   : > { %2669 = vmatpush.msra.mxu1 %v3412_v31  ;;  %2689 = vmatpush.msra.mxu2 %v3450_v41  ;;  %v3569_v31 = vld [vmem:[%s6833_s2 + $0x1a40] sm:$0xff]  ;;  %v3442_v4 = vld [vmem:[%s6833_s2 + $0x1648] sm:$0xff]  ;;  %v1979_v9 = vpop.f32.mrf.mxu0 }
 0x22a   : > { %2598 = vmatpush.msrb.mxu3 %v3575_v39  ;;  %2624 = vmatpush.msrb.mxu0 %v3601_v1  ;;  %v6483_v48 = vadd.f32 %v2022_v13, %v2000_v56  ;;  %v794_v1 = vadd.f32 %v5202_v33, %v771_v22  ;;  %v3530_v26 = vld [vmem:[%s6833_s2 + $0x1908] sm:$0xff]  ;;  %v3440_v56 = vld [vmem:[%s6833_s2 + $0x1638] sm:$0xff] }
 0x22b   : > { %2670 = vmatpush.msra.mxu1 %v3410_v54  ;;  %2690 = vmatpush.msra.mxu2 %v3448_v35  ;;  %v3562_v54 = vld [vmem:[%s6833_s2 + $0x1a08] sm:$0xff]  ;;  %v774_v35 = vadd.f32 %v5297_v18, %v751_v14  ;;  %v3528_v13 = vld [vmem:[%s6833_s2 + $0x18f8] sm:$0xff] }
 0x22c   : > { %2599 = vmatpush.msrb.mxu3 %v3573_v46  ;;  %2625 = vmatpush.msrb.mxu0 %v3599_v40  ;;  %v817_v33 = vadd.f32 %v5115_v53, %v794_v1  ;;  %v3502_v46 = vld [vmem:[%s6833_s2 + $0x1828] sm:$0xff]  ;;  %v2002_v40 = vpop.f32.mrf.mxu1  ;;  %v3560_v18 = vld [vmem:[%s6833_s2 + $0x19f8] sm:$0xff] }
 0x22d   : > { %2626 = vmatmul.f32.vlgmr.msrb.gmra.mxu0 %v4229_v61  ;;  %2671 = vmatpush.msra.mxu1 %v3408_v57  ;;  %v3598_v52 = vld [vmem:[%s6833_s2 + $0x1b28] sm:$0xff]  ;;  %v3596_v14 = vld [vmem:[%s6833_s2 + $0x1b18] sm:$0xff] }
 0x22e   : > { %2691 = vmatpush.msra.mxu2 %v3446_v30  ;;  %2725 = vmatpush.msra.mxu0 %v3534_v34  ;;  %v1956_v41 = vpop.f32.mrf.mxu3  ;;  %v2025_v57 = vpop.f32.mrf.mxu2  ;;  %v3500_v30 = vld [vmem:[%s6833_s2 + $0x1818] sm:$0xff]  ;;  %v840_v22 = vadd.f32 %v5208_v36, %v817_v33 }
 0x22f   : > { %2600 = vmatpush.msrb.mxu3 %v3571_v8  ;;  %2672 = vmatmul.f32.vlgmr.msra.gmra.mxu1 %v4091_v5  ;;  %v1957_v39 = vadd.f32 %v1956_v41, %v6301_v63  ;;  %v3567_v5 = vld [vmem:[%s6833_s2 + $0x1a30] sm:$0xff]  ;;  %v797_v8 = vadd.f32 %v5262_v0, %v774_v35  ;;  %v3524_v0 = vld [vmem:[%s6833_s2 + $0x18d8] sm:$0xff]  ;;  %v3550_v35 = vld [vmem:[%s6833_s2 + $0x19a8] sm:$0xff] }
 0x230   : > { %2748 = vmatpush.msrb.mxu1 %v3566_v59  ;;  %2692 = vmatpush.msra.mxu2 %v3444_v20  ;;  %v3526_v59 = vld [vmem:[%s6833_s2 + $0x18e8] sm:$0xff]  ;;  %v3556_v41 = vld [vmem:[%s6833_s2 + $0x19d8] sm:$0xff] }
 0x231   : > { %2726 = vmatpush.msra.mxu0 %v3532_v55  ;;  %2601 = vmatpush.msrb.mxu3 %v3569_v31  ;;  %v1980_v63 = vadd.f32 %v1979_v9, %v1957_v39  ;;  %v3558_v20 = vld [vmem:[%s6833_s2 + $0x19e8] sm:$0xff]  ;;  %v1630_v55 = vmax.f32 %v840_v22, %v5818_v42  ;;  %v3496_v42 = vld [vmem:[%s6833_s2 + $0x17f8] sm:$0xff] }
 0x232   : > { %2749 = vmatpush.msrb.mxu1 %v3564_v11  ;;  %2693 = vmatpush.msra.mxu2 %v3442_v4  ;;  %v3594_v11 = vld [vmem:[%s6833_s2 + $0x1b08] sm:$0xff]  ;;  %v820_v4 = vadd.f32 %v5180_v19, %v797_v8  ;;  %v3592_v19 = vld [vmem:[%s6833_s2 + $0x1af8] sm:$0xff] }
 0x233   : > { %2727 = vmatpush.msra.mxu0 %v3530_v26  ;;  %2602 = vmatpush.msrb.mxu3 %v3567_v5  ;;  %v2003_v53 = vadd.f32 %v2002_v40, %v1980_v63  ;;  %v3554_v39 = vld [vmem:[%s6833_s2 + $0x19c8] sm:$0xff]  ;;  %v3520_v1 = vld [vmem:[%s6833_s2 + $0x18b8] sm:$0xff] }
 0x234   : > { %2750 = vmatpush.msrb.mxu1 %v3562_v54  ;;  %2603 = vmatmul.f32.vlgmr.msrb.gmra.mxu3 %v4198_v49  ;;  %v3494_v26 = vld [vmem:[%s6833_s2 + $0x17e8] sm:$0xff]  ;;  %v843_v5 = vadd.f32 %v5271_v7, %v820_v4  ;;  %v3552_v9 = vld [vmem:[%s6833_s2 + $0x19b8] sm:$0xff] }
 0x235   : > { %2694 = vmatpush.msra.mxu2 %v3440_v56  ;;  %2702 = vmatpush.msra.mxu3 %v3502_v46  ;;  %v2026_v34 = vadd.f32 %v2025_v57, %v2003_v53  ;;  %v3590_v54 = vld [vmem:[%s6833_s2 + $0x1ae8] sm:$0xff]  ;;  %v3492_v63 = vld [vmem:[%s6833_s2 + $0x17d8] sm:$0xff] }
 0x236   : > { %2728 = vmatpush.msra.mxu0 %v3528_v13  ;;  %2695 = vmatmul.f32.vlgmr.msra.gmra.mxu2 %v4093_v6  ;;  %v3498_v6 = vld [vmem:[%s6833_s2 + $0x1808] sm:$0xff]  ;;  %v3588_v56 = vld [vmem:[%s6833_s2 + $0x1ad8] sm:$0xff]  ;;  %v1632_v46 = vmax.f32 %v843_v5, %v5882_v50 }
 0x237   : > { %2751 = vmatpush.msrb.mxu1 %v3560_v18  ;;  %2771 = vmatpush.msrb.mxu2 %v3598_v52  ;;  %v2045_v36 = vpop.f32.mrf.mxu3  ;;  %v3518_v7 = vld [vmem:[%s6833_s2 + $0x18a8] sm:$0xff]  ;;  %v3548_v53 = vld [vmem:[%s6833_s2 + $0x1998] sm:$0xff] }
 0x238   : > { %2629 = vmatmul.f32.gmra.mxu0 %v4292_v28  ;;  %2703 = vmatpush.msra.mxu3 %v3500_v30  ;;  %v2046_v31 = vadd.f32 %v2045_v36, %v6483_v48  ;;  %v3490_v13 = vld [vmem:[%s6833_s2 + $0x17c8] sm:$0xff]  ;;  %v3488_v52 = vld [vmem:[%s6833_s2 + $0x17b8] sm:$0xff] }
 0x239   : > { %2729 = vmatpush.msra.mxu0 %v3526_v59  ;;  %2675 = vmatmul.f32.gmra.mxu1 %v4125_v21  ;;  %v3522_v21 = vld [vmem:[%s6833_s2 + $0x18c8] sm:$0xff]  ;;  %v3512_v8 = vld [vmem:[%s6833_s2 + $0x1878] sm:$0xff] }
 0x23a   : > { %2752 = vmatpush.msrb.mxu1 %v3558_v20  ;;  %2772 = vmatpush.msrb.mxu2 %v3596_v14  ;;  %v6583_v48 = vmax.f32 %v1630_v55, %v2046_v31  ;;  %v3586_v50 = vld [vmem:[%s6833_s2 + $0x1ac8] sm:$0xff]  ;;  %v3544_v59 = vld [vmem:[%s6833_s2 + $0x1978] sm:$0xff] }
 0x23b   : > { %2704 = vmatpush.msra.mxu3 %v3498_v6  ;;  %2730 = vmatpush.msra.mxu0 %v3524_v0  ;;  %v3514_v57 = vld [vmem:[%s6833_s2 + $0x1888] sm:$0xff]  ;;  %v3484_v14 = vld [vmem:[%s6833_s2 + $0x1798] sm:$0xff] }
 0x23c   : > { %2753 = vmatpush.msrb.mxu1 %v3556_v41  ;;  %2773 = vmatpush.msrb.mxu2 %v3594_v11  ;;  %v3546_v30 = vld [vmem:[%s6833_s2 + $0x1988] sm:$0xff]  ;;  %v3580_v0 = vld [vmem:[%s6833_s2 + $0x1a98] sm:$0xff]  ;;  %v2091_v41 = vpop.f32.mrf.mxu0 }
 0x23d   : > { %2705 = vmatpush.msra.mxu3 %v3496_v42  ;;  %2731 = vmatpush.msra.mxu0 %v3522_v21  ;;  %v3486_v22 = vld [vmem:[%s6833_s2 + $0x17a8] sm:$0xff]  ;;  %v3508_v31 = vld [vmem:[%s6833_s2 + $0x1858] sm:$0xff] }
 0x23e   : > { %2754 = vmatpush.msrb.mxu1 %v3554_v39  ;;  %2774 = vmatpush.msrb.mxu2 %v3592_v19  ;;  %v3582_v20 = vld [vmem:[%s6833_s2 + $0x1aa8] sm:$0xff]  ;;  %v3540_v4 = vld [vmem:[%s6833_s2 + $0x1958] sm:$0xff] }
 0x23f   : > { %2606 = vmatmul.f32.gmra.mxu3 %v4260_v10  ;;  %2732 = vmatpush.msra.mxu0 %v3520_v1  ;;  %v2048_v33 = vpop.f32.mrf.mxu3  ;;  %v3510_v36 = vld [vmem:[%s6833_s2 + $0x1868] sm:$0xff]  ;;  %v3480_v39 = vld [vmem:[%s6833_s2 + $0x1778] sm:$0xff]  ;;  %v2114_v1 = vpop.f32.mrf.mxu1 }
 0x240   : > { %2706 = vmatpush.msra.mxu3 %v3494_v26  ;;  %2698 = vmatmul.f32.gmra.mxu2 %v4138_v25  ;;  %v2049_v40 = vadd.f32 %v2048_v33, %v2026_v34  ;;  %v3516_v25 = vld [vmem:[%s6833_s2 + $0x1898] sm:$0xff]  ;;  %v3542_v6 = vld [vmem:[%s6833_s2 + $0x1968] sm:$0xff] }
 0x241   : > { %2755 = vmatpush.msrb.mxu1 %v3552_v9  ;;  %2775 = vmatpush.msrb.mxu2 %v3590_v54  ;;  %v3584_v34 = vld [vmem:[%s6833_s2 + $0x1ab8] sm:$0xff]  ;;  %v3482_v55 = vld [vmem:[%s6833_s2 + $0x1788] sm:$0xff] }
 0x242   : > { %2707 = vmatpush.msra.mxu3 %v3492_v63  ;;  %2733 = vmatpush.msra.mxu0 %v3518_v7  ;;  %v6631_v18 = vmax.f32 %v1632_v46, %v2049_v40  ;;  %v3578_v42 = vld [vmem:[%s6833_s2 + $0x1a88] sm:$0xff]  ;;  %v3576_v5 = vld [vmem:[%s6833_s2 + $0x1a78] sm:$0xff] }
 0x243   : > { %2756 = vmatpush.msrb.mxu1 %v3550_v35  ;;  %2776 = vmatpush.msrb.mxu2 %v3588_v56  ;;  %v3506_v19 = vld [vmem:[%s6833_s2 + $0x1848] sm:$0xff]  ;;  %v3504_v63 = vld [vmem:[%s6833_s2 + $0x1838] sm:$0xff] }
 0x244   : > { %2708 = vmatpush.msra.mxu3 %v3490_v13  ;;  %2734 = vmatpush.msra.mxu0 %v3516_v25  ;;  %v3538_v26 = vld [vmem:[%s6833_s2 + $0x1948] sm:$0xff]  ;;  %v3536_v33 = vld [vmem:[%s6833_s2 + $0x1938] sm:$0xff] }
 0x245   : > { %2757 = vmatpush.msrb.mxu1 %v3548_v53  ;;  %2777 = vmatpush.msrb.mxu2 %v3586_v50  ;;  %v3478_v54 = vld [vmem:[%s6833_s2 + $0x1768] sm:$0xff]  ;;  %v3476_v46 = vld [vmem:[%s6833_s2 + $0x1758] sm:$0xff] }
 0x246   : > { %2709 = vmatpush.msra.mxu3 %v3488_v52  ;;  %2735 = vmatpush.msra.mxu0 %v3514_v57  ;;  %v3574_v56 = vld [vmem:[%s6833_s2 + $0x1a68] sm:$0xff]  ;;  %v3632_v40 = vld [vmem:[%s6833_s2 + $0x1c38] sm:$0xf]  ;;  %v2094_v50 = vpop.f32.mrf.mxu0 }
 0x247   : > { %2758 = vmatpush.msrb.mxu1 %v3546_v30  ;;  %2778 = vmatpush.msrb.mxu2 %v3584_v34  ;;  %v3572_v13 = vld [vmem:[%s6833_s2 + $0x1a58] sm:$0xff]  ;;  %v3474_v25 = vld [vmem:[%s6833_s2 + $0x1748] sm:$0xff]  ;;  %v2117_v34 = vpop.f32.mrf.mxu1 }
 0x248   : > { %2710 = vmatpush.msra.mxu3 %v3486_v22  ;;  %2736 = vmatpush.msra.mxu0 %v3512_v8  ;;  %v3570_v53 = vld [vmem:[%s6833_s2 + $0x1a48] sm:$0xff]  ;;  %v3568_v30 = vld [vmem:[%s6833_s2 + $0x1a38] sm:$0xff] }
 0x249   : > { %2759 = vmatpush.msrb.mxu1 %v3544_v59  ;;  %2779 = vmatpush.msrb.mxu2 %v3582_v20  ;;  %v2068_v11 = vpop.f32.mrf.mxu3  ;;  %v2137_v7 = vpop.f32.mrf.mxu2  ;;  %v3628_v8 = vld [vmem:[%s6833_s2 + $0x1c18] sm:$0xff] }
 0x24a   : > { %2711 = vmatpush.msra.mxu3 %v3484_v14  ;;  %2737 = vmatpush.msra.mxu0 %v3510_v36  ;;  %v2092_v21 = vadd.f32 %v2091_v41, %v2068_v11  ;;  %v3626_v14 = vld [vmem:[%s6833_s2 + $0x1c08] sm:$0xff]  ;;  %v886_v36 = vadd.f32 %v5364_v2, %v5336_v47  ;;  %v6840_v11 = vld [vmem:[#allocation5_spill] sm:$0xff] }
 0x24b   : > { %2760 = vmatpush.msrb.mxu1 %v3542_v6  ;;  %2780 = vmatpush.msrb.mxu2 %v3580_v0  ;;  %v3618_v47 = vld [vmem:[%s6833_s2 + $0x1bc8] sm:$0xff]  ;;  %v3612_v6 = vld [vmem:[%s6833_s2 + $0x1b98] sm:$0xff] }
 0x24c   : > { %2712 = vmatpush.msra.mxu3 %v3482_v55  ;;  %2738 = vmatpush.msra.mxu0 %v3508_v31  ;;  %v2115_v9 = vadd.f32 %v2114_v1, %v2092_v21 }
 0x24d   : > { %2761 = vmatpush.msrb.mxu1 %v3540_v4  ;;  %2781 = vmatpush.msrb.mxu2 %v3578_v42  ;;  %v3602_v42 = vld [vmem:[%s6833_s2 + $0x1b48] sm:$0xff] }
 0x24e   : > { %2713 = vmatpush.msra.mxu3 %v3480_v39  ;;  %2739 = vmatpush.msra.mxu0 %v3506_v19  ;;  %v6702_v35 = vadd.f32 %v2137_v7, %v2115_v9 }
 0x24f   : > { %2762 = vmatpush.msrb.mxu1 %v3538_v26  ;;  %2782 = vmatpush.msrb.mxu2 %v3576_v5  ;;  %v6842_v5 = vld [vmem:[#allocation6_spill] sm:$0xff] }
 0x250   : > { %2714 = vmatpush.msra.mxu3 %v3478_v54  ;;  %2740 = vmatpush.msra.mxu0 %v3504_v63 }
 0x251   : > { %2741 = vmatmul.f32.vlgmr.msra.gmra.mxu0 %v4117_v16  ;;  %2763 = vmatpush.msrb.mxu1 %v3536_v33  ;;  %v3472_v16 = vld [vmem:[%s6833_s2 + $0x1738] sm:$0xff] }
 0x252   : > { %2783 = vmatpush.msrb.mxu2 %v3574_v56  ;;  %2715 = vmatpush.msra.mxu3 %v3476_v46 }
 0x253   : > { %2764 = vmatmul.f32.vlgmr.msrb.gmra.mxu1 %v4185_v45  ;;  %3636 = vmatpush.msk.msrb.mxu0 %vm654_vm2, %v3632_v40  ;;  %v2071_v52 = vpop.f32.mrf.mxu3  ;;  %v3630_v45 = vld [vmem:[%s6833_s2 + $0x1c28] sm:$0xff] }
 0x254   : > { %2784 = vmatpush.msrb.mxu2 %v3572_v13  ;;  %2716 = vmatpush.msra.mxu3 %v3474_v25  ;;  %v2095_v57 = vadd.f32 %v2094_v50, %v2071_v52  ;;  %v2140_v59 = vpop.f32.mrf.mxu2 }
 0x256   : > { %2785 = vmatpush.msrb.mxu2 %v3570_v53  ;;  %2717 = vmatpush.msra.mxu3 %v3472_v16  ;;  %v2118_v22 = vadd.f32 %v2117_v34, %v2095_v57  ;;  %v6844_v53 = vld [vmem:[#allocation3_spill] sm:$0xff] }
 0x257   : > { %2718 = vmatmul.f32.vlgmr.msra.gmra.mxu3 %v4115_v15  ;;  %v3624_v15 = vld [vmem:[%s6833_s2 + $0x1bf8] sm:$0xff] }
 0x258   : > { %2786 = vmatpush.msrb.mxu2 %v3568_v30  ;;  %2794 = vmatpush.msrb.mxu3 %v3630_v45  ;;  %v2141_v20 = vadd.f32 %v2140_v59, %v2118_v22 }
 0x259   : > { %2787 = vmatmul.f32.vlgmr.msrb.gmra.mxu2 %v4198_v49  ;;  %2744 = vmatmul.f32.gmra.mxu0 %v4171_v38  ;;  %v3622_v49 = vld [vmem:[%s6833_s2 + $0x1be8] sm:$0xff]  ;;  %v3620_v38 = vld [vmem:[%s6833_s2 + $0x1bd8] sm:$0xff] }
 0x25a   : > { %2795 = vmatpush.msrb.mxu3 %v3628_v8 }
 0x25b   : > { %2767 = vmatmul.f32.gmra.mxu1 %v4284_v24  ;;  %v909_v24 = vadd.f32 %v5328_v43, %v886_v36  ;;  %v3614_v43 = vld [vmem:[%s6833_s2 + $0x1ba8] sm:$0xff] }
 0x25c   : > { %2796 = vmatpush.msrb.mxu3 %v3626_v14 }
 0x25d   : > { %v932_v2 = vadd.f32 %v5240_v51, %v909_v24  ;;  %v3610_v51 = vld [vmem:[%s6833_s2 + $0x1b88] sm:$0xff] }
 0x25e   : > { %2797 = vmatpush.msrb.mxu3 %v3624_v15  ;;  %v2229_v26 = vpop.f32.mrf.mxu2 }
 0x25f   : > { %2721 = vmatmul.f32.gmra.mxu3 %v4169_v37  ;;  %v3616_v37 = vld [vmem:[%s6833_s2 + $0x1bb8] sm:$0xff] }
 0x260   : > { %2798 = vmatpush.msrb.mxu3 %v3622_v49 }
 0x261   : > { %2790 = vmatmul.f32.gmra.mxu2 %v4260_v10  ;;  %3637 = vmatmul.msk.f32.vlgmr.msrb.gmra.mxu0 %vm647_vm3, %v4231_v62  ;;  %v889_v62 = vadd.f32 %v5416_v44, %v5400_v32  ;;  %v955_v10 = vadd.f32 %v5454_v12, %v932_v2  ;;  %v3608_v32 = vld [vmem:[%s6833_s2 + $0x1b78] sm:$0xff]  ;;  %v3606_v44 = vld [vmem:[%s6833_s2 + $0x1b68] sm:$0xff]  ;;  %v2183_v41 = vpop.f32.mrf.mxu0  ;;  %v2206_v39 = vpop.f32.mrf.mxu1 }
 0x262   : > { %2799 = vmatpush.msrb.mxu3 %v3620_v38 }
 0x263   : > { %v912_v0 = vadd.f32 %v5392_v23, %v889_v62  ;;  %v978_v55 = vadd.f32 %v5462_v17, %v955_v10  ;;  %v3604_v23 = vld [vmem:[%s6833_s2 + $0x1b58] sm:$0xff] }
 0x264   : > { %2800 = vmatpush.msrb.mxu3 %v3618_v47 }
 0x265   : > { %v935_v12 = vadd.f32 %v5305_v27, %v912_v0  ;;  %v1001_v31 = vadd.f32 %v5445_v3, %v978_v55  ;;  %v6841_v27 = vld [vmem:[#allocation2_spill] sm:$0xff]  ;;  %v3600_v3 = vld [vmem:[%s6833_s2 + $0x1b38] sm:$0xff] }
 0x266   : > { %2801 = vmatpush.msrb.mxu3 %v3616_v37  ;;  %v2232_v52 = vpop.f32.mrf.mxu2 }
 0x267   : > { %v958_v4 = vadd.f32 %v6840_v11, %v935_v12  ;;  %v1024_v19 = vadd.f32 %v6841_v27, %v1001_v31 }
 0x268   : > { %2802 = vmatpush.msrb.mxu3 %v3614_v43 }
 0x269   : > { %3638 = vmatmul.msk.f32.gmra.mxu0 %vm647_vm3, %v4294_v29  ;;  %v981_v9 = vadd.f32 %v6842_v5, %v958_v4  ;;  %v1631_v54 = vmax.f32 %v1024_v19, %v6247_v60 }
 0x26a   : > { %2803 = vmatpush.msrb.mxu3 %v3612_v6 }
 0x26b   : > { %v2186_v40 = vpop.f32.mrf.mxu0 }
 0x26c   : > { %2804 = vmatpush.msrb.mxu3 %v3610_v51  ;;  %v2209_v25 = vpop.f32.mrf.mxu1 }
 0x26e   : > { %2805 = vmatpush.msrb.mxu3 %v3608_v32  ;;  %v2160_v29 = vpop.f32.mrf.mxu3 }
 0x26f   : > { %v2161_v17 = vadd.f32 %v2160_v29, %v6702_v35  ;;  %v6843_v35 = vld [vmem:[#allocation4_spill] sm:$0xff] }
 0x270   : > { %2806 = vmatpush.msrb.mxu3 %v3606_v44  ;;  %v1004_v56 = vadd.f32 %v6843_v35, %v981_v9 }
 0x271   : > { %v2184_v21 = vadd.f32 %v2183_v41, %v2161_v17 }
 0x272   : > { %2807 = vmatpush.msrb.mxu3 %v3604_v23  ;;  %v1027_v16 = vadd.f32 %v6844_v53, %v1004_v56 }
 0x273   : > { %v2207_v1 = vadd.f32 %v2206_v39, %v2184_v21 }
 0x274   : > { %2808 = vmatpush.msrb.mxu3 %v3602_v42  ;;  %v1633_v57 = vmax.f32 %v1027_v16, %v6307_v58 }
 0x275   : > { %v2230_v63 = vadd.f32 %v2229_v26, %v2207_v1 }
 0x276   : > { %2809 = vmatpush.msrb.mxu3 %v3600_v3 }
 0x277   : > { %2810 = vmatmul.f32.vlgmr.msrb.gmra.mxu3 %v4229_v61  ;;  %v6806_v7 = vmax.f32 %v1631_v54, %v2230_v63  ;;  %v2489_v61 = vpop.f32.mrf.mxu2 }
 0x278   : > { %v2163_v33 = vpop.f32.mrf.mxu3 }
 0x279   : > { %v2164_v46 = vadd.f32 %v2163_v33, %v2141_v20 }
 0x27b   : > { %v2187_v13 = vadd.f32 %v2186_v40, %v2164_v46 }
 0x27d   : > { %v2210_v50 = vadd.f32 %v2209_v25, %v2187_v13 }
 0x27f   : > { %2813 = vmatmul.f32.gmra.mxu3 %v4292_v28  ;;  %v2233_v60 = vadd.f32 %v2232_v52, %v2210_v50  ;;  %v2492_v59 = vpop.f32.mrf.mxu2 }
 0x281   : > { %v6812_v30 = vmax.f32 %v1633_v57, %v2233_v60 }
 0x285   : > { %v2535_v34 = vpop.f32.mrf.mxu0  ;;  %v2558_v22 = vpop.f32.mrf.mxu1 }
 0x290   : > { %v2538_v15 = vpop.f32.mrf.mxu0  ;;  %v2561_v36 = vpop.f32.mrf.mxu1 }
 0x292   : > { %v2512_v45 = vpop.f32.mrf.mxu3 }
 0x293   : > { %v2513_v8 = vadd.f32 %v2512_v45, %v2489_v61 }
 0x294   : > { %v2581_v38 = vpop.f32.mrf.mxu2 }
 0x295   : > { %v2536_v20 = vadd.f32 %v2535_v34, %v2513_v8 }
 0x297   : > { %v2559_v49 = vadd.f32 %v2558_v22, %v2536_v20 }
 0x299   : > { %v2582_v58 = vadd.f32 %v2581_v38, %v2559_v49 }
 0x29b   : > { %v2650_v62 = vpop.f32.mrf.mxu1 }
 0x29d   : > { %v2515_v14 = vpop.f32.mrf.mxu3 }
 0x29e   : > { %v2516_v24 = vadd.f32 %v2515_v14, %v2492_v59  ;;  %v2584_v0 = vpop.f32.mrf.mxu2 }
 0x2a0   : > { %v2539_v37 = vadd.f32 %v2538_v15, %v2516_v24 }
 0x2a2   : > { %v2562_v6 = vadd.f32 %v2561_v36, %v2539_v37 }
 0x2a3   : > { %v2653_v31 = vpop.f32.mrf.mxu1 }
 0x2a4   : > { %v2585_v55 = vadd.f32 %v2584_v0, %v2562_v6 }
 0x2aa   : > { %v2627_v2 = vpop.f32.mrf.mxu0 }
 0x2ac   : > { %v2673_v41 = vpop.f32.mrf.mxu1 }
 0x2b5   : > { %v2630_v29 = vpop.f32.mrf.mxu0 }
 0x2b6   : > { %v2676_v21 = vpop.f32.mrf.mxu1 }
 0x2b7   : > { %v2604_v47 = vpop.f32.mrf.mxu3 }
 0x2b8   : > { %v2605_v28 = vadd.f32 %v2604_v47, %v2582_v58 }
 0x2b9   : > { %v2696_v11 = vpop.f32.mrf.mxu2 }
 0x2ba   : > { %v2628_v43 = vadd.f32 %v2627_v2, %v2605_v28  ;;  %v2697_v39 = vadd.f32 %v2696_v11, %v2673_v41 }
 0x2bc   : > { %v2651_v10 = vadd.f32 %v2650_v62, %v2628_v43 }
 0x2be   : > { %v2840_v51 = vmax.f32 %v6583_v48, %v2651_v10 }
 0x2c0   : > { %2844 = vst [vmem:[%s6818_s6] sm:$0xff] %v2840_v51 }
 0x2c2   : > { %v2607_v32 = vpop.f32.mrf.mxu3 }
 0x2c3   : > { %v2608_v44 = vadd.f32 %v2607_v32, %v2585_v55  ;;  %v2699_v48 = vpop.f32.mrf.mxu2 }
 0x2c4   : > { %v2700_v5 = vadd.f32 %v2699_v48, %v2676_v21 }
 0x2c5   : > { %v2631_v12 = vadd.f32 %v2630_v29, %v2608_v44 }
 0x2c7   : > { %v2654_v23 = vadd.f32 %v2653_v31, %v2631_v12 }
 0x2c9   : > { %v2842_v17 = vmax.f32 %v6631_v18, %v2654_v23 }
 0x2cb   : > { %2847 = vst [vmem:[%s6818_s6 + $0x10] sm:$0xff] %v2842_v17 }
 0x2ce   : > { %v2742_v4 = vpop.f32.mrf.mxu0 }
 0x2d0   : > { %v2765_v1 = vpop.f32.mrf.mxu1 }
 0x2d6   : > { %v2745_v19 = vpop.f32.mrf.mxu0 }
 0x2d8   : > { %v2768_v40 = vpop.f32.mrf.mxu1 }
 0x2da   : > { %v2719_v42 = vpop.f32.mrf.mxu3 }
 0x2db   : > { %v2720_v27 = vadd.f32 %v2719_v42, %v2697_v39 }
 0x2dc   : > { %v2788_v63 = vpop.f32.mrf.mxu2 }
 0x2dd   : > { %v2743_v3 = vadd.f32 %v2742_v4, %v2720_v27 }
 0x2de   : > { %v2834_v35 = vpop.f32.mrf.mxu0 }
 0x2df   : > { %v2766_v9 = vadd.f32 %v2765_v1, %v2743_v3 }
 0x2e1   : > { %v2789_v33 = vadd.f32 %v2788_v63, %v2766_v9 }
 0x2e2   : > { %v2722_v26 = vpop.f32.mrf.mxu3 }
 0x2e3   : > { %v2723_v54 = vadd.f32 %v2722_v26, %v2700_v5 }
 0x2e4   : > { %v2791_v16 = vpop.f32.mrf.mxu2 }
 0x2e5   : > { %v2746_v18 = vadd.f32 %v2745_v19, %v2723_v54 }
 0x2e6   : > { %v2837_v60 = vpop.f32.mrf.mxu0 }
 0x2e7   : > { %v2769_v13 = vadd.f32 %v2768_v40, %v2746_v18 }
 0x2e9   : > { %v2792_v50 = vadd.f32 %v2791_v16, %v2769_v13 }
 0x2fa   : > { %v2811_v56 = vpop.f32.mrf.mxu3 }
 0x2fb   : > { %v2812_v46 = vadd.f32 %v2811_v56, %v2789_v33 }
 0x2fd   : > { %v2835_v25 = vadd.f32 %v2834_v35, %v2812_v46 }
 0x2ff   : > { %v2841_v53 = vmax.f32 %v6806_v7, %v2835_v25 }
 0x301   : > { %2846 = vst.msk [vmem:[%s6818_s6 + $0x8] sm:$0xff] %vm2845_vm4, %v2841_v53 }
 0x302   : > { %v2814_v52 = vpop.f32.mrf.mxu3 }
 0x303   : > { %v2815_v57 = vadd.f32 %v2814_v52, %v2792_v50 }
 0x305   : > { %v2838_v61 = vadd.f32 %v2837_v60, %v2815_v57 }
 0x307   : > { %v2843_v45 = vmax.f32 %v6812_v30, %v2838_v61 }
 0x309   : > { %2848 = vst.msk [vmem:[%s6818_s6 + $0x18] sm:$0xff] %vm2845_vm4, %v2843_v45 }
 0x30a PF: > { %s13_s12 = sadd.s32 1, %s3657_s12  }
 0x30b   : > { %p10_p4 = scmp.ge.s32.totalorder %s13_s12, 4  }
 0x30d   :  { %12 = sbr.rel (!%p10_p4) target bundleno = 1 (0x1), region = 65 }

// kernel: cnn_forward.4
= control target key start
LH: loop header
LB: loop body
LE: loop exit
PB: predicated region body
PF: predicated region fallthrough
CT: control target
= control target key end

     0   :  { %s1165_s12 = smov 0   ;;  %s1814_s0 = inlined_call_operand.vmem [shape: f32[2,400,225], index: 0, kind: input, shape index: {}]   ;;  %s1815_s1 = inlined_call_operand.vmem [shape: f32[32,400], index: 1, kind: input, shape index: {}]   ;;  %s1816_s2 = inlined_call_operand.vmem [shape: f32[4,225,49], index: 2, kind: input, shape index: {}]   ;;  %s1817_s3 = inlined_call_operand.vmem [shape: f32[2,32,49], index: 3, kind: output, shape index: {}]  }
   0x1 LB: > { %s989_s13 = sadd.s32 4294967295, %s1143_s12   ;;  %p993_p0 = scmp.ge.s32.totalorder %s1143_s12, 1  ;;  %s1143_s12 = sphi %s1165_s12, %s13_s12  }
   0x2   : > { %p137_p1 = scmp.lt.s32.totalorder %s1143_s12, 3 }
   0x4   : > { %p138_p2 = pnand %p993_p0, %p137_p1 }
   0x5   : > { %p161_p3 = scmp.lt.s32.totalorder (!%p138_p2), %s989_s13, 1 }
   0x6   : > { %141 = sbr.rel (%p138_p2) target bundleno = 409 (0x199), region = 32 }
   0xb   : > { %s1819_s13 = smov (!%p161_p3, %s989_s13), 1  ;;  %v1213_v29 = vld [vmem:[%s1815_s1 + $0x18] sm:$0xff]  ;;  %vm287_vm0 = vcmask 130048   ;;  %v1252_v56 = vld [vmem:[%s1815_s1 + $0x10] sm:$0xff]  ;;  %v1259_v59 = vld [vmem:[%s1815_s1] sm:$0xff]  ;;  %vm582_vm1 = vcmask 1040384  }
   0xc   : > { %s1128_s14 = smul.u32 800, %s1819_s13  ;;  %v1239_v49 = vld [vmem:[%s1815_s1 + $0x38] sm:$0xff]  ;;  %v1264_v60 = vld [vmem:[%s1815_s1 + $0x8] sm:$0xff]  ;;  %vm569_vm2 = vcmask 793600   ;;  %s1114_s6 = sshll.u32 %s1819_s13, 5  ;;  %vm929_vm3 = vcmask 400384  }
   0xe   : > { %s1179_s17 = scalar_lea.vmem %s1814_s0, %s1128_s14 }
   0xf   : > { %v281_v0 = vld [vmem:[%s1179_s17 + $0x2f0] sm:$0xff]  ;;  %v279_v3 = vld [vmem:[%s1179_s17 + $0x2e0] sm:$0xff]  ;;  %v218_v33 = vld [vmem:[%s1179_s17 + $0xf8] sm:$0xff] }
  0x10   : > { %v217_v1 = vld [vmem:[%s1179_s17 + $0xf0] sm:$0xff]  ;;  %358 = vmatpush.msra.mxu2 %v281_v0  ;;  %v215_v4 = vld [vmem:[%s1179_s17 + $0xe0] sm:$0xff]  ;;  %v216_v37 = vld [vmem:[%s1179_s17 + $0xe8] sm:$0xff] }
  0x11   : > { %v249_v2 = vld [vmem:[%s1179_s17 + $0x1f0] sm:$0xff]  ;;  %300 = vmatpush.msra.mxu0 %v217_v1  ;;  %v247_v5 = vld [vmem:[%s1179_s17 + $0x1e0] sm:$0xff]  ;;  %v214_v41 = vld [vmem:[%s1179_s17 + $0xd8] sm:$0xff] }
  0x12   : > { %329 = vmatpush.msra.mxu1 %v249_v2  ;;  %v277_v6 = vld [vmem:[%s1179_s17 + $0x2d0] sm:$0xff]  ;;  %359 = vmatpush.msra.mxu2 %v279_v3  ;;  %v275_v9 = vld [vmem:[%s1179_s17 + $0x2c0] sm:$0xff]  ;;  %v212_v45 = vld [vmem:[%s1179_s17 + $0xc8] sm:$0xff] }
  0x13   : > { %v213_v7 = vld [vmem:[%s1179_s17 + $0xd0] sm:$0xff]  ;;  %301 = vmatpush.msra.mxu0 %v215_v4  ;;  %v211_v10 = vld [vmem:[%s1179_s17 + $0xc0] sm:$0xff]  ;;  %v210_v53 = vld [vmem:[%s1179_s17 + $0xb8] sm:$0xff] }
  0x14   : > { %v245_v8 = vld [vmem:[%s1179_s17 + $0x1d0] sm:$0xff]  ;;  %330 = vmatpush.msra.mxu1 %v247_v5  ;;  %360 = vmatpush.msra.mxu2 %v277_v6  ;;  %v243_v11 = vld [vmem:[%s1179_s17 + $0x1c0] sm:$0xff]  ;;  %v286_v58 = vld [vmem:[%s1179_s17 + $0x318] sm:$0xff] }
  0x15   : > { %302 = vmatpush.msra.mxu0 %v213_v7  ;;  %v273_v12 = vld [vmem:[%s1179_s17 + $0x2b0] sm:$0xff]  ;;  %v271_v15 = vld [vmem:[%s1179_s17 + $0x2a0] sm:$0xff]  ;;  %v250_v61 = vld [vmem:[%s1179_s17 + $0x1f8] sm:$0xff] }
  0x16   : > { %331 = vmatpush.msra.mxu1 %v245_v8  ;;  %v209_v13 = vld [vmem:[%s1179_s17 + $0xb0] sm:$0xff]  ;;  %361 = vmatpush.msra.mxu2 %v275_v9  ;;  %v207_v16 = vld [vmem:[%s1179_s17 + $0xa0] sm:$0xff]  ;;  %v282_v62 = vld [vmem:[%s1179_s17 + $0x2f8] sm:$0xff] }
  0x17   : > { %303 = vmatpush.msra.mxu0 %v211_v10  ;;  %v241_v14 = vld [vmem:[%s1179_s17 + $0x1b0] sm:$0xff]  ;;  %v239_v17 = vld [vmem:[%s1179_s17 + $0x1a0] sm:$0xff]  ;;  %v208_v63 = vld [vmem:[%s1179_s17 + $0xa8] sm:$0xff] }
  0x18   : > { %332 = vmatpush.msra.mxu1 %v243_v11  ;;  %362 = vmatpush.msra.mxu2 %v273_v12  ;;  %v269_v18 = vld [vmem:[%s1179_s17 + $0x290] sm:$0xff]  ;;  %v267_v21 = vld [vmem:[%s1179_s17 + $0x280] sm:$0xff]  ;;  %v248_v0 = vld [vmem:[%s1179_s17 + $0x1e8] sm:$0xff] }
  0x19   : > { %304 = vmatpush.msra.mxu0 %v209_v13  ;;  %v205_v19 = vld [vmem:[%s1179_s17 + $0x90] sm:$0xff]  ;;  %v203_v22 = vld [vmem:[%s1179_s17 + $0x80] sm:$0xff]  ;;  %v1275_v1 = vld [vmem:[%s1815_s1 + $0x58] sm:$0xff] }
  0x1a   : > { %333 = vmatpush.msra.mxu1 %v241_v14  ;;  %363 = vmatpush.msra.mxu2 %v271_v15  ;;  %v237_v20 = vld [vmem:[%s1179_s17 + $0x190] sm:$0xff]  ;;  %v235_v24 = vld [vmem:[%s1179_s17 + $0x180] sm:$0xff]  ;;  %v280_v2 = vld [vmem:[%s1179_s17 + $0x2e8] sm:$0xff] }
  0x1b   : > { %305 = vmatpush.msra.mxu0 %v207_v16  ;;  %v285_v23 = vld [vmem:[%s1179_s17 + $0x310] sm:$0xff]  ;;  %v283_v25 = vld [vmem:[%s1179_s17 + $0x300] sm:$0xff]  ;;  %v206_v3 = vld [vmem:[%s1179_s17 + $0x98] sm:$0xff] }
  0x1c   : > { %334 = vmatpush.msra.mxu1 %v239_v17  ;;  %364 = vmatpush.msra.mxu2 %v269_v18  ;;  %v265_v26 = vld [vmem:[%s1179_s17 + $0x270] sm:$0xff]  ;;  %v263_v30 = vld [vmem:[%s1179_s17 + $0x260] sm:$0xff]  ;;  %v246_v4 = vld [vmem:[%s1179_s17 + $0x1d8] sm:$0xff] }
  0x1d   : > { %306 = vmatpush.msra.mxu0 %v205_v19  ;;  %v201_v27 = vld [vmem:[%s1179_s17 + $0x70] sm:$0xff]  ;;  %401 = vmatpush.msra.mxu3 %v285_v23  ;;  %v199_v31 = vld [vmem:[%s1179_s17 + $0x60] sm:$0xff]  ;;  %v284_v5 = vld [vmem:[%s1179_s17 + $0x308] sm:$0xff] }
  0x1e   : > { %335 = vmatpush.msra.mxu1 %v237_v20  ;;  %365 = vmatpush.msra.mxu2 %v267_v21  ;;  %v233_v28 = vld [vmem:[%s1179_s17 + $0x170] sm:$0xff]  ;;  %v231_v32 = vld [vmem:[%s1179_s17 + $0x160] sm:$0xff]  ;;  %v278_v6 = vld [vmem:[%s1179_s17 + $0x2d8] sm:$0xff] }
  0x1f   : > { %307 = vmatpush.msra.mxu0 %v203_v22  ;;  %402 = vmatpush.msra.mxu3 %v283_v25  ;;  %v261_v34 = vld [vmem:[%s1179_s17 + $0x250] sm:$0xff]  ;;  %v259_v38 = vld [vmem:[%s1179_s17 + $0x240] sm:$0xff]  ;;  %v204_v7 = vld [vmem:[%s1179_s17 + $0x88] sm:$0xff] }
  0x20   : > { %336 = vmatpush.msra.mxu1 %v235_v24  ;;  %366 = vmatpush.msra.mxu2 %v265_v26  ;;  %v197_v35 = vld [vmem:[%s1179_s17 + $0x50] sm:$0xff]  ;;  %v195_v39 = vld [vmem:[%s1179_s17 + $0x40] sm:$0xff]  ;;  %v244_v9 = vld [vmem:[%s1179_s17 + $0x1c8] sm:$0xff] }
  0x21   : > { %308 = vmatpush.msra.mxu0 %v201_v27  ;;  %997 = vmatmul.msk.f32.vlgmr.msra.gmra.mxu3 %vm287_vm0, %v1213_v29  ;;  %v229_v36 = vld [vmem:[%s1179_s17 + $0x150] sm:$0xff]  ;;  %v227_v40 = vld [vmem:[%s1179_s17 + $0x140] sm:$0xff]  ;;  %v276_v11 = vld [vmem:[%s1179_s17 + $0x2c8] sm:$0xff] }
  0x22   : > { %337 = vmatpush.msra.mxu1 %v233_v28  ;;  %367 = vmatpush.msra.mxu2 %v263_v30  ;;  %v257_v42 = vld [vmem:[%s1179_s17 + $0x230] sm:$0xff]  ;;  %v255_v46 = vld [vmem:[%s1179_s17 + $0x220] sm:$0xff]  ;;  %v1301_v12 = vld [vmem:[%s1815_s1 + $0x28] sm:$0xff] }
  0x23   : > { %309 = vmatpush.msra.mxu0 %v199_v31  ;;  %416 = vmatpush.msrb.mxu3 %v218_v33  ;;  %v193_v43 = vld [vmem:[%s1179_s17 + $0x30] sm:$0xff]  ;;  %v191_v47 = vld [vmem:[%s1179_s17 + $0x20] sm:$0xff]  ;;  %v242_v13 = vld [vmem:[%s1179_s17 + $0x1b8] sm:$0xff] }
  0x24   : > { %338 = vmatpush.msra.mxu1 %v231_v32  ;;  %368 = vmatpush.msra.mxu2 %v261_v34  ;;  %v225_v44 = vld [vmem:[%s1179_s17 + $0x130] sm:$0xff]  ;;  %v223_v48 = vld [vmem:[%s1179_s17 + $0x120] sm:$0xff]  ;;  %v202_v14 = vld [vmem:[%s1179_s17 + $0x78] sm:$0xff] }
  0x25   : > { %310 = vmatpush.msra.mxu0 %v197_v35  ;;  %417 = vmatpush.msrb.mxu3 %v216_v37  ;;  %v253_v50 = vld [vmem:[%s1179_s17 + $0x210] sm:$0xff]  ;;  %v251_v54 = vld [vmem:[%s1179_s17 + $0x200] sm:$0xff]  ;;  %v274_v15 = vld [vmem:[%s1179_s17 + $0x2b8] sm:$0xff] }
  0x26   : > { %339 = vmatpush.msra.mxu1 %v229_v36  ;;  %369 = vmatpush.msra.mxu2 %v259_v38  ;;  %v189_v51 = vld [vmem:[%s1179_s17 + $0x10] sm:$0xff]  ;;  %v187_v55 = vld [vmem:[%s1179_s17] sm:$0xff]  ;;  %v240_v16 = vld [vmem:[%s1179_s17 + $0x1a8] sm:$0xff] }
  0x27   : > { %311 = vmatpush.msra.mxu0 %v195_v39  ;;  %418 = vmatpush.msrb.mxu3 %v214_v41  ;;  %v221_v52 = vld [vmem:[%s1179_s17 + $0x110] sm:$0xff]  ;;  %v219_v57 = vld [vmem:[%s1179_s17 + $0x100] sm:$0xff]  ;;  %v1312_v17 = vld [vmem:[%s1815_s1 + $0x78] sm:$0xff] }
  0x28   : > { %340 = vmatpush.msra.mxu1 %v227_v40  ;;  %370 = vmatpush.msra.mxu2 %v257_v42  ;;  %v1289_v8 = vld [vmem:[%s1815_s1 + $0x30] sm:$0xff]  ;;  %v1295_v10 = vld [vmem:[%s1815_s1 + $0x20] sm:$0xff]  ;;  %v200_v18 = vld [vmem:[%s1179_s17 + $0x68] sm:$0xff] }
  0x29   : > { %312 = vmatpush.msra.mxu0 %v193_v43  ;;  %419 = vmatpush.msrb.mxu3 %v212_v45  ;;  %v272_v19 = vld [vmem:[%s1179_s17 + $0x2a8] sm:$0xff]  ;;  %v238_v20 = vld [vmem:[%s1179_s17 + $0x198] sm:$0xff]  ;;  %v1325_v23 = vld [vmem:[%s1815_s1 + $0x50] sm:$0xff] }
  0x2a   : > { %341 = vmatpush.msra.mxu1 %v225_v44  ;;  %371 = vmatpush.msra.mxu2 %v255_v46  ;;  %v198_v21 = vld [vmem:[%s1179_s17 + $0x58] sm:$0xff]  ;;  %v236_v24 = vld [vmem:[%s1179_s17 + $0x188] sm:$0xff]  ;;  %v1331_v25 = vld [vmem:[%s1815_s1 + $0x40] sm:$0xff] }
  0x2b   : > { %313 = vmatpush.msra.mxu0 %v191_v47  ;;  %998 = vmatmul.msk.f32.gmra.mxu3 %vm287_vm0, %v1239_v49  ;;  %v270_v22 = vld [vmem:[%s1179_s17 + $0x298] sm:$0xff]  ;;  %v196_v26 = vld [vmem:[%s1179_s17 + $0x48] sm:$0xff]  ;;  %v1354_v38 = vld [vmem:[%s1815_s1 + $0x70] sm:$0xff] }
  0x2c   : > { %342 = vmatpush.msra.mxu1 %v223_v48  ;;  %372 = vmatpush.msra.mxu2 %v253_v50  ;;  %v1337_v27 = vld [vmem:[%s1815_s1 + $0x48] sm:$0xff]  ;;  %v234_v28 = vld [vmem:[%s1179_s17 + $0x178] sm:$0xff]  ;;  %v1361_v41 = vld [vmem:[%s1815_s1 + $0x60] sm:$0xff] }
  0x2d   : > { %314 = vmatpush.msra.mxu0 %v189_v51  ;;  %420 = vmatpush.msrb.mxu3 %v210_v53  ;;  %v268_v30 = vld [vmem:[%s1179_s17 + $0x288] sm:$0xff]  ;;  %v194_v31 = vld [vmem:[%s1179_s17 + $0x38] sm:$0xff] }
  0x2e   : > { %343 = vmatpush.msra.mxu1 %v221_v52  ;;  %373 = vmatpush.msra.mxu2 %v251_v54  ;;  %v232_v32 = vld [vmem:[%s1179_s17 + $0x168] sm:$0xff]  ;;  %v266_v33 = vld [vmem:[%s1179_s17 + $0x278] sm:$0xff]  ;;  %v554_v52 = vld [vmem:[%s1816_s2 + $0x70] sm:$0xff] }
  0x2f   : > { %315 = vmatpush.msra.mxu0 %v187_v55  ;;  %374 = vmatmul.f32.vlgmr.msra.gmra.mxu2 %v1252_v56  ;;  %v192_v34 = vld [vmem:[%s1179_s17 + $0x28] sm:$0xff]  ;;  %v230_v35 = vld [vmem:[%s1179_s17 + $0x158] sm:$0xff] }
  0x30   : > { %344 = vmatpush.msra.mxu1 %v219_v57  ;;  %517 = vmatpush.msrb.mxu2 %v286_v58  ;;  %v264_v36 = vld [vmem:[%s1179_s17 + $0x268] sm:$0xff]  ;;  %v190_v37 = vld [vmem:[%s1179_s17 + $0x18] sm:$0xff]  ;;  %v1025_v58 = vld [vmem:[%s1816_s2 + $0x160] sm:$0xff] }
  0x31   : > { %316 = vmatmul.f32.vlgmr.msra.gmra.mxu0 %v1259_v59  ;;  %345 = vmatmul.f32.vlgmr.msra.gmra.mxu1 %v1264_v60  ;;  %v228_v39 = vld [vmem:[%s1179_s17 + $0x148] sm:$0xff]  ;;  %v262_v40 = vld [vmem:[%s1179_s17 + $0x258] sm:$0xff] }
  0x32   : > { %445 = vmatpush.msrb.mxu0 %v250_v61  ;;  %474 = vmatpush.msrb.mxu1 %v282_v62  ;;  %v1366_v42 = vld [vmem:[%s1815_s1 + $0x68] sm:$0xff]  ;;  %v226_v44 = vld [vmem:[%s1179_s17 + $0x138] sm:$0xff]  ;;  %v1023_v61 = vld [vmem:[%s1816_s2 + $0x150] sm:$0xff] }
  0x33   : > { %421 = vmatpush.msrb.mxu3 %v208_v63  ;;  %518 = vmatpush.msrb.mxu2 %v284_v5  ;;  %v188_v43 = vld [vmem:[%s1179_s17 + $0x8] sm:$0xff]  ;;  %v258_v47 = vld [vmem:[%s1179_s17 + $0x238] sm:$0xff]  ;;  %v550_v62 = vld [vmem:[%s1816_s2 + $0x50] sm:$0xff] }
  0x34   : > { %446 = vmatpush.msrb.mxu0 %v248_v0  ;;  %999 = vmatmul.msk.f32.gmra.mxu3 %vm287_vm0, %v1275_v1  ;;  %v260_v45 = vld [vmem:[%s1179_s17 + $0x248] sm:$0xff]  ;;  %v222_v48 = vld [vmem:[%s1179_s17 + $0x118] sm:$0xff]  ;;  %v1021_v0 = vld [vmem:[%s1816_s2 + $0x140] sm:$0xff] }
  0x35   : > { %475 = vmatpush.msrb.mxu1 %v280_v2  ;;  %422 = vmatpush.msrb.mxu3 %v206_v3  ;;  %v224_v46 = vld [vmem:[%s1179_s17 + $0x128] sm:$0xff]  ;;  %v555_v51 = vld [vmem:[%s1816_s2 + $0x78] sm:$0xff]  ;;  %v546_v5 = vld [vmem:[%s1816_s2 + $0x30] sm:$0xff] }
  0x36   : > { %447 = vmatpush.msrb.mxu0 %v246_v4  ;;  %v256_v50 = vld [vmem:[%s1179_s17 + $0x228] sm:$0xff]  ;;  %v254_v54 = vld [vmem:[%s1179_s17 + $0x218] sm:$0xff]  ;;  %v1019_v4 = vld [vmem:[%s1816_s2 + $0x130] sm:$0xff] }
  0x37   : > { %476 = vmatpush.msrb.mxu1 %v278_v6  ;;  %423 = vmatpush.msrb.mxu3 %v204_v7  ;;  %v220_v53 = vld [vmem:[%s1179_s17 + $0x108] sm:$0xff]  ;;  %v1020_v2 = vld [vmem:[%s1816_s2 + $0x138] sm:$0xff]  ;;  %v1017_v7 = vld [vmem:[%s1816_s2 + $0x120] sm:$0xff] }
  0x38   : > { %377 = vmatmul.f32.gmra.mxu2 %v1289_v8  ;;  %448 = vmatpush.msrb.mxu0 %v244_v9  ;;  %v553_v55 = vld [vmem:[%s1816_s2 + $0x68] sm:$0xff]  ;;  %v547_v3 = vld [vmem:[%s1816_s2 + $0x38] sm:$0xff]  ;;  %v1015_v9 = vld [vmem:[%s1816_s2 + $0x110] sm:$0xff] }
  0x39   : > { %319 = vmatmul.f32.gmra.mxu0 %v1295_v10  ;;  %477 = vmatpush.msrb.mxu1 %v276_v11  ;;  %v252_v57 = vld [vmem:[%s1179_s17 + $0x208] sm:$0xff]  ;;  %s1801_s17 = scalar_lea.vmem %s1817_s3, %s1114_s6 }
  0x3a   : > { %348 = vmatmul.f32.gmra.mxu1 %v1301_v12  ;;  %449 = vmatpush.msrb.mxu0 %v242_v13  ;;  %v549_v63 = vld [vmem:[%s1816_s2 + $0x48] sm:$0xff]  ;;  %v1013_v13 = vld [vmem:[%s1816_s2 + $0x100] sm:$0xff] }
  0x3b   : > { %424 = vmatpush.msrb.mxu3 %v202_v14  ;;  %478 = vmatpush.msrb.mxu1 %v274_v15  ;;  %v1018_v6 = vld [vmem:[%s1816_s2 + $0x128] sm:$0xff]  ;;  %v542_v14 = vld [vmem:[%s1816_s2 + $0x10] sm:$0xff]  ;;  %v1012_v15 = vld [vmem:[%s1816_s2 + $0xf8] sm:$0xff] }
  0x3c   : > { %450 = vmatpush.msrb.mxu0 %v240_v16  ;;  %1000 = vmatmul.msk.f32.gmra.mxu3 %vm287_vm0, %v1312_v17  ;;  %v1014_v11 = vld [vmem:[%s1816_s2 + $0x108] sm:$0xff] }
  0x3d   : > { %425 = vmatpush.msrb.mxu3 %v200_v18  ;;  %479 = vmatpush.msrb.mxu1 %v272_v19  ;;  %v541_v16 = vld [vmem:[%s1816_s2 + $0x8] sm:$0xff]  ;;  %v540_v19 = vld [vmem:[%s1816_s2] sm:$0xff] }
  0x3e   : > { %451 = vmatpush.msrb.mxu0 %v238_v20  ;;  %v1038_v18 = vld [vmem:[%s1816_s2 + $0x1c8] sm:$0x1] }
  0x3f   : > { %426 = vmatpush.msrb.mxu3 %v198_v21  ;;  %480 = vmatpush.msrb.mxu1 %v270_v22  ;;  %v1010_v20 = vld [vmem:[%s1816_s2 + $0xe8] sm:$0xff]  ;;  %v1093_v22 = vld [vmem:[%s1816_s2 + $0x330] sm:$0xff] }
  0x40   : > { %380 = vmatmul.f32.gmra.mxu2 %v1325_v23  ;;  %452 = vmatpush.msrb.mxu0 %v236_v24  ;;  %v1059_v21 = vld [vmem:[%s1816_s2 + $0x248] sm:$0xff] }
  0x41   : > { %322 = vmatmul.f32.gmra.mxu0 %v1331_v25  ;;  %427 = vmatpush.msrb.mxu3 %v196_v26  ;;  %v1092_v24 = vld [vmem:[%s1816_s2 + $0x328] sm:$0xff]  ;;  %v1057_v26 = vld [vmem:[%s1816_s2 + $0x238] sm:$0xff] }
  0x42   : > { %351 = vmatmul.f32.gmra.mxu1 %v1337_v27  ;;  %453 = vmatpush.msrb.mxu0 %v234_v28  ;;  %v1037_v28 = vld [vmem:[%s1816_s2 + $0x1c0] sm:$0xff] }
  0x43   : > { %481 = vmatpush.msrb.mxu1 %v268_v30  ;;  %428 = vmatpush.msrb.mxu3 %v194_v31  ;;  %v1036_v30 = vld [vmem:[%s1816_s2 + $0x1b8] sm:$0xff] }
  0x44   : > { %454 = vmatpush.msrb.mxu0 %v232_v32  ;;  %1039 = vmatpush.msk.msra.mxu2 %vm582_vm1, %v1038_v18  ;;  %v567_v31 = vld [vmem:[%s1816_s2 + $0xd8] sm:$0xff]  ;;  %v1056_v32 = vld [vmem:[%s1816_s2 + $0x230] sm:$0xff]  ;;  %v556_v18 = vld [vmem:[%s1816_s2 + $0x80] sm:$0xff] }
  0x45   : > { %482 = vmatpush.msrb.mxu1 %v266_v33  ;;  %429 = vmatpush.msrb.mxu3 %v192_v34  ;;  %v1090_v33 = vld [vmem:[%s1816_s2 + $0x318] sm:$0xff]  ;;  %v1035_v34 = vld [vmem:[%s1816_s2 + $0x1b0] sm:$0xff] }
  0x46   : > { %455 = vmatpush.msrb.mxu0 %v230_v35  ;;  %710 = vmatpush.msra.mxu2 %v1037_v28  ;;  %v566_v35 = vld [vmem:[%s1816_s2 + $0xd0] sm:$0xff] }
  0x47   : > { %483 = vmatpush.msrb.mxu1 %v264_v36  ;;  %430 = vmatpush.msrb.mxu3 %v190_v37  ;;  %v1055_v36 = vld [vmem:[%s1816_s2 + $0x228] sm:$0xff] }
  0x48   : > { %383 = vmatmul.f32.gmra.mxu2 %v1354_v38  ;;  %456 = vmatpush.msrb.mxu0 %v228_v39  ;;  %v1034_v37 = vld [vmem:[%s1816_s2 + $0x1a8] sm:$0xff] }
  0x49   : > { %484 = vmatpush.msrb.mxu1 %v262_v40  ;;  %325 = vmatmul.f32.gmra.mxu0 %v1361_v41  ;;  %v565_v39 = vld [vmem:[%s1816_s2 + $0xc8] sm:$0xff]  ;;  %v1054_v40 = vld [vmem:[%s1816_s2 + $0x220] sm:$0xff] }
  0x4a   : > { %354 = vmatmul.f32.gmra.mxu1 %v1366_v42  ;;  %431 = vmatpush.msrb.mxu3 %v188_v43  ;;  %v1053_v43 = vld [vmem:[%s1816_s2 + $0x218] sm:$0xff] }
  0x4b   : > { %457 = vmatpush.msrb.mxu0 %v226_v44  ;;  %485 = vmatpush.msrb.mxu1 %v260_v45  ;;  %v1087_v44 = vld [vmem:[%s1816_s2 + $0x300] sm:$0xff] }
  0x4c   : > { %432 = vmatmul.f32.vlgmr.msrb.gmra.mxu3 %v1259_v59  ;;  %v552_v59 = vld [vmem:[%s1816_s2 + $0x60] sm:$0xff]  ;;  %711 = vmatpush.msra.mxu2 %v1036_v30 }
  0x4d   : > { %458 = vmatpush.msrb.mxu0 %v224_v46  ;;  %486 = vmatpush.msrb.mxu1 %v258_v47  ;;  %v1033_v46 = vld [vmem:[%s1816_s2 + $0x1a0] sm:$0xff]  ;;  %v1032_v47 = vld [vmem:[%s1816_s2 + $0x198] sm:$0xff] }
  0x4e   : > { %586 = vmatpush.msra.mxu3 %v555_v51  ;;  %712 = vmatpush.msra.mxu2 %v1035_v34  ;;  %v1086_v51 = vld [vmem:[%s1816_s2 + $0x2f8] sm:$0xff]  ;;  %v1104_v34 = vld [vmem:[%s1816_s2 + $0x388] sm:$0xff] }
  0x4f   : > { %459 = vmatpush.msrb.mxu0 %v222_v48  ;;  %487 = vmatpush.msrb.mxu1 %v256_v50  ;;  %v563_v48 = vld [vmem:[%s1816_s2 + $0xb8] sm:$0xff]  ;;  %v1052_v50 = vld [vmem:[%s1816_s2 + $0x210] sm:$0xff] }
  0x50   : > { %1001 = vmatmul.msk.f32.vlgmr.msrb.gmra.mxu2 %vm287_vm0, %v1213_v29  ;;  %587 = vmatpush.msra.mxu3 %v554_v52  ;;  %v1024_v29 = vld [vmem:[%s1816_s2 + $0x158] sm:$0xff]  ;;  %v1031_v52 = vld [vmem:[%s1816_s2 + $0x190] sm:$0xff] }
  0x51   : > { %460 = vmatpush.msrb.mxu0 %v220_v53  ;;  %488 = vmatpush.msrb.mxu1 %v254_v54  ;;  %v562_v53 = vld [vmem:[%s1816_s2 + $0xb0] sm:$0xff]  ;;  %v1051_v54 = vld [vmem:[%s1816_s2 + $0x208] sm:$0xff] }
  0x52   : > { %461 = vmatmul.f32.vlgmr.msrb.gmra.mxu0 %v1264_v60  ;;  %588 = vmatpush.msra.mxu3 %v553_v55  ;;  %v551_v60 = vld [vmem:[%s1816_s2 + $0x58] sm:$0xff]  ;;  %v1085_v55 = vld [vmem:[%s1816_s2 + $0x2f0] sm:$0xff] }
  0x53   : > { %489 = vmatpush.msrb.mxu1 %v252_v57  ;;  %713 = vmatpush.msra.mxu2 %v1034_v37  ;;  %v561_v57 = vld [vmem:[%s1816_s2 + $0xa8] sm:$0xff] }
  0x54   : > { %435 = vmatmul.f32.gmra.mxu3 %v1295_v10  ;;  %490 = vmatmul.f32.vlgmr.msrb.gmra.mxu1 %v1252_v56  ;;  %v1022_v56 = vld [vmem:[%s1816_s2 + $0x148] sm:$0xff]  ;;  %v544_v10 = vld [vmem:[%s1816_s2 + $0x20] sm:$0xff] }
  0x55   : > { %677 = vmatpush.msra.mxu1 %v1025_v58  ;;  %589 = vmatpush.msra.mxu3 %v552_v59  ;;  %v1050_v58 = vld [vmem:[%s1816_s2 + $0x200] sm:$0xff]  ;;  %v1084_v59 = vld [vmem:[%s1816_s2 + $0x2e8] sm:$0xff] }
  0x56   : > { %714 = vmatpush.msra.mxu2 %v1033_v46 }
  0x57   : > { %678 = vmatpush.msra.mxu1 %v1024_v29  ;;  %590 = vmatpush.msra.mxu3 %v551_v60  ;;  %v1030_v60 = vld [vmem:[%s1816_s2 + $0x188] sm:$0xff] }
  0x58   : > { %1002 = vmatmul.msk.f32.gmra.mxu2 %vm287_vm0, %v1239_v49  ;;  %v548_v49 = vld [vmem:[%s1816_s2 + $0x40] sm:$0xff] }
  0x59   : > { %679 = vmatpush.msra.mxu1 %v1023_v61  ;;  %591 = vmatpush.msra.mxu3 %v550_v62  ;;  %v560_v61 = vld [vmem:[%s1816_s2 + $0xa0] sm:$0xff]  ;;  %v1049_v62 = vld [vmem:[%s1816_s2 + $0x1f8] sm:$0xff] }
  0x5a   : > { %464 = vmatmul.f32.gmra.mxu0 %v1301_v12  ;;  %v543_v12 = vld [vmem:[%s1816_s2 + $0x18] sm:$0xff]  ;;  %715 = vmatpush.msra.mxu2 %v1032_v47 }
  0x5b   : > { %680 = vmatpush.msra.mxu1 %v1022_v56  ;;  %592 = vmatpush.msra.mxu3 %v549_v63  ;;  %v1083_v63 = vld [vmem:[%s1816_s2 + $0x2e0] sm:$0xff] }
  0x5c   : > { %438 = vmatmul.f32.gmra.mxu3 %v1331_v25  ;;  %493 = vmatmul.f32.gmra.mxu1 %v1289_v8  ;;  %v545_v8 = vld [vmem:[%s1816_s2 + $0x28] sm:$0xff]  ;;  %v568_v25 = vld [vmem:[%s1816_s2 + $0xe0] sm:$0x1] }
  0x5d   : > { %681 = vmatpush.msra.mxu1 %v1021_v0  ;;  %593 = vmatpush.msra.mxu3 %v548_v49  ;;  %v1029_v0 = vld [vmem:[%s1816_s2 + $0x180] sm:$0xff]  ;;  %v559_v49 = vld [vmem:[%s1816_s2 + $0x98] sm:$0xff] }
  0x5e   : > { %1005 = vmatpush.msk.msra.mxu0 %vm582_vm1, %v568_v25  ;;  %716 = vmatpush.msra.mxu2 %v1031_v52  ;;  %v1078_v25 = vld [vmem:[%s1816_s2 + $0x2b8] sm:$0xff] }
  0x5f   : > { %682 = vmatpush.msra.mxu1 %v1020_v2  ;;  %594 = vmatpush.msra.mxu3 %v547_v3  ;;  %v1048_v2 = vld [vmem:[%s1816_s2 + $0x1f0] sm:$0xff] }
  0x60   : > { %1003 = vmatmul.msk.f32.gmra.mxu2 %vm287_vm0, %v1275_v1  ;;  %v1016_v1 = vld [vmem:[%s1816_s2 + $0x118] sm:$0xff]  ;;  %619 = vmatpush.msra.mxu0 %v567_v31 }
  0x61   : > { %683 = vmatpush.msra.mxu1 %v1019_v4  ;;  %595 = vmatpush.msra.mxu3 %v546_v5  ;;  %v1082_v4 = vld [vmem:[%s1816_s2 + $0x2d8] sm:$0xff] }
  0x62   : > { %467 = vmatmul.f32.gmra.mxu0 %v1337_v27  ;;  %v1091_v27 = vld [vmem:[%s1816_s2 + $0x320] sm:$0xff]  ;;  %717 = vmatpush.msra.mxu2 %v1030_v60 }
  0x63   : > { %684 = vmatpush.msra.mxu1 %v1018_v6  ;;  %596 = vmatpush.msra.mxu3 %v545_v8  ;;  %v1028_v6 = vld [vmem:[%s1816_s2 + $0x178] sm:$0xff] }
  0x64   : > { %441 = vmatmul.f32.gmra.mxu3 %v1361_v41  ;;  %496 = vmatmul.f32.gmra.mxu1 %v1325_v23  ;;  %v1058_v23 = vld [vmem:[%s1816_s2 + $0x240] sm:$0xff]  ;;  %v1088_v41 = vld [vmem:[%s1816_s2 + $0x308] sm:$0xff] }
  0x65   : > { %685 = vmatpush.msra.mxu1 %v1017_v7  ;;  %597 = vmatpush.msra.mxu3 %v544_v10  ;;  %v558_v7 = vld [vmem:[%s1816_s2 + $0x90] sm:$0xff] }
  0x66   : > { %620 = vmatpush.msra.mxu0 %v566_v35  ;;  %718 = vmatpush.msra.mxu2 %v1029_v0  ;;  %v1072_v35 = vld [vmem:[%s1816_s2 + $0x2b0] sm:$0x1] }
  0x67   : > { %686 = vmatpush.msra.mxu1 %v1016_v1  ;;  %598 = vmatpush.msra.mxu3 %v543_v12  ;;  %v1047_v1 = vld [vmem:[%s1816_s2 + $0x1e8] sm:$0xff]  ;;  %v1097_v0 = vld [vmem:[%s1816_s2 + $0x350] sm:$0xff] }
  0x68   : > { %1004 = vmatmul.msk.f32.gmra.mxu2 %vm287_vm0, %v1312_v17  ;;  %v1011_v17 = vld [vmem:[%s1816_s2 + $0xf0] sm:$0xff]  ;;  %621 = vmatpush.msra.mxu0 %v565_v39  ;;  %v557_v12 = vld [vmem:[%s1816_s2 + $0x88] sm:$0xff] }
  0x69   : > { %687 = vmatpush.msra.mxu1 %v1015_v9  ;;  %599 = vmatpush.msra.mxu3 %v542_v14  ;;  %v1081_v9 = vld [vmem:[%s1816_s2 + $0x2d0] sm:$0xff]  ;;  %v1080_v14 = vld [vmem:[%s1816_s2 + $0x2c8] sm:$0xff] }
  0x6a   : > { %470 = vmatmul.f32.gmra.mxu0 %v1366_v42  ;;  %v564_v42 = vld [vmem:[%s1816_s2 + $0xc0] sm:$0xff]  ;;  %719 = vmatpush.msra.mxu2 %v1028_v6  ;;  %v1071_v39 = vld [vmem:[%s1816_s2 + $0x2a8] sm:$0xff] }
  0x6b   : > { %688 = vmatpush.msra.mxu1 %v1014_v11  ;;  %600 = vmatpush.msra.mxu3 %v541_v16  ;;  %v1027_v11 = vld [vmem:[%s1816_s2 + $0x170] sm:$0xff] }
  0x6c   : > { %499 = vmatmul.f32.gmra.mxu1 %v1354_v38  ;;  %v1089_v38 = vld [vmem:[%s1816_s2 + $0x310] sm:$0xff]  ;;  %622 = vmatpush.msra.mxu0 %v564_v42  ;;  %v1070_v42 = vld [vmem:[%s1816_s2 + $0x2a0] sm:$0xff] }
  0x6d   : > { %689 = vmatpush.msra.mxu1 %v1013_v13  ;;  %601 = vmatpush.msra.mxu3 %v540_v19  ;;  %v1046_v13 = vld [vmem:[%s1816_s2 + $0x1e0] sm:$0xff]  ;;  %v1045_v19 = vld [vmem:[%s1816_s2 + $0x1d8] sm:$0xff] }
  0x6e   : > { %623 = vmatpush.msra.mxu0 %v563_v48  ;;  %720 = vmatpush.msra.mxu2 %v1027_v11 }
  0x6f   : > { %690 = vmatpush.msra.mxu1 %v1012_v15  ;;  %772 = vmatpush.msrb.mxu3 %v1059_v21  ;;  %v1079_v21 = vld [vmem:[%s1816_s2 + $0x2c0] sm:$0xff] }
  0x70   : > { %624 = vmatpush.msra.mxu0 %v562_v53 }
  0x71   : > { %691 = vmatpush.msra.mxu1 %v1011_v17  ;;  %773 = vmatpush.msrb.mxu3 %v1058_v23  ;;  %v1026_v17 = vld [vmem:[%s1816_s2 + $0x168] sm:$0xff]  ;;  %v1106_v23 = vld [vmem:[%s1816_s2 + $0x398] sm:$0x1] }
  0x72   : > { %625 = vmatpush.msra.mxu0 %v561_v57  ;;  %721 = vmatpush.msra.mxu2 %v1026_v17 }
  0x73   : > { %692 = vmatpush.msra.mxu1 %v1010_v20  ;;  %774 = vmatpush.msrb.mxu3 %v1057_v26 }
  0x74   : > { %626 = vmatpush.msra.mxu0 %v560_v61  ;;  %1107 = vmatpush.msk.msrb.mxu2 %vm582_vm1, %v1106_v23  ;;  %v1065_v61 = vld [vmem:[%s1816_s2 + $0x278] sm:$0xff] }
  0x75   : > { %867 = vmatpush.msrb.mxu1 %v1093_v22  ;;  %775 = vmatpush.msrb.mxu3 %v1056_v32 }
  0x76   : > { %627 = vmatpush.msra.mxu0 %v559_v49 }
  0x77   : > { %868 = vmatpush.msrb.mxu1 %v1092_v24  ;;  %776 = vmatpush.msrb.mxu3 %v1055_v36  ;;  %v1044_v24 = vld [vmem:[%s1816_s2 + $0x1d0] sm:$0xff] }
  0x78   : > { %628 = vmatpush.msra.mxu0 %v558_v7  ;;  %v1096_v7 = vld [vmem:[%s1816_s2 + $0x348] sm:$0xff] }
  0x79   : > { %869 = vmatpush.msrb.mxu1 %v1091_v27  ;;  %777 = vmatpush.msrb.mxu3 %v1054_v40 }
  0x7a   : > { %629 = vmatpush.msra.mxu0 %v557_v12  ;;  %v1061_v12 = vld [vmem:[%s1816_s2 + $0x258] sm:$0xff] }
  0x7b   : > { %870 = vmatpush.msrb.mxu1 %v1090_v33  ;;  %778 = vmatpush.msrb.mxu3 %v1053_v43  ;;  %v1105_v33 = vld [vmem:[%s1816_s2 + $0x390] sm:$0xff] }
  0x7c   : > { %630 = vmatpush.msra.mxu0 %v556_v18  ;;  %900 = vmatpush.msrb.mxu2 %v1105_v33  ;;  %v1060_v18 = vld [vmem:[%s1816_s2 + $0x250] sm:$0xff] }
  0x7d   : > { %871 = vmatpush.msrb.mxu1 %v1089_v38  ;;  %779 = vmatpush.msrb.mxu3 %v1052_v50  ;;  %v1103_v38 = vld [vmem:[%s1816_s2 + $0x380] sm:$0xff]  ;;  %v1101_v50 = vld [vmem:[%s1816_s2 + $0x370] sm:$0xff] }
  0x7e   : > { %1073 = vmatpush.msk.msrb.mxu0 %vm582_vm1, %v1072_v35  ;;  %901 = vmatpush.msrb.mxu2 %v1104_v34 }
  0x7f   : > { %872 = vmatpush.msrb.mxu1 %v1088_v41  ;;  %780 = vmatpush.msrb.mxu3 %v1051_v54  ;;  %v1102_v41 = vld [vmem:[%s1816_s2 + $0x378] sm:$0xff]  ;;  %v1100_v54 = vld [vmem:[%s1816_s2 + $0x368] sm:$0xff] }
  0x80   : > { %902 = vmatpush.msrb.mxu2 %v1103_v38  ;;  %805 = vmatpush.msrb.mxu0 %v1071_v39 }
  0x81   : > { %873 = vmatpush.msrb.mxu1 %v1087_v44  ;;  %781 = vmatpush.msrb.mxu3 %v1050_v58  ;;  %v1099_v58 = vld [vmem:[%s1816_s2 + $0x360] sm:$0xff] }
  0x82   : > { %903 = vmatpush.msrb.mxu2 %v1102_v41  ;;  %806 = vmatpush.msrb.mxu0 %v1070_v42 }
  0x83   : > { %874 = vmatpush.msrb.mxu1 %v1086_v51  ;;  %782 = vmatpush.msrb.mxu3 %v1049_v62  ;;  %v1068_v51 = vld [vmem:[%s1816_s2 + $0x290] sm:$0xff] }
  0x84   : > { %904 = vmatpush.msrb.mxu2 %v1101_v50 }
  0x85   : > { %875 = vmatpush.msrb.mxu1 %v1085_v55  ;;  %783 = vmatpush.msrb.mxu3 %v1048_v2  ;;  %v1067_v55 = vld [vmem:[%s1816_s2 + $0x288] sm:$0xff] }
  0x86   : > { %905 = vmatpush.msrb.mxu2 %v1100_v54 }
  0x87   : > { %876 = vmatpush.msrb.mxu1 %v1084_v59  ;;  %784 = vmatpush.msrb.mxu3 %v1047_v1  ;;  %v1066_v59 = vld [vmem:[%s1816_s2 + $0x280] sm:$0xff] }
  0x88   : > { %906 = vmatpush.msrb.mxu2 %v1099_v58 }
  0x89   : > { %877 = vmatpush.msrb.mxu1 %v1083_v63  ;;  %785 = vmatpush.msrb.mxu3 %v1046_v13  ;;  %v1064_v63 = vld [vmem:[%s1816_s2 + $0x270] sm:$0xff] }
  0x8b   : > { %878 = vmatpush.msrb.mxu1 %v1082_v4  ;;  %786 = vmatpush.msrb.mxu3 %v1045_v19 }
  0x8d   : > { %879 = vmatpush.msrb.mxu1 %v1081_v9  ;;  %787 = vmatpush.msrb.mxu3 %v1044_v24 }
  0x8f   : > { %880 = vmatpush.msrb.mxu1 %v1080_v14  ;;  %v1094_v14 = vld [vmem:[%s1816_s2 + $0x338] sm:$0xff] }
  0x91   : > { %881 = vmatpush.msrb.mxu1 %v1079_v21 }
  0x93   : > { %882 = vmatpush.msrb.mxu1 %v1078_v25 }
  0xa4   : > { %v1571_v45 = vpop.f32.mrf.mxu3 }
  0xae   : > { %v317_v29 = vpop.f32.mrf.mxu0  ;;  %v346_v56 = vpop.f32.mrf.mxu1 }
  0xaf   : > { %v407_v3 = vpop.f32.mrf.mxu3  ;;  %v347_v5 = vadd.f32 %v346_v56, %v317_v29  ;;  %v1098_v56 = vld [vmem:[%s1816_s2 + $0x358] sm:$0xff] }
  0xb0   : > { %907 = vmatpush.msrb.mxu2 %v1098_v56 }
  0xb2   : > { %v375_v8 = vpop.f32.mrf.mxu2  ;;  %908 = vmatpush.msrb.mxu2 %v1097_v0 }
  0xb3   : > { %v376_v10 = vadd.f32 %v375_v8, %v347_v5  ;;  %v1063_v5 = vld [vmem:[%s1816_s2 + $0x268] sm:$0xff]  ;;  %v1062_v8 = vld [vmem:[%s1816_s2 + $0x260] sm:$0xff] }
  0xb4   : > { %909 = vmatpush.msrb.mxu2 %v1096_v7 }
  0xb5   : > { %v405_v15 = vadd.f32 %v1571_v45, %v376_v10  ;;  %v1069_v45 = vld [vmem:[%s1816_s2 + $0x298] sm:$0xff]  ;;  %v1095_v10 = vld [vmem:[%s1816_s2 + $0x340] sm:$0xff] }
  0xb6   : > { %v320_v16 = vpop.f32.mrf.mxu0  ;;  %807 = vmatpush.msrb.mxu0 %v1069_v45  ;;  %910 = vmatpush.msrb.mxu2 %v1095_v10 }
  0xb7   : > { %v349_v20 = vpop.f32.mrf.mxu1  ;;  %v1670_v22 = vmax.f32 %v405_v15, 0.0  ;;  %v410_v28 = vpop.f32.mrf.mxu3 }
  0xb8   : > { %v350_v26 = vadd.f32 %v349_v20, %v320_v16  ;;  %808 = vmatpush.msrb.mxu0 %v1068_v51  ;;  %911 = vmatpush.msrb.mxu2 %v1094_v14 }
  0xb9   : > { %602 = vmatmul.f32.vlgmr.msra.gmra.mxu3 %v1670_v22  ;;  %693 = vmatmul.f32.vlgmr.msra.gmra.mxu1 %v1670_v22 }
  0xba   : > { %1115 = vmatpush.msk.msra.mxu3 %vm582_vm1, %v1072_v35  ;;  %809 = vmatpush.msrb.mxu0 %v1067_v55 }
  0xbb   : > { %v378_v27 = vpop.f32.mrf.mxu2 }
  0xbc   : > { %v379_v30 = vadd.f32 %v378_v27, %v350_v26  ;;  %1116 = vmatpush.msra.mxu3 %v1071_v39  ;;  %810 = vmatpush.msrb.mxu0 %v1066_v59 }
  0xbe   : > { %v408_v31 = vadd.f32 %v407_v3, %v379_v30  ;;  %v323_v32 = vpop.f32.mrf.mxu0  ;;  %1117 = vmatpush.msra.mxu3 %v1070_v42  ;;  %811 = vmatpush.msrb.mxu0 %v1065_v61 }
  0xbf   : > { %v352_v36 = vpop.f32.mrf.mxu1  ;;  %v413_v46 = vpop.f32.mrf.mxu3 }
  0xc0   : > { %v1694_v37 = vmax.f32 %v408_v31, 0.0  ;;  %v353_v40 = vadd.f32 %v352_v36, %v323_v32  ;;  %1118 = vmatpush.msra.mxu3 %v1069_v45  ;;  %812 = vmatpush.msrb.mxu0 %v1064_v63 }
  0xc2   : > { %605 = vmatmul.f32.gmra.mxu3 %v1694_v37  ;;  %696 = vmatmul.f32.gmra.mxu1 %v1694_v37 }
  0xc3   : > { %v381_v43 = vpop.f32.mrf.mxu2  ;;  %1119 = vmatpush.msra.mxu3 %v1068_v51  ;;  %813 = vmatpush.msrb.mxu0 %v1063_v5 }
  0xc4   : > { %v382_v44 = vadd.f32 %v381_v43, %v353_v40 }
  0xc5   : > { %1120 = vmatpush.msra.mxu3 %v1067_v55  ;;  %814 = vmatpush.msrb.mxu0 %v1062_v8 }
  0xc6   : > { %v411_v47 = vadd.f32 %v410_v28, %v382_v44  ;;  %v326_v48 = vpop.f32.mrf.mxu0 }
  0xc7   : > { %v355_v52 = vpop.f32.mrf.mxu1  ;;  %1121 = vmatpush.msra.mxu3 %v1066_v59  ;;  %815 = vmatpush.msrb.mxu0 %v1061_v12 }
  0xc8   : > { %v1720_v53 = vmax.f32 %v411_v47, 0.0  ;;  %v356_v57 = vadd.f32 %v355_v52, %v326_v48 }
  0xc9   : > { %1122 = vmatpush.msra.mxu3 %v1065_v61  ;;  %816 = vmatpush.msrb.mxu0 %v1060_v18 }
  0xca   : > { %608 = vmatmul.f32.gmra.mxu3 %v1720_v53  ;;  %699 = vmatmul.f32.gmra.mxu1 %v1720_v53 }
  0xcb   : > { %v384_v29 = vpop.f32.mrf.mxu2  ;;  %1123 = vmatpush.msra.mxu3 %v1064_v63 }
  0xcc   : > { %v385_v60 = vadd.f32 %v384_v29, %v356_v57 }
  0xcd   : > { %1124 = vmatpush.msra.mxu3 %v1063_v5 }
  0xce   : > { %v414_v62 = vadd.f32 %v413_v46, %v385_v60 }
  0xcf   : > { %v433_v49 = vpop.f32.mrf.mxu3  ;;  %v462_v2 = vpop.f32.mrf.mxu0  ;;  %1125 = vmatpush.msra.mxu3 %v1062_v8 }
  0xd0   : > { %v1748_v3 = vmax.f32 %v414_v62, 0.0  ;;  %v463_v4 = vadd.f32 %v462_v2, %v433_v49 }
  0xd1   : > { %v491_v6 = vpop.f32.mrf.mxu1  ;;  %1126 = vmatpush.msra.mxu3 %v1061_v12 }
  0xd2   : > { %v492_v1 = vadd.f32 %v491_v6, %v463_v4  ;;  %611 = vmatmul.f32.gmra.mxu3 %v1748_v3  ;;  %702 = vmatmul.f32.gmra.mxu1 %v1748_v3 }
  0xd3   : > { %v520_v9 = vpop.f32.mrf.mxu2  ;;  %1127 = vmatpush.msra.mxu3 %v1060_v18 }
  0xd4   : > { %v521_v11 = vadd.f32 %v520_v9, %v492_v1 }
  0xd6   : > { %v533_v13 = vmax.f32 %v521_v11, 0.0 }
  0xd7   : > { %v436_v15 = vpop.f32.mrf.mxu3  ;;  %v465_v16 = vpop.f32.mrf.mxu0 }
  0xd8   : > { %v466_v17 = vadd.f32 %v465_v16, %v436_v15  ;;  %1006 = vmatmul.msk.f32.vlgmr.msra.gmra.mxu0 %vm569_vm2, %v533_v13  ;;  %1040 = vmatmul.msk.f32.vlgmr.msra.gmra.mxu2 %vm569_vm2, %v533_v13 }
  0xd9   : > { %v494_v19 = vpop.f32.mrf.mxu1 }
  0xda   : > { %v495_v20 = vadd.f32 %v494_v19, %v466_v17  ;;  %788 = vmatmul.f32.vlgmr.msrb.gmra.mxu3 %v1670_v22  ;;  %883 = vmatmul.f32.vlgmr.msrb.gmra.mxu1 %v1670_v22 }
  0xdb   : > { %v523_v21 = vpop.f32.mrf.mxu2 }
  0xdc   : > { %v524_v23 = vadd.f32 %v523_v21, %v495_v20 }
  0xde   : > { %v535_v24 = vmax.f32 %v524_v23, 0.0 }
  0xdf   : > { %v439_v25 = vpop.f32.mrf.mxu3  ;;  %v468_v26 = vpop.f32.mrf.mxu0 }
  0xe0   : > { %v469_v27 = vadd.f32 %v468_v26, %v439_v25  ;;  %1007 = vmatmul.msk.f32.gmra.mxu0 %vm569_vm2, %v535_v24  ;;  %1041 = vmatmul.msk.f32.gmra.mxu2 %vm569_vm2, %v535_v24 }
  0xe1   : > { %v497_v28 = vpop.f32.mrf.mxu1 }
  0xe2   : > { %v498_v30 = vadd.f32 %v497_v28, %v469_v27  ;;  %791 = vmatmul.f32.gmra.mxu3 %v1694_v37  ;;  %886 = vmatmul.f32.gmra.mxu1 %v1694_v37 }
  0xe3   : > { %v526_v31 = vpop.f32.mrf.mxu2 }
  0xe4   : > { %v527_v22 = vadd.f32 %v526_v31, %v498_v30 }
  0xe6   : > { %v537_v32 = vmax.f32 %v527_v22, 0.0 }
  0xe7   : > { %v442_v33 = vpop.f32.mrf.mxu3  ;;  %v471_v34 = vpop.f32.mrf.mxu0 }
  0xe8   : > { %v472_v35 = vadd.f32 %v471_v34, %v442_v33  ;;  %1008 = vmatmul.msk.f32.gmra.mxu0 %vm569_vm2, %v537_v32  ;;  %1042 = vmatmul.msk.f32.gmra.mxu2 %vm569_vm2, %v537_v32 }
  0xe9   : > { %v500_v36 = vpop.f32.mrf.mxu1 }
  0xea   : > { %v501_v38 = vadd.f32 %v500_v36, %v472_v35  ;;  %794 = vmatmul.f32.gmra.mxu3 %v1720_v53  ;;  %889 = vmatmul.f32.gmra.mxu1 %v1720_v53 }
  0xeb   : > { %v529_v39 = vpop.f32.mrf.mxu2 }
  0xec   : > { %v530_v40 = vadd.f32 %v529_v39, %v501_v38 }
  0xee   : > { %v539_v41 = vmax.f32 %v530_v40, 0.0 }
  0xf0   : > { %1009 = vmatmul.msk.f32.gmra.mxu0 %vm569_vm2, %v539_v41  ;;  %1043 = vmatmul.msk.f32.gmra.mxu2 %vm569_vm2, %v539_v41 }
  0xf2   : > { %797 = vmatmul.f32.gmra.mxu3 %v1748_v3  ;;  %892 = vmatmul.f32.gmra.mxu1 %v1748_v3 }
  0xf8   : > { %1074 = vmatmul.msk.f32.vlgmr.msrb.gmra.mxu0 %vm569_vm2, %v533_v13  ;;  %1108 = vmatmul.msk.f32.vlgmr.msrb.gmra.mxu2 %vm569_vm2, %v533_v13 }
  0xfa   : > { %1075 = vmatmul.msk.f32.vlgmr.msra.gmra.mxu3 %vm569_vm2, %v535_v24 }
 0x100   : > { %1109 = vmatmul.msk.f32.gmra.mxu2 %vm569_vm2, %v535_v24 }
 0x102   : > { %1076 = vmatmul.msk.f32.gmra.mxu3 %vm569_vm2, %v537_v32 }
 0x108   : > { %1110 = vmatmul.msk.f32.gmra.mxu2 %vm569_vm2, %v537_v32 }
 0x10a   : > { %1077 = vmatmul.msk.f32.gmra.mxu3 %vm569_vm2, %v539_v41 }
 0x110   : > { %1111 = vmatmul.msk.f32.gmra.mxu2 %vm569_vm2, %v539_v41 }
 0x136   : > { %v694_v43 = vpop.f32.mrf.mxu1 }
 0x13c   : > { %v603_v37 = vpop.f32.mrf.mxu3 }
 0x13f   : > { %v697_v47 = vpop.f32.mrf.mxu1 }
 0x145   : > { %v606_v42 = vpop.f32.mrf.mxu3 }
 0x147   : > { %v700_v52 = vpop.f32.mrf.mxu1 }
 0x14d   : > { %v609_v44 = vpop.f32.mrf.mxu3 }
 0x14f   : > { %v703_v57 = vpop.f32.mrf.mxu1 }
 0x155   : > { %v612_v45 = vpop.f32.mrf.mxu3  ;;  %v632_v46 = vpop.f32.mrf.mxu0 }
 0x156   : > { %v633_v0 = vadd.f32 %v632_v46, %v603_v37 }
 0x157   : > { %v884_v61 = vpop.f32.mrf.mxu1 }
 0x15b   : > { %v723_v48 = vpop.f32.mrf.mxu2 }
 0x15c   : > { %v724_v63 = vadd.f32 %v723_v48, %v694_v43 }
 0x15d   : > { %v635_v50 = vpop.f32.mrf.mxu0  ;;  %v789_v51 = vpop.f32.mrf.mxu3 }
 0x15e   : > { %v735_v2 = vmax.f32 %v633_v0, %v724_v63  ;;  %v636_v9 = vadd.f32 %v635_v50, %v606_v42 }
 0x15f   : > { %v887_v8 = vpop.f32.mrf.mxu1 }
 0x163   : > { %v726_v53 = vpop.f32.mrf.mxu2 }
 0x164   : > { %v727_v7 = vadd.f32 %v726_v53, %v697_v47 }
 0x165   : > { %v638_v54 = vpop.f32.mrf.mxu0  ;;  %v792_v55 = vpop.f32.mrf.mxu3 }
 0x166   : > { %v736_v11 = vmax.f32 %v636_v9, %v727_v7  ;;  %v639_v18 = vadd.f32 %v638_v54, %v609_v44 }
 0x167   : > { %v890_v20 = vpop.f32.mrf.mxu1 }
 0x16b   : > { %v729_v58 = vpop.f32.mrf.mxu2 }
 0x16c   : > { %v730_v16 = vadd.f32 %v729_v58, %v700_v52 }
 0x16d   : > { %v641_v59 = vpop.f32.mrf.mxu0  ;;  %v795_v29 = vpop.f32.mrf.mxu3 }
 0x16e   : > { %v737_v21 = vmax.f32 %v639_v18, %v730_v16  ;;  %v642_v30 = vadd.f32 %v641_v59, %v612_v45 }
 0x16f   : > { %v893_v32 = vpop.f32.mrf.mxu1 }
 0x173   : > { %v732_v60 = vpop.f32.mrf.mxu2 }
 0x174   : > { %v733_v27 = vadd.f32 %v732_v60, %v703_v57 }
 0x175   : > { %v798_v62 = vpop.f32.mrf.mxu3  ;;  %v818_v56 = vpop.f32.mrf.mxu0 }
 0x176   : > { %v819_v49 = vadd.f32 %v818_v56, %v789_v51  ;;  %v738_v22 = vmax.f32 %v642_v30, %v733_v27 }
 0x178   : > { %v830_v4 = vmax.f32 %v735_v2, %v819_v49 }
 0x17b   : > { %v913_v3 = vpop.f32.mrf.mxu2 }
 0x17c   : > { %v914_v5 = vadd.f32 %v913_v3, %v884_v61 }
 0x17d   : > { %v821_v6 = vpop.f32.mrf.mxu3 }
 0x17e   : > { %v925_v1 = vmax.f32 %v830_v4, %v914_v5  ;;  %v822_v10 = vadd.f32 %v821_v6, %v792_v55 }
 0x180   : > { %930 = vst.msk [vmem:[%s1801_s17] sm:$0xff] %vm929_vm3, %v925_v1  ;;  %v831_v13 = vmax.f32 %v736_v11, %v822_v10 }
 0x183   : > { %v916_v12 = vpop.f32.mrf.mxu2 }
 0x184   : > { %v917_v14 = vadd.f32 %v916_v12, %v887_v8 }
 0x185   : > { %v824_v15 = vpop.f32.mrf.mxu3 }
 0x186   : > { %v926_v17 = vmax.f32 %v831_v13, %v917_v14  ;;  %v825_v19 = vadd.f32 %v824_v15, %v795_v29 }
 0x188   : > { %931 = vst.msk [vmem:[%s1801_s17 + $0x8] sm:$0xff] %vm929_vm3, %v926_v17  ;;  %v832_v24 = vmax.f32 %v737_v21, %v825_v19 }
 0x18b   : > { %v919_v23 = vpop.f32.mrf.mxu2 }
 0x18c   : > { %v920_v25 = vadd.f32 %v919_v23, %v890_v20 }
 0x18d   : > { %v827_v26 = vpop.f32.mrf.mxu3 }
 0x18e   : > { %v927_v28 = vmax.f32 %v832_v24, %v920_v25  ;;  %v828_v31 = vadd.f32 %v827_v26, %v798_v62 }
 0x190   : > { %932 = vst.msk [vmem:[%s1801_s17 + $0x10] sm:$0xff] %vm929_vm3, %v927_v28  ;;  %v833_v34 = vmax.f32 %v738_v22, %v828_v31 }
 0x193   : > { %v922_v33 = vpop.f32.mrf.mxu2 }
 0x194   : > { %v923_v35 = vadd.f32 %v922_v33, %v893_v32 }
 0x196   : > { %v928_v36 = vmax.f32 %v833_v34, %v923_v35 }
 0x198   : > { %933 = vst.msk [vmem:[%s1801_s17 + $0x18] sm:$0xff] %vm929_vm3, %v928_v36 }
 0x199 PF: > { %s13_s12 = sadd.s32 1, %s1143_s12  }
 0x19a   : > { %p10_p4 = scmp.ge.s32.totalorder %s13_s12, 4  }
 0x19c   :  { %12 = sbr.rel (!%p10_p4) target bundleno = 1 (0x1), region = 65 }

// kernel: cnn_forward.5
= control target key start
LH: loop header
LB: loop body
LE: loop exit
PB: predicated region body
PF: predicated region fallthrough
CT: control target
= control target key end

     0   :  { %s1194_s0 = inlined_call_operand.vmem [shape: f32[2,1568], index: 0, kind: input, shape index: {}]   ;;  %s1195_s1 = inlined_call_operand.vmem [shape: f32[1568,128], index: 1, kind: input, shape index: {}]   ;;  %s1196_s2 = inlined_call_operand.hbm [shape: f32[2,128], index: 2, kind: output, shape index: {}]  }
   0x1   :  { %v31_v0 = vld [vmem:[%s1195_s1 + $0x78] sm:$0xff]  ;;  %v30_v2 = vld [vmem:[%s1195_s1 + $0x70] sm:$0xff]  ;;  %v29_v6 = vld [vmem:[%s1195_s1 + $0x68] sm:$0xff] }
   0x2   :  { %v63_v1 = vld [vmem:[%s1195_s1 + $0x178] sm:$0xff]  ;;  %249 = vmatpush.msra.mxu0 %v31_v0  ;;  %v62_v4 = vld [vmem:[%s1195_s1 + $0x170] sm:$0xff]  ;;  %v61_v8 = vld [vmem:[%s1195_s1 + $0x168] sm:$0xff] }
   0x3   :  { %289 = vmatpush.msra.mxu2 %v63_v1  ;;  %v47_v3 = vld [vmem:[%s1195_s1 + $0xf8] sm:$0xff]  ;;  %v46_v7 = vld [vmem:[%s1195_s1 + $0xf0] sm:$0xff]  ;;  %v45_v10 = vld [vmem:[%s1195_s1 + $0xe8] sm:$0xff] }
   0x4   :  { %v79_v5 = vld [vmem:[%s1195_s1 + $0x1f8] sm:$0xff]  ;;  %269 = vmatpush.msra.mxu1 %v47_v3  ;;  %250 = vmatpush.msra.mxu0 %v30_v2  ;;  %v78_v9 = vld [vmem:[%s1195_s1 + $0x1f0] sm:$0xff]  ;;  %v28_v11 = vld [vmem:[%s1195_s1 + $0x60] sm:$0xff] }
   0x5   :  { %309 = vmatpush.msra.mxu3 %v79_v5  ;;  %290 = vmatpush.msra.mxu2 %v62_v4  ;;  %v60_v12 = vld [vmem:[%s1195_s1 + $0x160] sm:$0xff]  ;;  %v77_v13 = vld [vmem:[%s1195_s1 + $0x1e8] sm:$0xff]  ;;  %v27_v16 = vld [vmem:[%s1195_s1 + $0x58] sm:$0xff] }
   0x6   :  { %270 = vmatpush.msra.mxu1 %v46_v7  ;;  %251 = vmatpush.msra.mxu0 %v29_v6  ;;  %v44_v14 = vld [vmem:[%s1195_s1 + $0xe0] sm:$0xff]  ;;  %v59_v17 = vld [vmem:[%s1195_s1 + $0x158] sm:$0xff]  ;;  %v26_v20 = vld [vmem:[%s1195_s1 + $0x50] sm:$0xff] }
   0x7   :  { %310 = vmatpush.msra.mxu3 %v78_v9  ;;  %291 = vmatpush.msra.mxu2 %v61_v8  ;;  %v76_v15 = vld [vmem:[%s1195_s1 + $0x1e0] sm:$0xff]  ;;  %v43_v18 = vld [vmem:[%s1195_s1 + $0xd8] sm:$0xff]  ;;  %v58_v21 = vld [vmem:[%s1195_s1 + $0x150] sm:$0xff] }
   0x8   :  { %271 = vmatpush.msra.mxu1 %v45_v10  ;;  %252 = vmatpush.msra.mxu0 %v28_v11  ;;  %v75_v19 = vld [vmem:[%s1195_s1 + $0x1d8] sm:$0xff]  ;;  %v42_v22 = vld [vmem:[%s1195_s1 + $0xd0] sm:$0xff]  ;;  %v25_v24 = vld [vmem:[%s1195_s1 + $0x48] sm:$0xff] }
   0x9   :  { %311 = vmatpush.msra.mxu3 %v77_v13  ;;  %292 = vmatpush.msra.mxu2 %v60_v12  ;;  %v74_v23 = vld [vmem:[%s1195_s1 + $0x1d0] sm:$0xff]  ;;  %v57_v25 = vld [vmem:[%s1195_s1 + $0x148] sm:$0xff]  ;;  %v24_v28 = vld [vmem:[%s1195_s1 + $0x40] sm:$0xff] }
   0xa   :  { %272 = vmatpush.msra.mxu1 %v44_v14  ;;  %253 = vmatpush.msra.mxu0 %v27_v16  ;;  %v41_v26 = vld [vmem:[%s1195_s1 + $0xc8] sm:$0xff]  ;;  %v56_v29 = vld [vmem:[%s1195_s1 + $0x140] sm:$0xff]  ;;  %v23_v32 = vld [vmem:[%s1195_s1 + $0x38] sm:$0xff] }
   0xb   :  { %312 = vmatpush.msra.mxu3 %v76_v15  ;;  %293 = vmatpush.msra.mxu2 %v59_v17  ;;  %v73_v27 = vld [vmem:[%s1195_s1 + $0x1c8] sm:$0xff]  ;;  %v40_v30 = vld [vmem:[%s1195_s1 + $0xc0] sm:$0xff]  ;;  %v55_v33 = vld [vmem:[%s1195_s1 + $0x138] sm:$0xff] }
   0xc   :  { %273 = vmatpush.msra.mxu1 %v43_v18  ;;  %254 = vmatpush.msra.mxu0 %v26_v20  ;;  %v72_v31 = vld [vmem:[%s1195_s1 + $0x1c0] sm:$0xff]  ;;  %v39_v34 = vld [vmem:[%s1195_s1 + $0xb8] sm:$0xff]  ;;  %v22_v36 = vld [vmem:[%s1195_s1 + $0x30] sm:$0xff] }
   0xd   :  { %313 = vmatpush.msra.mxu3 %v75_v19  ;;  %294 = vmatpush.msra.mxu2 %v58_v21  ;;  %v71_v35 = vld [vmem:[%s1195_s1 + $0x1b8] sm:$0xff]  ;;  %v54_v37 = vld [vmem:[%s1195_s1 + $0x130] sm:$0xff]  ;;  %v21_v40 = vld [vmem:[%s1195_s1 + $0x28] sm:$0xff] }
   0xe   :  { %274 = vmatpush.msra.mxu1 %v42_v22  ;;  %255 = vmatpush.msra.mxu0 %v25_v24  ;;  %v38_v38 = vld [vmem:[%s1195_s1 + $0xb0] sm:$0xff]  ;;  %v53_v41 = vld [vmem:[%s1195_s1 + $0x128] sm:$0xff]  ;;  %v20_v44 = vld [vmem:[%s1195_s1 + $0x20] sm:$0xff] }
   0xf   :  { %314 = vmatpush.msra.mxu3 %v74_v23  ;;  %295 = vmatpush.msra.mxu2 %v57_v25  ;;  %v70_v39 = vld [vmem:[%s1195_s1 + $0x1b0] sm:$0xff]  ;;  %v37_v42 = vld [vmem:[%s1195_s1 + $0xa8] sm:$0xff]  ;;  %v52_v45 = vld [vmem:[%s1195_s1 + $0x120] sm:$0xff] }
  0x10   :  { %275 = vmatpush.msra.mxu1 %v41_v26  ;;  %256 = vmatpush.msra.mxu0 %v24_v28  ;;  %v69_v43 = vld [vmem:[%s1195_s1 + $0x1a8] sm:$0xff]  ;;  %v36_v46 = vld [vmem:[%s1195_s1 + $0xa0] sm:$0xff]  ;;  %v19_v48 = vld [vmem:[%s1195_s1 + $0x18] sm:$0xff] }
  0x11   :  { %315 = vmatpush.msra.mxu3 %v73_v27  ;;  %296 = vmatpush.msra.mxu2 %v56_v29  ;;  %v68_v47 = vld [vmem:[%s1195_s1 + $0x1a0] sm:$0xff]  ;;  %v51_v49 = vld [vmem:[%s1195_s1 + $0x118] sm:$0xff]  ;;  %v18_v52 = vld [vmem:[%s1195_s1 + $0x10] sm:$0xff] }
  0x12   :  { %276 = vmatpush.msra.mxu1 %v40_v30  ;;  %257 = vmatpush.msra.mxu0 %v23_v32  ;;  %v35_v50 = vld [vmem:[%s1195_s1 + $0x98] sm:$0xff]  ;;  %v50_v53 = vld [vmem:[%s1195_s1 + $0x110] sm:$0xff]  ;;  %v17_v56 = vld [vmem:[%s1195_s1 + $0x8] sm:$0xff] }
  0x13   :  { %316 = vmatpush.msra.mxu3 %v72_v31  ;;  %297 = vmatpush.msra.mxu2 %v55_v33  ;;  %v67_v51 = vld [vmem:[%s1195_s1 + $0x198] sm:$0xff]  ;;  %v34_v54 = vld [vmem:[%s1195_s1 + $0x90] sm:$0xff]  ;;  %v49_v57 = vld [vmem:[%s1195_s1 + $0x108] sm:$0xff] }
  0x14   :  { %277 = vmatpush.msra.mxu1 %v39_v34  ;;  %258 = vmatpush.msra.mxu0 %v22_v36  ;;  %v66_v55 = vld [vmem:[%s1195_s1 + $0x190] sm:$0xff]  ;;  %v33_v58 = vld [vmem:[%s1195_s1 + $0x88] sm:$0xff]  ;;  %v16_v60 = vld [vmem:[%s1195_s1] sm:$0xff] }
  0x15   :  { %317 = vmatpush.msra.mxu3 %v71_v35  ;;  %298 = vmatpush.msra.mxu2 %v54_v37  ;;  %v65_v59 = vld [vmem:[%s1195_s1 + $0x188] sm:$0xff]  ;;  %v48_v61 = vld [vmem:[%s1195_s1 + $0x100] sm:$0xff]  ;;  %v95_v62 = vld [vmem:[%s1195_s1 + $0x278] sm:$0xff] }
  0x16   :  { %278 = vmatpush.msra.mxu1 %v38_v38  ;;  %259 = vmatpush.msra.mxu0 %v21_v40  ;;  %v127_v63 = vld [vmem:[%s1195_s1 + $0x378] sm:$0xff]  ;;  %v32_v0 = vld [vmem:[%s1195_s1 + $0x80] sm:$0xff]  ;;  %v94_v2 = vld [vmem:[%s1195_s1 + $0x270] sm:$0xff] }
  0x17   :  { %318 = vmatpush.msra.mxu3 %v70_v39  ;;  %299 = vmatpush.msra.mxu2 %v53_v41  ;;  %v64_v1 = vld [vmem:[%s1195_s1 + $0x180] sm:$0xff]  ;;  %v111_v3 = vld [vmem:[%s1195_s1 + $0x2f8] sm:$0xff]  ;;  %v126_v4 = vld [vmem:[%s1195_s1 + $0x370] sm:$0xff] }
  0x18   :  { %279 = vmatpush.msra.mxu1 %v37_v42  ;;  %260 = vmatpush.msra.mxu0 %v20_v44  ;;  %v143_v5 = vld [vmem:[%s1195_s1 + $0x3f8] sm:$0xff]  ;;  %v93_v6 = vld [vmem:[%s1195_s1 + $0x268] sm:$0xff]  ;;  %v110_v7 = vld [vmem:[%s1195_s1 + $0x2f0] sm:$0xff] }
  0x19   :  { %319 = vmatpush.msra.mxu3 %v69_v43  ;;  %300 = vmatpush.msra.mxu2 %v52_v45  ;;  %v125_v8 = vld [vmem:[%s1195_s1 + $0x368] sm:$0xff]  ;;  %v142_v9 = vld [vmem:[%s1195_s1 + $0x3f0] sm:$0xff]  ;;  %v92_v10 = vld [vmem:[%s1195_s1 + $0x260] sm:$0xff] }
  0x1a   :  { %280 = vmatpush.msra.mxu1 %v36_v46  ;;  %261 = vmatpush.msra.mxu0 %v19_v48  ;;  %v109_v11 = vld [vmem:[%s1195_s1 + $0x2e8] sm:$0xff]  ;;  %v124_v12 = vld [vmem:[%s1195_s1 + $0x360] sm:$0xff]  ;;  %v91_v14 = vld [vmem:[%s1195_s1 + $0x258] sm:$0xff] }
  0x1b   :  { %320 = vmatpush.msra.mxu3 %v68_v47  ;;  %301 = vmatpush.msra.mxu2 %v51_v49  ;;  %v141_v13 = vld [vmem:[%s1195_s1 + $0x3e8] sm:$0xff]  ;;  %v108_v15 = vld [vmem:[%s1195_s1 + $0x2e0] sm:$0xff]  ;;  %v123_v16 = vld [vmem:[%s1195_s1 + $0x358] sm:$0xff] }
  0x1c   :  { %281 = vmatpush.msra.mxu1 %v35_v50  ;;  %262 = vmatpush.msra.mxu0 %v18_v52  ;;  %v140_v17 = vld [vmem:[%s1195_s1 + $0x3e0] sm:$0xff]  ;;  %v90_v18 = vld [vmem:[%s1195_s1 + $0x250] sm:$0xff]  ;;  %v107_v19 = vld [vmem:[%s1195_s1 + $0x2d8] sm:$0xff] }
  0x1d   :  { %321 = vmatpush.msra.mxu3 %v67_v51  ;;  %302 = vmatpush.msra.mxu2 %v50_v53  ;;  %v122_v20 = vld [vmem:[%s1195_s1 + $0x350] sm:$0xff]  ;;  %v139_v21 = vld [vmem:[%s1195_s1 + $0x3d8] sm:$0xff]  ;;  %v12_v22 = vld [vmem:[%s1194_s0] sm:$0xff] }
  0x1e   :  { %282 = vmatpush.msra.mxu1 %v34_v54  ;;  %263 = vmatpush.msra.mxu0 %v17_v56  ;;  %v89_v23 = vld [vmem:[%s1195_s1 + $0x248] sm:$0xff]  ;;  %v106_v24 = vld [vmem:[%s1195_s1 + $0x2d0] sm:$0xff]  ;;  %216 = vst [vmem:[#allocation1] ss:$4 sm:$0xff] %v12_v22  ;;  %v88_v27 = vld [vmem:[%s1195_s1 + $0x240] sm:$0xff] }
  0x1f   :  { %322 = vmatpush.msra.mxu3 %v66_v55  ;;  %303 = vmatpush.msra.mxu2 %v49_v57  ;;  %v121_v25 = vld [vmem:[%s1195_s1 + $0x348] sm:$0xff]  ;;  %v138_v26 = vld [vmem:[%s1195_s1 + $0x3d0] sm:$0xff]  ;;  %v120_v29 = vld [vmem:[%s1195_s1 + $0x340] sm:$0xff] }
  0x20   :  { %283 = vmatpush.msra.mxu1 %v33_v58  ;;  %264 = vmatpush.msra.mxu0 %v16_v60  ;;  %v105_v28 = vld [vmem:[%s1195_s1 + $0x2c8] sm:$0xff]  ;;  %v87_v31 = vld [vmem:[%s1195_s1 + $0x238] sm:$0xff]  ;;  %v104_v32 = vld [vmem:[%s1195_s1 + $0x2c0] sm:$0xff] }
  0x21   :  { %323 = vmatpush.msra.mxu3 %v65_v59  ;;  %304 = vmatpush.msra.mxu2 %v48_v61  ;;  %v137_v30 = vld [vmem:[%s1195_s1 + $0x3c8] sm:$0xff]  ;;  %v119_v33 = vld [vmem:[%s1195_s1 + $0x338] sm:$0xff]  ;;  %v136_v34 = vld [vmem:[%s1195_s1 + $0x3c0] sm:$0xff] }
  0x22   :  { %329 = vmatpush.msrb.mxu0 %v95_v62  ;;  %284 = vmatpush.msra.mxu1 %v32_v0  ;;  %v86_v35 = vld [vmem:[%s1195_s1 + $0x230] sm:$0xff]  ;;  %v103_v36 = vld [vmem:[%s1195_s1 + $0x2b8] sm:$0xff]  ;;  %v13_v39 = vld [vmem:[%s1194_s0 + $0x8] sm:$0xff] }
  0x23   :  { %369 = vmatpush.msrb.mxu2 %v127_v63  ;;  %324 = vmatpush.msra.mxu3 %v64_v1  ;;  %v118_v37 = vld [vmem:[%s1195_s1 + $0x330] sm:$0xff]  ;;  %v135_v38 = vld [vmem:[%s1195_s1 + $0x3b8] sm:$0xff]  ;;  %v85_v40 = vld [vmem:[%s1195_s1 + $0x228] sm:$0xff]  ;;  %218 = vst [vmem:[#allocation1 + $0x20] ss:$4 sm:$0xff] %v13_v39 }
  0x24   :  { %330 = vmatpush.msrb.mxu0 %v94_v2  ;;  %349 = vmatpush.msrb.mxu1 %v111_v3  ;;  %v102_v41 = vld [vmem:[%s1195_s1 + $0x2b0] sm:$0xff]  ;;  %v117_v43 = vld [vmem:[%s1195_s1 + $0x328] sm:$0xff]  ;;  %v84_v49 = vld [vmem:[%s1195_s1 + $0x220] sm:$0xff] }
  0x25   :  { %370 = vmatpush.msrb.mxu2 %v126_v4  ;;  %389 = vmatpush.msrb.mxu3 %v143_v5  ;;  %v14_v42 = vld [vmem:[%s1194_s0 + $0x10] sm:$0xff]  ;;  %v894_v45 = vld.sshfl [vmem:[#allocation1] sm:$0xff pattern:$0x73625140]  ;;  %v101_v50 = vld [vmem:[%s1195_s1 + $0x2a8] sm:$0xff] }
  0x26   :  { %331 = vmatpush.msrb.mxu0 %v93_v6  ;;  %350 = vmatpush.msrb.mxu1 %v110_v7  ;;  %v221_v44 = vld.sshfl [vmem:[#allocation1 + $0x10] sm:$0xff pattern:$0x73625140]  ;;  %v896_v46 = vld.sshfl [vmem:[#allocation1 + $0x18] sm:$0xff pattern:$0x73625140] }
  0x27   :  { %371 = vmatpush.msrb.mxu2 %v125_v8  ;;  %390 = vmatpush.msrb.mxu3 %v142_v9  ;;  %v898_v47 = vld.sshfl [vmem:[#allocation1 + $0x8] sm:$0xff pattern:$0x73625140]  ;;  %v134_v48 = vld [vmem:[%s1195_s1 + $0x3b0] sm:$0xff]  ;;  %v116_v51 = vld [vmem:[%s1195_s1 + $0x320] sm:$0xff] }
  0x28   :  { %332 = vmatpush.msrb.mxu0 %v92_v10  ;;  %351 = vmatpush.msrb.mxu1 %v109_v11  ;;  %227 = vst [vmem:[#allocation1] ss:$4 sm:$0xff] %v14_v42  ;;  %v133_v52 = vld [vmem:[%s1195_s1 + $0x3a8] sm:$0xff]  ;;  %v83_v53 = vld [vmem:[%s1195_s1 + $0x218] sm:$0xff]  ;;  %v100_v54 = vld [vmem:[%s1195_s1 + $0x2a0] sm:$0xff] }
  0x29   :  { %372 = vmatpush.msrb.mxu2 %v124_v12  ;;  %391 = vmatpush.msrb.mxu3 %v141_v13  ;;  %v115_v55 = vld [vmem:[%s1195_s1 + $0x318] sm:$0xff]  ;;  %v132_v56 = vld [vmem:[%s1195_s1 + $0x3a0] sm:$0xff]  ;;  %v82_v57 = vld [vmem:[%s1195_s1 + $0x210] sm:$0xff] }
  0x2a   :  { %333 = vmatpush.msrb.mxu0 %v91_v14  ;;  %352 = vmatpush.msrb.mxu1 %v108_v15  ;;  %v99_v58 = vld [vmem:[%s1195_s1 + $0x298] sm:$0xff]  ;;  %v936_v60 = vld.sshfl [vmem:[#allocation1 + $0x30] sm:$0xff pattern:$0x73625140]  ;;  %v81_v2 = vld [vmem:[%s1195_s1 + $0x208] sm:$0xff] }
  0x2b   :  { %373 = vmatpush.msrb.mxu2 %v123_v16  ;;  %392 = vmatpush.msrb.mxu3 %v140_v17  ;;  %v15_v59 = vld [vmem:[%s1194_s0 + $0x18] sm:$0x3]  ;;  %v938_v61 = vld.sshfl [vmem:[#allocation1 + $0x20] sm:$0xff pattern:$0x73625140]  ;;  %v114_v0 = vld [vmem:[%s1195_s1 + $0x310] sm:$0xff] }
  0x2c   :  { %334 = vmatpush.msrb.mxu0 %v90_v18  ;;  %353 = vmatpush.msrb.mxu1 %v107_v19  ;;  %v940_v62 = vld.sshfl [vmem:[#allocation1 + $0x38] sm:$0xff pattern:$0x73625140]  ;;  %v942_v63 = vld.sshfl [vmem:[#allocation1 + $0x28] sm:$0xff pattern:$0x73625140] }
  0x2d   :  { %374 = vmatpush.msrb.mxu2 %v122_v20  ;;  %393 = vmatpush.msrb.mxu3 %v139_v21  ;;  %v131_v1 = vld [vmem:[%s1195_s1 + $0x398] sm:$0xff]  ;;  %228 = vst [vmem:[#allocation1 + $0x20] ss:$4 sm:$0xff] %v15_v59  ;;  %v98_v3 = vld [vmem:[%s1195_s1 + $0x290] sm:$0xff]  ;;  %v113_v4 = vld [vmem:[%s1195_s1 + $0x308] sm:$0xff] }
  0x2e   :  { %335 = vmatpush.msrb.mxu0 %v89_v23  ;;  %354 = vmatpush.msrb.mxu1 %v106_v24  ;;  %v130_v5 = vld [vmem:[%s1195_s1 + $0x390] sm:$0xff]  ;;  %v80_v6 = vld [vmem:[%s1195_s1 + $0x200] sm:$0xff]  ;;  %v97_v7 = vld [vmem:[%s1195_s1 + $0x288] sm:$0xff] }
  0x2f   :  { %375 = vmatpush.msrb.mxu2 %v121_v25  ;;  %394 = vmatpush.msrb.mxu3 %v138_v26  ;;  %v112_v8 = vld [vmem:[%s1195_s1 + $0x300] sm:$0xff]  ;;  %v129_v9 = vld [vmem:[%s1195_s1 + $0x388] sm:$0xff]  ;;  %v159_v10 = vld [vmem:[%s1195_s1 + $0x478] sm:$0xff] }
  0x30   :  { %336 = vmatpush.msrb.mxu0 %v88_v27  ;;  %355 = vmatpush.msrb.mxu1 %v105_v28  ;;  %v191_v11 = vld [vmem:[%s1195_s1 + $0x578] sm:$0xff]  ;;  %v96_v12 = vld [vmem:[%s1195_s1 + $0x280] sm:$0xff]  ;;  %v158_v14 = vld [vmem:[%s1195_s1 + $0x470] sm:$0xff] }
  0x31   :  { %376 = vmatpush.msrb.mxu2 %v120_v29  ;;  %395 = vmatpush.msrb.mxu3 %v137_v30  ;;  %v128_v13 = vld [vmem:[%s1195_s1 + $0x380] sm:$0xff]  ;;  %v175_v15 = vld [vmem:[%s1195_s1 + $0x4f8] sm:$0xff]  ;;  %v190_v16 = vld [vmem:[%s1195_s1 + $0x570] sm:$0xff] }
  0x32   :  { %337 = vmatpush.msrb.mxu0 %v87_v31  ;;  %356 = vmatpush.msrb.mxu1 %v104_v32  ;;  %v207_v17 = vld [vmem:[%s1195_s1 + $0x5f8] sm:$0xff]  ;;  %v157_v18 = vld [vmem:[%s1195_s1 + $0x468] sm:$0xff]  ;;  %v174_v19 = vld [vmem:[%s1195_s1 + $0x4f0] sm:$0xff] }
  0x33   :  { %377 = vmatpush.msrb.mxu2 %v119_v33  ;;  %396 = vmatpush.msrb.mxu3 %v136_v34  ;;  %v189_v20 = vld [vmem:[%s1195_s1 + $0x568] sm:$0xff]  ;;  %v206_v21 = vld [vmem:[%s1195_s1 + $0x5f0] sm:$0xff]  ;;  %v156_v22 = vld [vmem:[%s1195_s1 + $0x460] sm:$0xff] }
  0x34   :  { %338 = vmatpush.msrb.mxu0 %v86_v35  ;;  %357 = vmatpush.msrb.mxu1 %v103_v36  ;;  %v173_v23 = vld [vmem:[%s1195_s1 + $0x4e8] sm:$0xff]  ;;  %v188_v24 = vld [vmem:[%s1195_s1 + $0x560] sm:$0xff] }
  0x35   :  { %378 = vmatpush.msrb.mxu2 %v118_v37  ;;  %397 = vmatpush.msrb.mxu3 %v135_v38  ;;  %v205_v25 = vld [vmem:[%s1195_s1 + $0x5e8] sm:$0xff] }
  0x36   :  { %339 = vmatpush.msrb.mxu0 %v85_v40  ;;  %358 = vmatpush.msrb.mxu1 %v102_v41 }
  0x37   :  { %379 = vmatpush.msrb.mxu2 %v117_v43  ;;  %398 = vmatpush.msrb.mxu3 %v134_v48 }
  0x38   :  { %340 = vmatpush.msrb.mxu0 %v84_v49  ;;  %359 = vmatpush.msrb.mxu1 %v101_v50 }
  0x39   :  { %380 = vmatpush.msrb.mxu2 %v116_v51  ;;  %399 = vmatpush.msrb.mxu3 %v133_v52 }
  0x3a   :  { %341 = vmatpush.msrb.mxu0 %v83_v53  ;;  %360 = vmatpush.msrb.mxu1 %v100_v54 }
  0x3b   :  { %381 = vmatpush.msrb.mxu2 %v115_v55  ;;  %400 = vmatpush.msrb.mxu3 %v132_v56 }
  0x3c   :  { %342 = vmatpush.msrb.mxu0 %v82_v57  ;;  %361 = vmatpush.msrb.mxu1 %v99_v58 }
  0x3d   :  { %382 = vmatpush.msrb.mxu2 %v114_v0  ;;  %401 = vmatpush.msrb.mxu3 %v131_v1 }
  0x3e   :  { %343 = vmatpush.msrb.mxu0 %v81_v2  ;;  %362 = vmatpush.msrb.mxu1 %v98_v3 }
  0x3f   :  { %383 = vmatpush.msrb.mxu2 %v113_v4  ;;  %402 = vmatpush.msrb.mxu3 %v130_v5 }
  0x40   :  { %305 = vmatmul.f32.vlgmr.msra.gmra.mxu2 %v221_v44  ;;  %344 = vmatpush.msrb.mxu0 %v80_v6 }
  0x41   :  { %363 = vmatpush.msrb.mxu1 %v97_v7  ;;  %384 = vmatpush.msrb.mxu2 %v112_v8 }
  0x42   :  { %403 = vmatpush.msrb.mxu3 %v129_v9  ;;  %265 = vmatmul.f32.vlgmr.msra.gmra.mxu0 %v894_v45 }
  0x43   :  { %325 = vmatmul.f32.vlgmr.msra.gmra.mxu3 %v896_v46  ;;  %409 = vmatpush.msra.mxu0 %v159_v10 }
  0x44   :  { %449 = vmatpush.msra.mxu2 %v191_v11  ;;  %364 = vmatpush.msrb.mxu1 %v96_v12 }
  0x45   :  { %404 = vmatpush.msrb.mxu3 %v128_v13  ;;  %285 = vmatmul.f32.vlgmr.msra.gmra.mxu1 %v898_v47 }
  0x46   :  { %410 = vmatpush.msra.mxu0 %v158_v14  ;;  %429 = vmatpush.msra.mxu1 %v175_v15 }
  0x47   :  { %450 = vmatpush.msra.mxu2 %v190_v16  ;;  %469 = vmatpush.msra.mxu3 %v207_v17 }
  0x48   :  { %411 = vmatpush.msra.mxu0 %v157_v18  ;;  %430 = vmatpush.msra.mxu1 %v174_v19 }
  0x49   :  { %451 = vmatpush.msra.mxu2 %v189_v20  ;;  %470 = vmatpush.msra.mxu3 %v206_v21 }
  0x4a   :  { %7 = vsyncpa [#allocation3], 0  ;;  %385 = vmatmul.f32.vlgmr.msrb.gmra.mxu2 %v936_v60  ;;  %412 = vmatpush.msra.mxu0 %v156_v22  ;;  %v155_v26 = vld [vmem:[%s1195_s1 + $0x458] sm:$0xff]  ;;  %v172_v27 = vld [vmem:[%s1195_s1 + $0x4e0] sm:$0xff]  ;;  %vm246_vm0 = vcmask 261120   ;;  %s517_s14 = sshll.u32 %s1196_s2, 4  ;;  %s518_s14 = int_to_ptr.hbm [resolvable:$true] %s517_s14 }
  0x4b   :  { %431 = vmatpush.msra.mxu1 %v173_v23  ;;  %452 = vmatpush.msra.mxu2 %v188_v24  ;;  %v187_v28 = vld [vmem:[%s1195_s1 + $0x558] sm:$0xff]  ;;  %v204_v29 = vld [vmem:[%s1195_s1 + $0x5e0] sm:$0xff]  ;;  %v154_v30 = vld [vmem:[%s1195_s1 + $0x450] sm:$0xff] }
  0x4c   :  { %471 = vmatpush.msra.mxu3 %v205_v25  ;;  %345 = vmatmul.f32.vlgmr.msrb.gmra.mxu0 %v938_v61  ;;  %v171_v31 = vld [vmem:[%s1195_s1 + $0x4d8] sm:$0xff]  ;;  %v186_v32 = vld [vmem:[%s1195_s1 + $0x550] sm:$0xff]  ;;  %v153_v34 = vld [vmem:[%s1195_s1 + $0x448] sm:$0xff] }
  0x4d   :  { %405 = vmatmul.f32.vlgmr.msrb.gmra.mxu3 %v940_v62  ;;  %413 = vmatpush.msra.mxu0 %v155_v26  ;;  %v203_v33 = vld [vmem:[%s1195_s1 + $0x5d8] sm:$0xff]  ;;  %v170_v35 = vld [vmem:[%s1195_s1 + $0x4d0] sm:$0xff]  ;;  %v185_v36 = vld [vmem:[%s1195_s1 + $0x548] sm:$0xff] }
  0x4e   :  { %432 = vmatpush.msra.mxu1 %v172_v27  ;;  %453 = vmatpush.msra.mxu2 %v187_v28  ;;  %v202_v37 = vld [vmem:[%s1195_s1 + $0x5d0] sm:$0xff]  ;;  %v152_v38 = vld [vmem:[%s1195_s1 + $0x440] sm:$0xff]  ;;  %v169_v39 = vld [vmem:[%s1195_s1 + $0x4c8] sm:$0xff] }
  0x4f   :  { %472 = vmatpush.msra.mxu3 %v204_v29  ;;  %365 = vmatmul.f32.vlgmr.msrb.gmra.mxu1 %v942_v63  ;;  %v184_v40 = vld [vmem:[%s1195_s1 + $0x540] sm:$0xff]  ;;  %v201_v41 = vld [vmem:[%s1195_s1 + $0x5c8] sm:$0xff]  ;;  %v151_v42 = vld [vmem:[%s1195_s1 + $0x438] sm:$0xff] }
  0x50   :  { %414 = vmatpush.msra.mxu0 %v154_v30  ;;  %433 = vmatpush.msra.mxu1 %v171_v31  ;;  %v168_v43 = vld [vmem:[%s1195_s1 + $0x4c0] sm:$0xff]  ;;  %v183_v44 = vld [vmem:[%s1195_s1 + $0x538] sm:$0xff]  ;;  %v150_v46 = vld [vmem:[%s1195_s1 + $0x430] sm:$0xff] }
  0x51   :  { %454 = vmatpush.msra.mxu2 %v186_v32  ;;  %473 = vmatpush.msra.mxu3 %v203_v33  ;;  %v200_v45 = vld [vmem:[%s1195_s1 + $0x5c0] sm:$0xff]  ;;  %v167_v47 = vld [vmem:[%s1195_s1 + $0x4b8] sm:$0xff]  ;;  %v182_v48 = vld [vmem:[%s1195_s1 + $0x530] sm:$0xff] }
  0x52   :  { %415 = vmatpush.msra.mxu0 %v153_v34  ;;  %434 = vmatpush.msra.mxu1 %v170_v35  ;;  %v199_v49 = vld [vmem:[%s1195_s1 + $0x5b8] sm:$0xff]  ;;  %v149_v50 = vld [vmem:[%s1195_s1 + $0x428] sm:$0xff]  ;;  %v166_v51 = vld [vmem:[%s1195_s1 + $0x4b0] sm:$0xff] }
  0x53   :  { %455 = vmatpush.msra.mxu2 %v185_v36  ;;  %474 = vmatpush.msra.mxu3 %v202_v37  ;;  %v181_v52 = vld [vmem:[%s1195_s1 + $0x528] sm:$0xff]  ;;  %v198_v53 = vld [vmem:[%s1195_s1 + $0x5b0] sm:$0xff]  ;;  %v148_v54 = vld [vmem:[%s1195_s1 + $0x420] sm:$0xff] }
  0x54   :  { %416 = vmatpush.msra.mxu0 %v152_v38  ;;  %435 = vmatpush.msra.mxu1 %v169_v39  ;;  %v165_v55 = vld [vmem:[%s1195_s1 + $0x4a8] sm:$0xff]  ;;  %v180_v56 = vld [vmem:[%s1195_s1 + $0x520] sm:$0xff]  ;;  %v147_v58 = vld [vmem:[%s1195_s1 + $0x418] sm:$0xff] }
  0x55   :  { %456 = vmatpush.msra.mxu2 %v184_v40  ;;  %475 = vmatpush.msra.mxu3 %v201_v41  ;;  %v197_v57 = vld [vmem:[%s1195_s1 + $0x5a8] sm:$0xff]  ;;  %v164_v59 = vld [vmem:[%s1195_s1 + $0x4a0] sm:$0xff]  ;;  %v179_v60 = vld [vmem:[%s1195_s1 + $0x518] sm:$0xff] }
  0x56   :  { %417 = vmatpush.msra.mxu0 %v151_v42  ;;  %436 = vmatpush.msra.mxu1 %v168_v43  ;;  %v196_v61 = vld [vmem:[%s1195_s1 + $0x5a0] sm:$0xff]  ;;  %v146_v62 = vld [vmem:[%s1195_s1 + $0x410] sm:$0xff]  ;;  %v163_v63 = vld [vmem:[%s1195_s1 + $0x498] sm:$0xff] }
  0x57   :  { %457 = vmatpush.msra.mxu2 %v183_v44  ;;  %476 = vmatpush.msra.mxu3 %v200_v45  ;;  %v178_v0 = vld [vmem:[%s1195_s1 + $0x510] sm:$0xff]  ;;  %v195_v1 = vld [vmem:[%s1195_s1 + $0x598] sm:$0xff]  ;;  %v145_v2 = vld [vmem:[%s1195_s1 + $0x408] sm:$0xff] }
  0x58   :  { %418 = vmatpush.msra.mxu0 %v150_v46  ;;  %437 = vmatpush.msra.mxu1 %v167_v47  ;;  %v162_v3 = vld [vmem:[%s1195_s1 + $0x490] sm:$0xff]  ;;  %v177_v4 = vld [vmem:[%s1195_s1 + $0x508] sm:$0xff]  ;;  %v144_v6 = vld [vmem:[%s1195_s1 + $0x400] sm:$0xff] }
  0x59   :  { %458 = vmatpush.msra.mxu2 %v182_v48  ;;  %477 = vmatpush.msra.mxu3 %v199_v49  ;;  %v194_v5 = vld [vmem:[%s1195_s1 + $0x590] sm:$0xff]  ;;  %v161_v7 = vld [vmem:[%s1195_s1 + $0x488] sm:$0xff]  ;;  %v176_v8 = vld [vmem:[%s1195_s1 + $0x500] sm:$0xff] }
  0x5a   :  { %419 = vmatpush.msra.mxu0 %v149_v50  ;;  %438 = vmatpush.msra.mxu1 %v166_v51  ;;  %v193_v9 = vld [vmem:[%s1195_s1 + $0x588] sm:$0xff]  ;;  %v229_v10 = vld.sshfl [vmem:[#allocation1] sm:$0xff pattern:$0x73625140]  ;;  %v211_v16 = vld [vmem:[%s1195_s1 + $0x618] sm:$0xff] }
  0x5b   :  { %459 = vmatpush.msra.mxu2 %v181_v52  ;;  %478 = vmatpush.msra.mxu3 %v198_v53  ;;  %v231_v11 = vld.sshfl [vmem:[#allocation1 + $0x10] sm:$0xff pattern:$0x73625140]  ;;  %v160_v12 = vld [vmem:[%s1195_s1 + $0x480] sm:$0xff]  ;;  %v209_v18 = vld [vmem:[%s1195_s1 + $0x608] sm:$0xff] }
  0x5c   :  { %420 = vmatpush.msra.mxu0 %v148_v54  ;;  %439 = vmatpush.msra.mxu1 %v165_v55  ;;  %v192_v13 = vld [vmem:[%s1195_s1 + $0x580] sm:$0xff]  ;;  %v230_v14 = vld.sshfl [vmem:[#allocation1 + $0x8] sm:$0xff pattern:$0x73625140]  ;;  %v210_v17 = vld [vmem:[%s1195_s1 + $0x610] sm:$0xff] }
  0x5d   :  { %460 = vmatpush.msra.mxu2 %v180_v56  ;;  %479 = vmatpush.msra.mxu3 %v197_v57  ;;  %v232_v15 = vld.sshfl [vmem:[#allocation1 + $0x18] sm:$0xff pattern:$0x73625140]  ;;  %v208_v19 = vld [vmem:[%s1195_s1 + $0x600] sm:$0xff]  ;;  %s554_s1 = smov [#allocation2]  }
  0x5e   :  { %421 = vmatpush.msra.mxu0 %v147_v58  ;;  %440 = vmatpush.msra.mxu1 %v164_v59  ;;  %v233_v20 = vld.sshfl [vmem:[#allocation1 + $0x20] sm:$0xff pattern:$0x73625140]  ;;  %s515_s11 = sshll.u32 %s554_s1, 4  ;;  %s516_s11 = int_to_ptr.vmem [resolvable:$true] %s515_s11 }
  0x5f   :  { %461 = vmatpush.msra.mxu2 %v179_v60  ;;  %480 = vmatpush.msra.mxu3 %v196_v61 }
  0x60   :  { %422 = vmatpush.msra.mxu0 %v146_v62  ;;  %441 = vmatpush.msra.mxu1 %v163_v63 }
  0x61   :  { %462 = vmatpush.msra.mxu2 %v178_v0  ;;  %481 = vmatpush.msra.mxu3 %v195_v1 }
  0x62   :  { %423 = vmatpush.msra.mxu0 %v145_v2  ;;  %442 = vmatpush.msra.mxu1 %v162_v3 }
  0x63   :  { %463 = vmatpush.msra.mxu2 %v177_v4  ;;  %482 = vmatpush.msra.mxu3 %v194_v5 }
  0x64   :  { %424 = vmatpush.msra.mxu0 %v144_v6  ;;  %443 = vmatpush.msra.mxu1 %v161_v7 }
  0x65   :  { %464 = vmatpush.msra.mxu2 %v176_v8  ;;  %483 = vmatpush.msra.mxu3 %v193_v9 }
  0x66   :  { %425 = vmatmul.f32.vlgmr.msra.gmra.mxu0 %v229_v10  ;;  %465 = vmatmul.f32.vlgmr.msra.gmra.mxu2 %v231_v11 }
  0x67   :  { %444 = vmatpush.msra.mxu1 %v160_v12  ;;  %484 = vmatpush.msra.mxu3 %v192_v13 }
  0x68   :  { %445 = vmatmul.f32.vlgmr.msra.gmra.mxu1 %v230_v14  ;;  %485 = vmatmul.f32.vlgmr.msra.gmra.mxu3 %v232_v15 }
  0x69   :  { %501 = vmatpush.msrb.mxu0 %v211_v16 }
  0x6b   :  { %502 = vmatpush.msrb.mxu0 %v210_v17 }
  0x6d   :  { %503 = vmatpush.msrb.mxu0 %v209_v18 }
  0x6f   :  { %504 = vmatpush.msrb.mxu0 %v208_v19 }
  0x70   :  { %526 = vmatmul.msk.f32.vlgmr.msrb.gmra.mxu0 %vm246_vm0, %v233_v20 }
  0xbf   :  { %v266_v22 = vpop.f32.mrf.mxu0 }
  0xc2   :  { %v286_v21 = vpop.f32.mrf.mxu1 }
  0xc3   :  { %v287_v23 = vadd.f32 %v286_v21, %v266_v22  ;;  %v306_v24 = vpop.f32.mrf.mxu2 }
  0xc5   :  { %v307_v25 = vadd.f32 %v306_v24, %v287_v23 }
  0xc6   :  { %v326_v26 = vpop.f32.mrf.mxu3 }
  0xc7   :  { %v327_v27 = vadd.f32 %v326_v26, %v307_v25 }
  0xc9   :  { %v346_v28 = vpop.f32.mrf.mxu0 }
  0xca   :  { %v347_v29 = vadd.f32 %v346_v28, %v327_v27 }
  0xcc   :  { %v366_v30 = vpop.f32.mrf.mxu1 }
  0xcd   :  { %v367_v31 = vadd.f32 %v366_v30, %v347_v29  ;;  %v386_v32 = vpop.f32.mrf.mxu2 }
  0xcf   :  { %v387_v33 = vadd.f32 %v386_v32, %v367_v31 }
  0xd0   :  { %v406_v34 = vpop.f32.mrf.mxu3 }
  0xd1   :  { %v407_v35 = vadd.f32 %v406_v34, %v387_v33 }
  0xe3   :  { %v426_v36 = vpop.f32.mrf.mxu0 }
  0xe4   :  { %v427_v37 = vadd.f32 %v426_v36, %v407_v35 }
  0xe5   :  { %v446_v38 = vpop.f32.mrf.mxu1 }
  0xe6   :  { %v447_v39 = vadd.f32 %v446_v38, %v427_v37 }
  0xe9   :  { %v466_v40 = vpop.f32.mrf.mxu2 }
  0xea   :  { %v467_v41 = vadd.f32 %v466_v40, %v447_v39 }
  0xeb   :  { %v486_v42 = vpop.f32.mrf.mxu3 }
  0xec   :  { %v487_v43 = vadd.f32 %v486_v42, %v467_v41 }
  0xed   :  { %v506_v44 = vpop.f32.mrf.mxu0 }
  0xee   :  { %v507_v45 = vadd.f32 %v506_v44, %v487_v43 }
  0xf0   :  { %509 = vst [vmem:[#allocation2] sm:$0x3] %v507_v45 }
  0xf1   :  { %520 = dma.vmem_to_hbm [thread:$0]  %s516_s11, 32, %s518_s14, [#allocation3]  }
  0xf2   :  { %552 = dma.done.wait [#allocation3], 32  }
  0xf3   :  { %553 = vsyncadd [#allocation3], 4294967264 }
  0xf4   :  { %525 = vsyncpa [#allocation3], 1 }

</bundles_post_ra>
